<compile_context>
chip_gen: v7x
topology: tpu7x:2x2x1
jax: 0.10.0
libtpu: 0.0.40
codegen_flags: <defaults>
</compile_context>

<pallas_src>
import functools

import jax
import jax.numpy as jnp
from jax.experimental import pallas as pl
from jax.experimental.pallas import tpu as pltpu


_EPS = 1e-8


def _vmem_limit_bytes():
    """Generation-aware scoped-VMEM limit (~3/4 of physical, <= 100 MiB)."""
    try:
        cap = int(pltpu.get_tpu_info().vmem_capacity_bytes)
    except Exception:            # not a TPU / older API -> conservative default
        cap = 64 * 1024 * 1024
    return max(32 * 1024 * 1024, min((cap * 3) // 4, 100 * 1024 * 1024))


_VMEM_LIMIT = _vmem_limit_bytes()


def _compiler_params(dims):
    return pltpu.CompilerParams(dimension_semantics=dims,
                                vmem_limit_bytes=_VMEM_LIMIT)


def _round_up(x, m):
    return ((x + m - 1) // m) * m


def _masked_gln(x, g, b, mask, inv_n, eps):
    """GroupNorm(num_groups=1) over (C, T_real); single pass E[x^2]-E[x]^2."""
    xm = x * mask
    mean = jnp.sum(xm, keepdims=True) * inv_n                 # (1, 1)
    ex2 = jnp.sum(xm * xm, keepdims=True) * inv_n             # (1, 1)
    var = jnp.maximum(ex2 - mean * mean, 0.0)                 # biased variance
    return (x - mean) * jax.lax.rsqrt(var + eps) * g + b


# ---------------- encoder conv + input gLN + bottleneck 1x1 ------------------

def _frontend_kernel(in_g_ref, in_b_ref, elo_ref, ehi_ref, bw_ref, bb_ref,
                     chunk_ref, enc_ref, feats_ref, *, t_real, t_pad, eps):
    # chunk[:, t] holds waveform samples [t*st, (t+1)*st); frame t is
    # [chunk[:, t]; chunk[:, t+1]] since encoder_kernel_size == 2 * stride.
    lo = chunk_ref[0]                                          # (st, Tp) f32
    hi = pltpu.roll(lo, t_pad - 1, axis=1)                     # chunk[:, t+1]
    enc = (jnp.dot(elo_ref[...], lo.astype(jnp.bfloat16),
                   preferred_element_type=jnp.float32)
           + jnp.dot(ehi_ref[...], hi.astype(jnp.bfloat16),
                     preferred_element_type=jnp.float32))      # (F, Tp) f32
    t_idx = jax.lax.broadcasted_iota(jnp.int32, (1, t_pad), 1)
    mask = (t_idx < t_real).astype(jnp.float32)
    enc = enc * mask                                           # pads exactly 0
    enc_ref[0] = enc
    n_feat = elo_ref.shape[0]
    nrm = _masked_gln(enc, in_g_ref[...], in_b_ref[...], mask,
                      1.0 / (n_feat * t_real), eps)
    feats_ref[0] = (jnp.dot(bw_ref[...], nrm.astype(jnp.bfloat16),
                            preferred_element_type=jnp.float32)
                    + bb_ref[...]) * mask


def frontend(chunk, params, cfg, t_real, t_pad):
    B = chunk.shape[0]
    F, Bn, st = cfg["F"], cfg["Bn"], cfg["enc_ks"] // 2
    kern = functools.partial(_frontend_kernel, t_real=t_real, t_pad=t_pad,
                             eps=_EPS)
    return pl.pallas_call(
        kern,
        out_shape=(jax.ShapeDtypeStruct((B, F, t_pad), jnp.float32),
                   jax.ShapeDtypeStruct((B, Bn, t_pad), jnp.float32)),
        grid=(B,),
        in_specs=[
            pl.BlockSpec((F, 1), lambda i: (0, 0)),            # input gLN gamma
            pl.BlockSpec((F, 1), lambda i: (0, 0)),            # input gLN beta
            pl.BlockSpec((F, st), lambda i: (0, 0)),            # enc W lower half
            pl.BlockSpec((F, st), lambda i: (0, 0)),            # enc W upper half
            pl.BlockSpec((Bn, F), lambda i: (0, 0)),             # bottleneck W
            pl.BlockSpec((Bn, 1), lambda i: (0, 0)),             # bottleneck b
            pl.BlockSpec((1, st, t_pad), lambda i: (i, 0, 0)),   # waveform chunks
        ],
        out_specs=(
            pl.BlockSpec((1, F, t_pad), lambda i: (i, 0, 0)),
            pl.BlockSpec((1, Bn, t_pad), lambda i: (i, 0, 0)),
        ),
        compiler_params=_compiler_params(("parallel",)),
    )(params["in_norm_g"], params["in_norm_b"],
      params["enc_w_lo"], params["enc_w_hi"],
      params["in_conv_w"], params["in_conv_b"],
      chunk)


# ------------------- fully fused TCN stack (all blocks) ----------------------

def _tcn_stack_kernel(alpha_ref, w1_ref, b1_ref, g1_ref, be1_ref,
                      dw_ref, dwb_ref, g2_ref, be2_ref, rsw_ref, rsb_ref,
                      feats_in_ref, skip_ref, feats_scr,
                      *, t_real, t_pad, num_layers, n_bottleneck, eps):
    l = pl.program_id(1)                                       # block index
    t_idx = jax.lax.broadcasted_iota(jnp.int32, (1, t_pad), 1)
    mask = (t_idx < t_real).astype(jnp.float32)

    @pl.when(l == 0)
    def _():
        feats_scr[...] = feats_in_ref[0]                       # load once per sample
        skip_ref[...] = jnp.zeros(skip_ref.shape, skip_ref.dtype)

    x = feats_scr[...]                                         # (Bn, Tp), pads are 0
    a1 = alpha_ref[l, 0]                                       # PReLU alphas (SMEM)
    a2 = alpha_ref[l, 1]
    n_hidden = w1_ref.shape[1]
    inv_n = 1.0 / (n_hidden * t_real)

    # 1x1 conv -> PReLU -> gLN
    h = jnp.dot(w1_ref[0], x.astype(jnp.bfloat16),
                preferred_element_type=jnp.float32) + b1_ref[0]
    h = jnp.where(h >= 0.0, h, a1 * h)
    h = _masked_gln(h, g1_ref[0], be1_ref[0], mask, inv_n, eps)

    # Depthwise dilated conv (3 taps, zero padding == dilation). The dilation
    # depends on the block index, so select among num_layers *static* rolls
    # (XLU slot) instead of a dynamic rotate.
    layer = l % num_layers
    left = jnp.zeros_like(h)
    right = jnp.zeros_like(h)
    for j in range(num_layers):                                # static unroll
        dj = 2 ** j
        sel = (layer == j).astype(jnp.float32)
        lm = (t_idx >= dj).astype(jnp.float32)                 # zero-pad left edge
        rm = (t_idx < (t_real - dj)).astype(jnp.float32)       # zero-pad right edge
        left = left + sel * (pltpu.roll(h, dj % t_pad, axis=1) * lm)
        right = right + sel * (pltpu.roll(h, (-dj) % t_pad, axis=1) * rm)
    w = dw_ref[0]                                              # (H, 3)
    y = w[:, 0:1] * left + w[:, 1:2] * h + w[:, 2:3] * right + dwb_ref[0]

    # PReLU -> gLN
    y = jnp.where(y >= 0.0, y, a2 * y)
    y = _masked_gln(y, g2_ref[0], be2_ref[0], mask, inv_n, eps)

    # Fused residual/skip 1x1 convs: one MXU matmul; mask keeps pads zero.
    # (Last block has zeroed residual rows -> feats passes through unchanged.)
    rs = (jnp.dot(rsw_ref[0], y.astype(jnp.bfloat16),
                  preferred_element_type=jnp.float32) + rsb_ref[0]) * mask
    feats_scr[...] = x + rs[:n_bottleneck]
    skip_ref[0] = skip_ref[0] + rs[n_bottleneck:]


def tcn_stack(feats, params, cfg, t_real, t_pad):
    B, Bn, _ = feats.shape
    H = cfg["H"]
    nb = cfg["num_stacks"] * cfg["num_layers"]
    co = 2 * Bn
    kern = functools.partial(_tcn_stack_kernel, t_real=t_real, t_pad=t_pad,
                             num_layers=cfg["num_layers"], n_bottleneck=Bn,
                             eps=_EPS)
    return pl.pallas_call(
        kern,
        out_shape=jax.ShapeDtypeStruct((B, Bn, t_pad), jnp.float32),
        grid=(B, nb),
        in_specs=[
            pl.BlockSpec(memory_space=pltpu.MemorySpace.SMEM),      # PReLU alphas (nb,2)
            pl.BlockSpec((1, H, Bn), lambda i, l: (l, 0, 0)),       # conv1 W (bf16)
            pl.BlockSpec((1, H, 1), lambda i, l: (l, 0, 0)),        # conv1 b
            pl.BlockSpec((1, H, 1), lambda i, l: (l, 0, 0)),        # gLN1 gamma
            pl.BlockSpec((1, H, 1), lambda i, l: (l, 0, 0)),        # gLN1 beta
            pl.BlockSpec((1, H, 3), lambda i, l: (l, 0, 0)),        # depthwise W
            pl.BlockSpec((1, H, 1), lambda i, l: (l, 0, 0)),        # depthwise b
            pl.BlockSpec((1, H, 1), lambda i, l: (l, 0, 0)),        # gLN2 gamma
            pl.BlockSpec((1, H, 1), lambda i, l: (l, 0, 0)),        # gLN2 beta
            pl.BlockSpec((1, co, H), lambda i, l: (l, 0, 0)),       # res+skip W (bf16)
            pl.BlockSpec((1, co, 1), lambda i, l: (l, 0, 0)),       # res+skip b
            pl.BlockSpec((1, Bn, t_pad), lambda i, l: (i, 0, 0)),   # feats (1 fetch / i)
        ],
        out_specs=pl.BlockSpec((1, Bn, t_pad), lambda i, l: (i, 0, 0)),
        scratch_shapes=[pltpu.VMEM((Bn, t_pad), jnp.float32)],      # resident feats
        compiler_params=_compiler_params(("parallel", "arbitrary")),
    )(params["blk_alphas"],
      params["blk_w1"], params["blk_b1"], params["blk_g1"], params["blk_be1"],
      params["blk_dw_w"], params["blk_dw_b"], params["blk_g2"], params["blk_be2"],
      params["blk_rs_w"], params["blk_rs_b"],
      feats)


# ------ output PReLU + mask conv + activation + mask*enc + decoder -----------

def _mask_decode_kernel(alpha_ref, ow_ref, ob_ref, dwt_ref, sk_ref, enc_ref,
                        out_ref, *, stride, t_real, t_pad, act):
    o = sk_ref[0]                                              # (Bn, Tp)
    a = alpha_ref[0]
    o = jnp.where(o >= 0.0, o, a * o)
    m = jnp.dot(ow_ref[0], o.astype(jnp.bfloat16),
                preferred_element_type=jnp.float32) + ob_ref[0]
    if act == "sigmoid":
        m = jax.nn.sigmoid(m)
    else:
        m = jnp.maximum(m, 0.0)
    e = enc_ref[0]                                             # (F, Tp), pads are 0
    masked = (m * e).astype(jnp.bfloat16)
    proj = jnp.dot(dwt_ref[...], masked,
                   preferred_element_type=jnp.float32)         # (ks, Tp)
    # ConvTranspose1d(stride=ks//2, padding=ks//2, no bias) == overlap-add of
    # frame halves: out[:, q] = proj[stride:, q] + proj[:stride, q+1].
    head = pltpu.roll(proj[:stride, :], t_pad - 1, axis=1)
    t_idx = jax.lax.broadcasted_iota(jnp.int32, (1, t_pad), 1)
    valid = (t_idx < (t_real - 1)).astype(jnp.float32)         # kills pads + wrap col
    out_ref[0, 0] = (proj[stride:, :] + head) * valid


def mask_and_decode(skip, enc, params, cfg, t_real, t_pad):
    B, Bn, _ = skip.shape
    F, S, ks = cfg["F"], cfg["S"], cfg["enc_ks"]
    st = ks // 2
    kern = functools.partial(_mask_decode_kernel, stride=st, t_real=t_real,
                             t_pad=t_pad, act=cfg["activation"])
    return pl.pallas_call(
        kern,
        out_shape=jax.ShapeDtypeStruct((B, S, st, t_pad), jnp.float32),
        grid=(B, S),                                           # 2 parallel axes
        in_specs=[
            pl.BlockSpec(memory_space=pltpu.MemorySpace.SMEM), # output PReLU alpha
            pl.BlockSpec((1, F, Bn), lambda i, s: (s, 0, 0)),  # mask W (per speaker)
            pl.BlockSpec((1, F, 1), lambda i, s: (s, 0, 0)),   # mask b
            pl.BlockSpec((ks, F), lambda i, s: (0, 0)),        # decoder W^T
            pl.BlockSpec((1, Bn, t_pad), lambda i, s: (i, 0, 0)),
            pl.BlockSpec((1, F, t_pad), lambda i, s: (i, 0, 0)),
        ],
        out_specs=pl.BlockSpec((1, 1, st, t_pad), lambda i, s: (i, s, 0, 0)),
        compiler_params=_compiler_params(("parallel", "parallel")),
    )(params["out_prelu"], params["out_conv_w"], params["out_conv_b"],
      params["dec_w_t"], skip, enc)


# ------------------------------ forward pass ---------------------------------

def conv_tasnet_forward(mix_audio, params, cfg):
    """mix_audio: (B, L) float32 -> (B, num_speakers, L)."""
    assert cfg["norm_type"] == "global"  # TODO(synk): 'local' (cLN) not implemented
    assert cfg["sep_ks"] == 3            # depthwise kernel hard-coded to 3 taps
    assert cfg["enc_ks"] % 2 == 0
    B, L = mix_audio.shape
    ks = cfg["enc_ks"]
    st = ks // 2

    # pad_tensor: align length with the encoder stride (torchaudio-style).
    is_odd = ks % 2
    num_strides = (L - is_odd) // st
    rem = L - (is_odd + num_strides * st)
    num_pads = 0 if rem == 0 else st - rem
    Lp = L + num_pads

    # Encoder framing as stride-wide non-overlapping chunks (no ks-times
    # duplicated frame gather in XLA); the time axis is padded to a lane-dense
    # multiple of 128 once, and reused end-to-end by every kernel.
    T = Lp // st + 1                                    # encoder output frames
    Tp = _round_up(T + 1, 128)                          # +1 column for the roll trick
    xp = jnp.pad(mix_audio, ((0, 0), (st, num_pads + st)))      # (B, (T+1)*st)
    chunk = xp.reshape(B, T + 1, st).transpose(0, 2, 1)          # (B, st, T+1)
    chunk = jnp.pad(chunk, ((0, 0), (0, 0), (0, Tp - (T + 1))))  # (B, st, Tp)

    # fused encoder conv + input gLN + bottleneck 1x1
    enc, feats = frontend(chunk, params, cfg, T, Tp)    # (B,F,Tp), (B,Bn,Tp)

    # whole TCN mask network in one pallas_call (feats resident in VMEM,
    # skip accumulated in a revisited output block, weights streamed per block)
    skip = tcn_stack(feats, params, cfg, T, Tp)         # (B, Bn, Tp)

    # fused output PReLU + mask conv + activation + mask*enc + decoder
    wav2d = mask_and_decode(skip, enc, params, cfg, T, Tp)   # (B, S, st, Tp)
    wav = wav2d.transpose(0, 1, 3, 2).reshape(B, cfg["S"], Tp * st)
    return wav[..., :L]


# ------------------------------ parameter init -------------------------------

def init_params(key, cfg):
    F, Bn, H = cfg["F"], cfg["Bn"], cfg["H"]
    S, ks = cfg["S"], cfg["enc_ks"]
    st = ks // 2
    nb = cfg["num_stacks"] * cfg["num_layers"]
    keys = iter(jax.random.split(key, 16))

    def w(shape, scale=0.1):
        return scale * jax.random.normal(next(keys), shape, jnp.float32)

    enc_w = w((F, ks))
    dec_w = w((F, ks))

    # Per-block weights pre-stacked along a leading block axis (streamed over
    # the fused TCN kernel's block grid axis). MXU weights stored in bf16.
    w1 = w((nb, H, Bn))
    rs_w = w((nb, 2 * Bn, H))
    # Last block has no residual branch in the reference module: zero its
    # residual rows so feats passes through unchanged there.
    rs_w = rs_w.at[nb - 1, :Bn, :].set(0.0)

    return {
        "enc_w_lo": enc_w[:, :st].astype(jnp.bfloat16),
        "enc_w_hi": enc_w[:, st:].astype(jnp.bfloat16),
        "dec_w_t": dec_w.T.astype(jnp.bfloat16),                    # (ks, F)
        "in_norm_g": jnp.ones((F, 1), jnp.float32),
        "in_norm_b": jnp.zeros((F, 1), jnp.float32),
        "in_conv_w": w((Bn, F)).astype(jnp.bfloat16),
        "in_conv_b": jnp.zeros((Bn, 1), jnp.float32),
        "out_prelu": jnp.full((1,), 0.25, jnp.float32),
        "out_conv_w": w((S * F, Bn)).reshape(S, F, Bn).astype(jnp.bfloat16),
        "out_conv_b": jnp.zeros((S, F, 1), jnp.float32),
        "blk_alphas": jnp.full((nb, 2), 0.25, jnp.float32),
        "blk_w1": w1.astype(jnp.bfloat16),
        "blk_b1": jnp.zeros((nb, H, 1), jnp.float32),
        "blk_g1": jnp.ones((nb, H, 1), jnp.float32),
        "blk_be1": jnp.zeros((nb, H, 1), jnp.float32),
        "blk_dw_w": w((nb, H, 3)),
        "blk_dw_b": jnp.zeros((nb, H, 1), jnp.float32),
        "blk_g2": jnp.ones((nb, H, 1), jnp.float32),
        "blk_be2": jnp.zeros((nb, H, 1), jnp.float32),
        "blk_rs_w": rs_w.astype(jnp.bfloat16),
        "blk_rs_b": jnp.zeros((nb, 2 * Bn, 1), jnp.float32),
    }


# ----------------------------------- main -------------------------------------

if __name__ == "__main__":
    cfg = dict(
        S=2,            # num_speakers
        enc_ks=16,      # encoder_kernel_size (stride = 8)
        F=64,           # encoder_num_feats (small for the example)
        sep_ks=3,       # separator_kernel_size
        Bn=32,          # separator_num_feats (bottleneck channels)
        H=64,           # separator_num_hidden
        num_layers=3,
        num_stacks=2,
        norm_type="global",
        activation="sigmoid",
    )

    key = jax.random.PRNGKey(0)
    pkey, xkey = jax.random.split(key)
    params = init_params(pkey, cfg)

    B, L = 2, 125                         # L chosen so pad_tensor pads by 3
    mix_audio = jax.random.normal(xkey, (B, L), jnp.float32)

    fwd = jax.jit(functools.partial(conv_tasnet_forward, cfg=cfg))
    out = fwd(mix_audio, params)
    jax.block_until_ready(out)

    assert out.shape == (B, cfg["S"], L), out.shape
    assert out.dtype == jnp.float32
    print("KERNEL_OK")
</pallas_src>

<mosaic_0001>
module attributes {stable_mosaic.version = 11 : i64} {
  func.func @_frontend_kernel(%arg0: i32, %arg1: memref<64x1xf32, #tpu.memory_space<vmem>>, %arg2: memref<64x1xf32, #tpu.memory_space<vmem>>, %arg3: memref<64x8xbf16, #tpu.memory_space<vmem>>, %arg4: memref<64x8xbf16, #tpu.memory_space<vmem>>, %arg5: memref<32x64xbf16, #tpu.memory_space<vmem>>, %arg6: memref<32x1xf32, #tpu.memory_space<vmem>>, %arg7: memref<1x8x128xf32, #tpu.memory_space<vmem>>, %arg8: memref<1x64x128xf32, #tpu.memory_space<vmem>>, %arg9: memref<1x32x128xf32, #tpu.memory_space<vmem>>) attributes {dimension_semantics = [#tpu.dimension_semantics<parallel>], iteration_bounds = array<i64: 2>, scalar_prefetch = 0 : i64, scratch_operands = 0 : i64, tpu.core_type = #tpu.core_type<tc>, window_params = [{pipeline_mode = #tpu.pipeline_mode<synchronous>, transform_indices = @transform_0, window_bounds = array<i64: 64, 1>}, {pipeline_mode = #tpu.pipeline_mode<synchronous>, transform_indices = @transform_1, window_bounds = array<i64: 64, 1>}, {pipeline_mode = #tpu.pipeline_mode<synchronous>, transform_indices = @transform_2, window_bounds = array<i64: 64, 8>}, {pipeline_mode = #tpu.pipeline_mode<synchronous>, transform_indices = @transform_3, window_bounds = array<i64: 64, 8>}, {pipeline_mode = #tpu.pipeline_mode<synchronous>, transform_indices = @transform_4, window_bounds = array<i64: 32, 64>}, {pipeline_mode = #tpu.pipeline_mode<synchronous>, transform_indices = @transform_5, window_bounds = array<i64: 32, 1>}, {transform_indices = @transform_6, window_bounds = array<i64: 1, 8, 128>}, {transform_indices = @transform_7, window_bounds = array<i64: 1, 64, 128>}, {transform_indices = @transform_8, window_bounds = array<i64: 1, 32, 128>}]} {
    %c0 = arith.constant 0 : index
    %c0_0 = arith.constant 0 : index
    %c0_1 = arith.constant 0 : index
    %0 = vector.load %arg7[%c0, %c0_0, %c0_1] : memref<1x8x128xf32, #tpu.memory_space<vmem>>, vector<1x8x128xf32>
    %1 = vector.shape_cast %0 : vector<1x8x128xf32> to vector<8x128xf32>
    %c127_i32 = arith.constant 127 : i32
    %2 = tpu.dynamic_rotate %1 by %c127_i32 dim 1 : vector<8x128xf32>, i32 -> vector<8x128xf32>
    %c0_2 = arith.constant 0 : index
    %c0_3 = arith.constant 0 : index
    %3 = vector.load %arg3[%c0_2, %c0_3] : memref<64x8xbf16, #tpu.memory_space<vmem>>, vector<64x8xbf16>
    %4 = arith.truncf %1 : vector<8x128xf32> to vector<8x128xbf16>
    %cst = arith.constant dense<0.000000e+00> : vector<64x128xf32>
    %5 = tpu.matmul %3, %4, %cst {dimension_numbers = #tpu.dot_dimension_numbers<[1], [0], [0], [1], [0, 0, 1, 1], [], []>} : vector<64x8xbf16>, vector<8x128xbf16>, vector<64x128xf32> -> vector<64x128xf32>
    %c0_4 = arith.constant 0 : index
    %c0_5 = arith.constant 0 : index
    %6 = vector.load %arg4[%c0_4, %c0_5] : memref<64x8xbf16, #tpu.memory_space<vmem>>, vector<64x8xbf16>
    %7 = arith.truncf %2 : vector<8x128xf32> to vector<8x128xbf16>
    %cst_6 = arith.constant dense<0.000000e+00> : vector<64x128xf32>
    %8 = tpu.matmul %6, %7, %cst_6 {dimension_numbers = #tpu.dot_dimension_numbers<[1], [0], [0], [1], [0, 0, 1, 1], [], []>} : vector<64x8xbf16>, vector<8x128xbf16>, vector<64x128xf32> -> vector<64x128xf32>
    %9 = arith.addf %5, %8 : vector<64x128xf32>
    %10 = tpu.iota {dimensions = array<i32: 1>} : vector<1x128xi32>
    %c17_i32 = arith.constant 17 : i32
    %11 = vector.broadcast %c17_i32 : i32 to vector<1x128xi32>
    %12 = arith.cmpi slt, %10, %11 : vector<1x128xi32>
    %13 = arith.extui %12 : vector<1x128xi1> to vector<1x128xi32>
    %14 = arith.sitofp %13 : vector<1x128xi32> to vector<1x128xf32>
    %15 = vector.broadcast %14 : vector<1x128xf32> to vector<64x128xf32>
    %16 = arith.mulf %9, %15 : vector<64x128xf32>
    %c0_7 = arith.constant 0 : index
    %c0_8 = arith.constant 0 : index
    %c0_9 = arith.constant 0 : index
    %17 = vector.load %arg8[%c0_7, %c0_8, %c0_9] : memref<1x64x128xf32, #tpu.memory_space<vmem>>, vector<1x64x128xf32>
    %18 = vector.shape_cast %17 : vector<1x64x128xf32> to vector<64x128xf32>
    %19 = vector.shape_cast %16 : vector<64x128xf32> to vector<1x64x128xf32>
    tpu.vector_store %arg8[%c0_7, %c0_8, %c0_9], %19 {strides = array<i32>} : memref<1x64x128xf32, #tpu.memory_space<vmem>>, vector<1x64x128xf32>,
    %c0_10 = arith.constant 0 : index
    %c0_11 = arith.constant 0 : index
    %20 = vector.load %arg1[%c0_10, %c0_11] : memref<64x1xf32, #tpu.memory_space<vmem>>, vector<64x1xf32>
    %c0_12 = arith.constant 0 : index
    %c0_13 = arith.constant 0 : index
    %21 = vector.load %arg2[%c0_12, %c0_13] : memref<64x1xf32, #tpu.memory_space<vmem>>, vector<64x1xf32>
    %22 = vector.broadcast %14 : vector<1x128xf32> to vector<64x128xf32>
    %23 = arith.mulf %16, %22 : vector<64x128xf32>
    %24 = vector.shape_cast %23 : vector<64x128xf32> to vector<1x64x128xf32>
    %cst_14 = arith.constant dense<0.000000e+00> : vector<1xf32>
    %25 = vector.multi_reduction <add>, %24, %cst_14 [1, 2] : vector<1x64x128xf32> to vector<1xf32>
    %26 = vector.shape_cast %25 : vector<1xf32> to vector<1x1x1xf32>
    %27 = vector.extract %26[0, 0, 0] : f32 from vector<1x1x1xf32>
    %28 = vector.broadcast %27 : f32 to vector<1x1xf32>
    %cst_15 = arith.constant 9.1911765E-4 : f32
    %29 = vector.broadcast %cst_15 : f32 to vector<1x1xf32>
    %30 = arith.mulf %28, %29 : vector<1x1xf32>
    %31 = arith.mulf %23, %23 : vector<64x128xf32>
    %32 = vector.shape_cast %31 : vector<64x128xf32> to vector<1x64x128xf32>
    %cst_16 = arith.constant dense<0.000000e+00> : vector<1xf32>
    %33 = vector.multi_reduction <add>, %32, %cst_16 [1, 2] : vector<1x64x128xf32> to vector<1xf32>
    %34 = vector.shape_cast %33 : vector<1xf32> to vector<1x1x1xf32>
    %35 = vector.extract %34[0, 0, 0] : f32 from vector<1x1x1xf32>
    %36 = vector.broadcast %35 : f32 to vector<1x1xf32>
    %cst_17 = arith.constant 9.1911765E-4 : f32
    %37 = vector.broadcast %cst_17 : f32 to vector<1x1xf32>
    %38 = arith.mulf %36, %37 : vector<1x1xf32>
    %39 = arith.mulf %30, %30 : vector<1x1xf32>
    %40 = arith.subf %38, %39 : vector<1x1xf32>
    %cst_18 = arith.constant 0.000000e+00 : f32
    %41 = vector.broadcast %cst_18 : f32 to vector<1x1xf32>
    %42 = arith.maximumf %40, %41 : vector<1x1xf32>
    %43 = vector.broadcast %30 : vector<1x1xf32> to vector<64x128xf32>
    %44 = arith.subf %16, %43 : vector<64x128xf32>
    %cst_19 = arith.constant 9.99999993E-9 : f32
    %45 = vector.broadcast %cst_19 : f32 to vector<1x1xf32>
    %46 = arith.addf %42, %45 : vector<1x1xf32>
    %47 = math.rsqrt %46 : vector<1x1xf32>
    %48 = vector.broadcast %47 : vector<1x1xf32> to vector<64x128xf32>
    %49 = arith.mulf %44, %48 : vector<64x128xf32>
    %50 = vector.broadcast %20 : vector<64x1xf32> to vector<64x128xf32>
    %51 = arith.mulf %49, %50 : vector<64x128xf32>
    %52 = vector.broadcast %21 : vector<64x1xf32> to vector<64x128xf32>
    %53 = arith.addf %51, %52 : vector<64x128xf32>
    %c0_20 = arith.constant 0 : index
    %c0_21 = arith.constant 0 : index
    %54 = vector.load %arg5[%c0_20, %c0_21] : memref<32x64xbf16, #tpu.memory_space<vmem>>, vector<32x64xbf16>
    %55 = arith.truncf %53 : vector<64x128xf32> to vector<64x128xbf16>
    %cst_22 = arith.constant dense<0.000000e+00> : vector<32x128xf32>
    %56 = tpu.matmul %54, %55, %cst_22 {dimension_numbers = #tpu.dot_dimension_numbers<[1], [0], [0], [1], [0, 0, 1, 1], [], []>} : vector<32x64xbf16>, vector<64x128xbf16>, vector<32x128xf32> -> vector<32x128xf32>
    %c0_23 = arith.constant 0 : index
    %c0_24 = arith.constant 0 : index
    %57 = vector.load %arg6[%c0_23, %c0_24] : memref<32x1xf32, #tpu.memory_space<vmem>>, vector<32x1xf32>
    %58 = vector.broadcast %57 : vector<32x1xf32> to vector<32x128xf32>
    %59 = arith.addf %56, %58 : vector<32x128xf32>
    %60 = vector.broadcast %14 : vector<1x128xf32> to vector<32x128xf32>
    %61 = arith.mulf %59, %60 : vector<32x128xf32>
    %c0_25 = arith.constant 0 : index
    %c0_26 = arith.constant 0 : index
    %c0_27 = arith.constant 0 : index
    %62 = vector.load %arg9[%c0_25, %c0_26, %c0_27] : memref<1x32x128xf32, #tpu.memory_space<vmem>>, vector<1x32x128xf32>
    %63 = vector.shape_cast %62 : vector<1x32x128xf32> to vector<32x128xf32>
    %64 = vector.shape_cast %61 : vector<32x128xf32> to vector<1x32x128xf32>
    tpu.vector_store %arg9[%c0_25, %c0_26, %c0_27], %64 {strides = array<i32>} : memref<1x32x128xf32, #tpu.memory_space<vmem>>, vector<1x32x128xf32>,
    return
  }
  func.func @transform_0(%arg0: i32) -> (i32, i32) {
    %c0_i32 = arith.constant 0 : i32
    %c0_i32_0 = arith.constant 0 : i32
    %c0_i32_1 = arith.constant 0 : i32
    return %c0_i32, %c0_i32_0 : i32, i32
  }
  func.func @transform_1(%arg0: i32) -> (i32, i32) {
    %c0_i32 = arith.constant 0 : i32
    %c0_i32_0 = arith.constant 0 : i32
    %c0_i32_1 = arith.constant 0 : i32
    return %c0_i32, %c0_i32_0 : i32, i32
  }
  func.func @transform_2(%arg0: i32) -> (i32, i32) {
    %c0_i32 = arith.constant 0 : i32
    %c0_i32_0 = arith.constant 0 : i32
    %c0_i32_1 = arith.constant 0 : i32
    return %c0_i32, %c0_i32_0 : i32, i32
  }
  func.func @transform_3(%arg0: i32) -> (i32, i32) {
    %c0_i32 = arith.constant 0 : i32
    %c0_i32_0 = arith.constant 0 : i32
    %c0_i32_1 = arith.constant 0 : i32
    return %c0_i32, %c0_i32_0 : i32, i32
  }
  func.func @transform_4(%arg0: i32) -> (i32, i32) {
    %c0_i32 = arith.constant 0 : i32
    %c0_i32_0 = arith.constant 0 : i32
    %c0_i32_1 = arith.constant 0 : i32
    return %c0_i32, %c0_i32_0 : i32, i32
  }
  func.func @transform_5(%arg0: i32) -> (i32, i32) {
    %c0_i32 = arith.constant 0 : i32
    %c0_i32_0 = arith.constant 0 : i32
    %c0_i32_1 = arith.constant 0 : i32
    return %c0_i32, %c0_i32_0 : i32, i32
  }
  func.func @transform_6(%arg0: i32) -> (i32, i32, i32) {
    %c0_i32 = arith.constant 0 : i32
    %c0_i32_0 = arith.constant 0 : i32
    %c0_i32_1 = arith.constant 0 : i32
    return %arg0, %c0_i32, %c0_i32_0 : i32, i32, i32
  }
  func.func @transform_7(%arg0: i32) -> (i32, i32, i32) {
    %c0_i32 = arith.constant 0 : i32
    %c0_i32_0 = arith.constant 0 : i32
    %c0_i32_1 = arith.constant 0 : i32
    return %arg0, %c0_i32, %c0_i32_0 : i32, i32, i32
  }
  func.func @transform_8(%arg0: i32) -> (i32, i32, i32) {
    %c0_i32 = arith.constant 0 : i32
    %c0_i32_0 = arith.constant 0 : i32
    %c0_i32_1 = arith.constant 0 : i32
    return %arg0, %c0_i32, %c0_i32_0 : i32, i32, i32
  }
}

module attributes {stable_mosaic.version = 11 : i64} {
  func.func @_mask_decode_kernel(%arg0: i32, %arg1: i32, %arg2: memref<1xf32, #tpu.memory_space<smem>>, %arg3: memref<1x64x32xbf16, #tpu.memory_space<vmem>>, %arg4: memref<1x64x1xf32, #tpu.memory_space<vmem>>, %arg5: memref<16x64xbf16, #tpu.memory_space<vmem>>, %arg6: memref<1x32x128xf32, #tpu.memory_space<vmem>>, %arg7: memref<1x64x128xf32, #tpu.memory_space<vmem>>, %arg8: memref<1x1x8x128xf32, #tpu.memory_space<vmem>>) attributes {dimension_semantics = [#tpu.dimension_semantics<parallel>, #tpu.dimension_semantics<parallel>], iteration_bounds = array<i64: 2, 2>, scalar_prefetch = 0 : i64, scratch_operands = 0 : i64, tpu.core_type = #tpu.core_type<tc>, window_params = [{transform_indices = @transform_0, window_bounds = array<i64: 1>}, {transform_indices = @transform_1, window_bounds = array<i64: 1, 64, 32>}, {transform_indices = @transform_2, window_bounds = array<i64: 1, 64, 1>}, {pipeline_mode = #tpu.pipeline_mode<synchronous>, transform_indices = @transform_3, window_bounds = array<i64: 16, 64>}, {transform_indices = @transform_4, window_bounds = array<i64: 1, 32, 128>}, {transform_indices = @transform_5, window_bounds = array<i64: 1, 64, 128>}, {transform_indices = @transform_6, window_bounds = array<i64: 1, 1, 8, 128>}]} {
    %c0 = arith.constant 0 : index
    %c0_0 = arith.constant 0 : index
    %c0_1 = arith.constant 0 : index
    %0 = vector.load %arg6[%c0, %c0_0, %c0_1] : memref<1x32x128xf32, #tpu.memory_space<vmem>>, vector<1x32x128xf32>
    %1 = vector.shape_cast %0 : vector<1x32x128xf32> to vector<32x128xf32>
    %c0_2 = arith.constant 0 : index
    %2 = memref.load %arg2[%c0_2] : memref<1xf32, #tpu.memory_space<smem>>
    %cst = arith.constant 0.000000e+00 : f32
    %3 = vector.broadcast %cst : f32 to vector<32x128xf32>
    %4 = arith.cmpf oge, %1, %3 : vector<32x128xf32>
    %5 = vector.broadcast %2 : f32 to vector<32x128xf32>
    %6 = arith.mulf %5, %1 : vector<32x128xf32>
    %7 = arith.select %4, %1, %6 : vector<32x128xi1>, vector<32x128xf32>
    %c0_3 = arith.constant 0 : index
    %c0_4 = arith.constant 0 : index
    %c0_5 = arith.constant 0 : index
    %8 = vector.load %arg3[%c0_3, %c0_4, %c0_5] : memref<1x64x32xbf16, #tpu.memory_space<vmem>>, vector<1x64x32xbf16>
    %9 = vector.shape_cast %8 : vector<1x64x32xbf16> to vector<64x32xbf16>
    %10 = arith.truncf %7 : vector<32x128xf32> to vector<32x128xbf16>
    %cst_6 = arith.constant dense<0.000000e+00> : vector<64x128xf32>
    %11 = tpu.matmul %9, %10, %cst_6 {dimension_numbers = #tpu.dot_dimension_numbers<[1], [0], [0], [1], [0, 0, 1, 1], [], []>} : vector<64x32xbf16>, vector<32x128xbf16>, vector<64x128xf32> -> vector<64x128xf32>
    %c0_7 = arith.constant 0 : index
    %c0_8 = arith.constant 0 : index
    %c0_9 = arith.constant 0 : index
    %12 = vector.load %arg4[%c0_7, %c0_8, %c0_9] : memref<1x64x1xf32, #tpu.memory_space<vmem>>, vector<1x64x1xf32>
    %13 = vector.shape_cast %12 : vector<1x64x1xf32> to vector<64x1xf32>
    %14 = vector.broadcast %13 : vector<64x1xf32> to vector<64x128xf32>
    %15 = arith.addf %11, %14 : vector<64x128xf32>
    %16 = arith.negf %15 : vector<64x128xf32>
    %17 = math.exp %16 : vector<64x128xf32>
    %cst_10 = arith.constant 1.000000e+00 : f32
    %18 = vector.broadcast %cst_10 : f32 to vector<64x128xf32>
    %19 = arith.addf %18, %17 : vector<64x128xf32>
    %20 = arith.divf %18, %19 : vector<64x128xf32>
    %c0_11 = arith.constant 0 : index
    %c0_12 = arith.constant 0 : index
    %c0_13 = arith.constant 0 : index
    %21 = vector.load %arg7[%c0_11, %c0_12, %c0_13] : memref<1x64x128xf32, #tpu.memory_space<vmem>>, vector<1x64x128xf32>
    %22 = vector.shape_cast %21 : vector<1x64x128xf32> to vector<64x128xf32>
    %23 = arith.mulf %20, %22 : vector<64x128xf32>
    %24 = arith.truncf %23 : vector<64x128xf32> to vector<64x128xbf16>
    %c0_14 = arith.constant 0 : index
    %c0_15 = arith.constant 0 : index
    %25 = vector.load %arg5[%c0_14, %c0_15] : memref<16x64xbf16, #tpu.memory_space<vmem>>, vector<16x64xbf16>
    %cst_16 = arith.constant dense<0.000000e+00> : vector<16x128xf32>
    %26 = tpu.matmul %25, %24, %cst_16 {dimension_numbers = #tpu.dot_dimension_numbers<[1], [0], [0], [1], [0, 0, 1, 1], [], []>} : vector<16x64xbf16>, vector<64x128xbf16>, vector<16x128xf32> -> vector<16x128xf32>
    %27 = vector.extract_strided_slice %26 {offsets = [0, 0], sizes = [8, 128], strides = [1, 1]} : vector<16x128xf32> to vector<8x128xf32>
    %c127_i32 = arith.constant 127 : i32
    %28 = tpu.dynamic_rotate %27 by %c127_i32 dim 1 : vector<8x128xf32>, i32 -> vector<8x128xf32>
    %29 = tpu.iota {dimensions = array<i32: 1>} : vector<1x128xi32>
    %c16_i32 = arith.constant 16 : i32
    %30 = vector.broadcast %c16_i32 : i32 to vector<1x128xi32>
    %31 = arith.cmpi slt, %29, %30 : vector<1x128xi32>
    %32 = arith.extui %31 : vector<1x128xi1> to vector<1x128xi32>
    %33 = arith.sitofp %32 : vector<1x128xi32> to vector<1x128xf32>
    %34 = vector.extract_strided_slice %26 {offsets = [8, 0], sizes = [8, 128], strides = [1, 1]} : vector<16x128xf32> to vector<8x128xf32>
    %35 = arith.addf %34, %28 : vector<8x128xf32>
    %36 = vector.broadcast %33 : vector<1x128xf32> to vector<8x128xf32>
    %37 = arith.mulf %35, %36 : vector<8x128xf32>
    %c0_17 = arith.constant 0 : index
    %c0_18 = arith.constant 0 : index
    %c0_19 = arith.constant 0 : index
    %c0_20 = arith.constant 0 : index
    %38 = vector.load %arg8[%c0_17, %c0_18, %c0_19, %c0_20] : memref<1x1x8x128xf32, #tpu.memory_space<vmem>>, vector<1x1x8x128xf32>
    %39 = vector.shape_cast %38 : vector<1x1x8x128xf32> to vector<8x128xf32>
    %40 = vector.shape_cast %37 : vector<8x128xf32> to vector<1x1x8x128xf32>
    tpu.vector_store %arg8[%c0_17, %c0_18, %c0_19, %c0_20], %40 {strides = array<i32>} : memref<1x1x8x128xf32, #tpu.memory_space<vmem>>, vector<1x1x8x128xf32>,
    return
  }
  func.func @transform_0(%arg0: i32, %arg1: i32) -> i32 {
    %c0_i32 = arith.constant 0 : i32
    %c0_i32_0 = arith.constant 0 : i32
    return %c0_i32 : i32
  }
  func.func @transform_1(%arg0: i32, %arg1: i32) -> (i32, i32, i32) {
    %c0_i32 = arith.constant 0 : i32
    %c0_i32_0 = arith.constant 0 : i32
    %c0_i32_1 = arith.constant 0 : i32
    return %arg1, %c0_i32, %c0_i32_0 : i32, i32, i32
  }
  func.func @transform_2(%arg0: i32, %arg1: i32) -> (i32, i32, i32) {
    %c0_i32 = arith.constant 0 : i32
    %c0_i32_0 = arith.constant 0 : i32
    %c0_i32_1 = arith.constant 0 : i32
    return %arg1, %c0_i32, %c0_i32_0 : i32, i32, i32
  }
  func.func @transform_3(%arg0: i32, %arg1: i32) -> (i32, i32) {
    %c0_i32 = arith.constant 0 : i32
    %c0_i32_0 = arith.constant 0 : i32
    %c0_i32_1 = arith.constant 0 : i32
    return %c0_i32, %c0_i32_0 : i32, i32
  }
  func.func @transform_4(%arg0: i32, %arg1: i32) -> (i32, i32, i32) {
    %c0_i32 = arith.constant 0 : i32
    %c0_i32_0 = arith.constant 0 : i32
    %c0_i32_1 = arith.constant 0 : i32
    return %arg0, %c0_i32, %c0_i32_0 : i32, i32, i32
  }
  func.func @transform_5(%arg0: i32, %arg1: i32) -> (i32, i32, i32) {
    %c0_i32 = arith.constant 0 : i32
    %c0_i32_0 = arith.constant 0 : i32
    %c0_i32_1 = arith.constant 0 : i32
    return %arg0, %c0_i32, %c0_i32_0 : i32, i32, i32
  }
  func.func @transform_6(%arg0: i32, %arg1: i32) -> (i32, i32, i32, i32) {
    %c0_i32 = arith.constant 0 : i32
    %c0_i32_0 = arith.constant 0 : i32
    %c0_i32_1 = arith.constant 0 : i32
    return %arg0, %arg1, %c0_i32, %c0_i32_0 : i32, i32, i32, i32
  }
}

module attributes {stable_mosaic.version = 11 : i64} {
  func.func @_tcn_stack_kernel(%arg0: i32, %arg1: i32, %arg2: memref<6x2xf32, #tpu.memory_space<smem>>, %arg3: memref<1x64x32xbf16, #tpu.memory_space<vmem>>, %arg4: memref<1x64x1xf32, #tpu.memory_space<vmem>>, %arg5: memref<1x64x1xf32, #tpu.memory_space<vmem>>, %arg6: memref<1x64x1xf32, #tpu.memory_space<vmem>>, %arg7: memref<1x64x3xf32, #tpu.memory_space<vmem>>, %arg8: memref<1x64x1xf32, #tpu.memory_space<vmem>>, %arg9: memref<1x64x1xf32, #tpu.memory_space<vmem>>, %arg10: memref<1x64x1xf32, #tpu.memory_space<vmem>>, %arg11: memref<1x64x64xbf16, #tpu.memory_space<vmem>>, %arg12: memref<1x64x1xf32, #tpu.memory_space<vmem>>, %arg13: memref<1x32x128xf32, #tpu.memory_space<vmem>>, %arg14: memref<1x32x128xf32, #tpu.memory_space<vmem>>, %arg15: memref<32x128xf32, #tpu.memory_space<vmem>>) attributes {dimension_semantics = [#tpu.dimension_semantics<parallel>, #tpu.dimension_semantics<arbitrary>], iteration_bounds = array<i64: 2, 6>, scalar_prefetch = 0 : i64, scratch_operands = 1 : i64, tpu.core_type = #tpu.core_type<tc>, window_params = [{transform_indices = @transform_0, window_bounds = array<i64: 6, 2>}, {transform_indices = @transform_1, window_bounds = array<i64: 1, 64, 32>}, {transform_indices = @transform_2, window_bounds = array<i64: 1, 64, 1>}, {transform_indices = @transform_3, window_bounds = array<i64: 1, 64, 1>}, {transform_indices = @transform_4, window_bounds = array<i64: 1, 64, 1>}, {transform_indices = @transform_5, window_bounds = array<i64: 1, 64, 3>}, {transform_indices = @transform_6, window_bounds = array<i64: 1, 64, 1>}, {transform_indices = @transform_7, window_bounds = array<i64: 1, 64, 1>}, {transform_indices = @transform_8, window_bounds = array<i64: 1, 64, 1>}, {transform_indices = @transform_9, window_bounds = array<i64: 1, 64, 64>}, {transform_indices = @transform_10, window_bounds = array<i64: 1, 64, 1>}, {transform_indices = @transform_11, window_bounds = array<i64: 1, 32, 128>}, {transform_indices = @transform_12, window_bounds = array<i64: 1, 32, 128>}]} {
    %0 = tpu.iota {dimensions = array<i32: 1>} : vector<1x128xi32>
    %c17_i32 = arith.constant 17 : i32
    %1 = vector.broadcast %c17_i32 : i32 to vector<1x128xi32>
    %2 = arith.cmpi slt, %0, %1 : vector<1x128xi32>
    %3 = arith.extui %2 : vector<1x128xi1> to vector<1x128xi32>
    %4 = arith.sitofp %3 : vector<1x128xi32> to vector<1x128xf32>
    %c0_i32 = arith.constant 0 : i32
    %5 = arith.cmpi eq, %arg1, %c0_i32 : i32
    %6 = arith.extui %5 : i1 to i32
    %c0_i32_0 = arith.constant 0 : i32
    %7 = arith.cmpi ne, %6, %c0_i32_0 : i32
    scf.if %7 {
      %c0_69 = arith.constant 0 : index
      %c0_70 = arith.constant 0 : index
      %c0_71 = arith.constant 0 : index
      %221 = vector.load %arg13[%c0_69, %c0_70, %c0_71] : memref<1x32x128xf32, #tpu.memory_space<vmem>>, vector<1x32x128xf32>
      %222 = vector.shape_cast %221 : vector<1x32x128xf32> to vector<32x128xf32>
      %c0_72 = arith.constant 0 : index
      %c0_73 = arith.constant 0 : index
      %223 = vector.load %arg15[%c0_72, %c0_73] : memref<32x128xf32, #tpu.memory_space<vmem>>, vector<32x128xf32>
      tpu.vector_store %arg15[%c0_72, %c0_73], %222 {strides = array<i32>} : memref<32x128xf32, #tpu.memory_space<vmem>>, vector<32x128xf32>,
      %cst_74 = arith.constant 0.000000e+00 : f32
      %224 = vector.broadcast %cst_74 : f32 to vector<1x32x128xf32>
      %c0_75 = arith.constant 0 : index
      %c0_76 = arith.constant 0 : index
      %c0_77 = arith.constant 0 : index
      %225 = vector.load %arg14[%c0_75, %c0_76, %c0_77] : memref<1x32x128xf32, #tpu.memory_space<vmem>>, vector<1x32x128xf32>
      tpu.vector_store %arg14[%c0_75, %c0_76, %c0_77], %224 {strides = array<i32>} : memref<1x32x128xf32, #tpu.memory_space<vmem>>, vector<1x32x128xf32>,
    } else {
    }
    %c0 = arith.constant 0 : index
    %c0_1 = arith.constant 0 : index
    %8 = vector.load %arg15[%c0, %c0_1] : memref<32x128xf32, #tpu.memory_space<vmem>>, vector<32x128xf32>
    %9 = arith.index_cast %arg1 : i32 to index
    %c0_2 = arith.constant 0 : index
    %10 = memref.load %arg2[%9, %c0_2] : memref<6x2xf32, #tpu.memory_space<smem>>
    %11 = arith.index_cast %arg1 : i32 to index
    %c1 = arith.constant 1 : index
    %12 = memref.load %arg2[%11, %c1] : memref<6x2xf32, #tpu.memory_space<smem>>
    %c0_3 = arith.constant 0 : index
    %c0_4 = arith.constant 0 : index
    %c0_5 = arith.constant 0 : index
    %13 = vector.load %arg3[%c0_3, %c0_4, %c0_5] : memref<1x64x32xbf16, #tpu.memory_space<vmem>>, vector<1x64x32xbf16>
    %14 = vector.shape_cast %13 : vector<1x64x32xbf16> to vector<64x32xbf16>
    %15 = arith.truncf %8 : vector<32x128xf32> to vector<32x128xbf16>
    %cst = arith.constant dense<0.000000e+00> : vector<64x128xf32>
    %16 = tpu.matmul %14, %15, %cst {dimension_numbers = #tpu.dot_dimension_numbers<[1], [0], [0], [1], [0, 0, 1, 1], [], []>} : vector<64x32xbf16>, vector<32x128xbf16>, vector<64x128xf32> -> vector<64x128xf32>
    %c0_6 = arith.constant 0 : index
    %c0_7 = arith.constant 0 : index
    %c0_8 = arith.constant 0 : index
    %17 = vector.load %arg4[%c0_6, %c0_7, %c0_8] : memref<1x64x1xf32, #tpu.memory_space<vmem>>, vector<1x64x1xf32>
    %18 = vector.shape_cast %17 : vector<1x64x1xf32> to vector<64x1xf32>
    %19 = vector.broadcast %18 : vector<64x1xf32> to vector<64x128xf32>
    %20 = arith.addf %16, %19 : vector<64x128xf32>
    %cst_9 = arith.constant 0.000000e+00 : f32
    %21 = vector.broadcast %cst_9 : f32 to vector<64x128xf32>
    %22 = arith.cmpf oge, %20, %21 : vector<64x128xf32>
    %23 = vector.broadcast %10 : f32 to vector<64x128xf32>
    %24 = arith.mulf %23, %20 : vector<64x128xf32>
    %25 = arith.select %22, %20, %24 : vector<64x128xi1>, vector<64x128xf32>
    %c0_10 = arith.constant 0 : index
    %c0_11 = arith.constant 0 : index
    %c0_12 = arith.constant 0 : index
    %26 = vector.load %arg5[%c0_10, %c0_11, %c0_12] : memref<1x64x1xf32, #tpu.memory_space<vmem>>, vector<1x64x1xf32>
    %27 = vector.shape_cast %26 : vector<1x64x1xf32> to vector<64x1xf32>
    %c0_13 = arith.constant 0 : index
    %c0_14 = arith.constant 0 : index
    %c0_15 = arith.constant 0 : index
    %28 = vector.load %arg6[%c0_13, %c0_14, %c0_15] : memref<1x64x1xf32, #tpu.memory_space<vmem>>, vector<1x64x1xf32>
    %29 = vector.shape_cast %28 : vector<1x64x1xf32> to vector<64x1xf32>
    %30 = vector.broadcast %4 : vector<1x128xf32> to vector<64x128xf32>
    %31 = arith.mulf %25, %30 : vector<64x128xf32>
    %32 = vector.shape_cast %31 : vector<64x128xf32> to vector<1x64x128xf32>
    %cst_16 = arith.constant dense<0.000000e+00> : vector<1xf32>
    %33 = vector.multi_reduction <add>, %32, %cst_16 [1, 2] : vector<1x64x128xf32> to vector<1xf32>
    %34 = vector.shape_cast %33 : vector<1xf32> to vector<1x1x1xf32>
    %35 = vector.extract %34[0, 0, 0] : f32 from vector<1x1x1xf32>
    %36 = vector.broadcast %35 : f32 to vector<1x1xf32>
    %cst_17 = arith.constant 9.1911765E-4 : f32
    %37 = vector.broadcast %cst_17 : f32 to vector<1x1xf32>
    %38 = arith.mulf %36, %37 : vector<1x1xf32>
    %39 = arith.mulf %31, %31 : vector<64x128xf32>
    %40 = vector.shape_cast %39 : vector<64x128xf32> to vector<1x64x128xf32>
    %cst_18 = arith.constant dense<0.000000e+00> : vector<1xf32>
    %41 = vector.multi_reduction <add>, %40, %cst_18 [1, 2] : vector<1x64x128xf32> to vector<1xf32>
    %42 = vector.shape_cast %41 : vector<1xf32> to vector<1x1x1xf32>
    %43 = vector.extract %42[0, 0, 0] : f32 from vector<1x1x1xf32>
    %44 = vector.broadcast %43 : f32 to vector<1x1xf32>
    %cst_19 = arith.constant 9.1911765E-4 : f32
    %45 = vector.broadcast %cst_19 : f32 to vector<1x1xf32>
    %46 = arith.mulf %44, %45 : vector<1x1xf32>
    %47 = arith.mulf %38, %38 : vector<1x1xf32>
    %48 = arith.subf %46, %47 : vector<1x1xf32>
    %cst_20 = arith.constant 0.000000e+00 : f32
    %49 = vector.broadcast %cst_20 : f32 to vector<1x1xf32>
    %50 = arith.maximumf %48, %49 : vector<1x1xf32>
    %51 = vector.broadcast %38 : vector<1x1xf32> to vector<64x128xf32>
    %52 = arith.subf %25, %51 : vector<64x128xf32>
    %cst_21 = arith.constant 9.99999993E-9 : f32
    %53 = vector.broadcast %cst_21 : f32 to vector<1x1xf32>
    %54 = arith.addf %50, %53 : vector<1x1xf32>
    %55 = math.rsqrt %54 : vector<1x1xf32>
    %56 = vector.broadcast %55 : vector<1x1xf32> to vector<64x128xf32>
    %57 = arith.mulf %52, %56 : vector<64x128xf32>
    %58 = vector.broadcast %27 : vector<64x1xf32> to vector<64x128xf32>
    %59 = arith.mulf %57, %58 : vector<64x128xf32>
    %60 = vector.broadcast %29 : vector<64x1xf32> to vector<64x128xf32>
    %61 = arith.addf %59, %60 : vector<64x128xf32>
    %c3_i32 = arith.constant 3 : i32
    %c0_i32_22 = arith.constant 0 : i32
    %62 = arith.cmpi eq, %c3_i32, %c0_i32_22 : i32
    %c1_i32 = arith.constant 1 : i32
    %63 = arith.select %62, %c1_i32, %c3_i32 : i32
    %64 = arith.remsi %arg1, %63 : i32
    %c0_i32_23 = arith.constant 0 : i32
    %65 = arith.cmpi ne, %64, %c0_i32_23 : i32
    %c0_i32_24 = arith.constant 0 : i32
    %66 = arith.cmpi slt, %64, %c0_i32_24 : i32
    %c0_i32_25 = arith.constant 0 : i32
    %67 = arith.cmpi slt, %63, %c0_i32_25 : i32
    %68 = arith.xori %66, %67 : i1
    %69 = arith.andi %68, %65 : i1
    %70 = arith.addi %64, %63 : i32
    %71 = arith.select %69, %70, %64 : i32
    %cst_26 = arith.constant 0.000000e+00 : f32
    %72 = vector.broadcast %cst_26 : f32 to vector<64x128xf32>
    %cst_27 = arith.constant 0.000000e+00 : f32
    %73 = vector.broadcast %cst_27 : f32 to vector<64x128xf32>
    %c0_i32_28 = arith.constant 0 : i32
    %74 = arith.cmpi eq, %71, %c0_i32_28 : i32
    %75 = arith.extui %74 : i1 to i32
    %76 = arith.sitofp %75 : i32 to f32
    %c1_i32_29 = arith.constant 1 : i32
    %77 = vector.broadcast %c1_i32_29 : i32 to vector<1x128xi32>
    %78 = arith.cmpi sge, %0, %77 : vector<1x128xi32>
    %79 = arith.extui %78 : vector<1x128xi1> to vector<1x128xi32>
    %80 = arith.sitofp %79 : vector<1x128xi32> to vector<1x128xf32>
    %c16_i32 = arith.constant 16 : i32
    %81 = vector.broadcast %c16_i32 : i32 to vector<1x128xi32>
    %82 = arith.cmpi slt, %0, %81 : vector<1x128xi32>
    %83 = arith.extui %82 : vector<1x128xi1> to vector<1x128xi32>
    %84 = arith.sitofp %83 : vector<1x128xi32> to vector<1x128xf32>
    %c1_i32_30 = arith.constant 1 : i32
    %85 = tpu.dynamic_rotate %61 by %c1_i32_30 dim 1 : vector<64x128xf32>, i32 -> vector<64x128xf32>
    %86 = vector.broadcast %80 : vector<1x128xf32> to vector<64x128xf32>
    %87 = arith.mulf %85, %86 : vector<64x128xf32>
    %88 = vector.broadcast %76 : f32 to vector<64x128xf32>
    %89 = arith.mulf %88, %87 : vector<64x128xf32>
    %90 = arith.addf %72, %89 : vector<64x128xf32>
    %c127_i32 = arith.constant 127 : i32
    %91 = tpu.dynamic_rotate %61 by %c127_i32 dim 1 : vector<64x128xf32>, i32 -> vector<64x128xf32>
    %92 = vector.broadcast %84 : vector<1x128xf32> to vector<64x128xf32>
    %93 = arith.mulf %91, %92 : vector<64x128xf32>
    %94 = vector.broadcast %76 : f32 to vector<64x128xf32>
    %95 = arith.mulf %94, %93 : vector<64x128xf32>
    %96 = arith.addf %73, %95 : vector<64x128xf32>
    %c1_i32_31 = arith.constant 1 : i32
    %97 = arith.cmpi eq, %71, %c1_i32_31 : i32
    %98 = arith.extui %97 : i1 to i32
    %99 = arith.sitofp %98 : i32 to f32
    %c2_i32 = arith.constant 2 : i32
    %100 = vector.broadcast %c2_i32 : i32 to vector<1x128xi32>
    %101 = arith.cmpi sge, %0, %100 : vector<1x128xi32>
    %102 = arith.extui %101 : vector<1x128xi1> to vector<1x128xi32>
    %103 = arith.sitofp %102 : vector<1x128xi32> to vector<1x128xf32>
    %c15_i32 = arith.constant 15 : i32
    %104 = vector.broadcast %c15_i32 : i32 to vector<1x128xi32>
    %105 = arith.cmpi slt, %0, %104 : vector<1x128xi32>
    %106 = arith.extui %105 : vector<1x128xi1> to vector<1x128xi32>
    %107 = arith.sitofp %106 : vector<1x128xi32> to vector<1x128xf32>
    %c2_i32_32 = arith.constant 2 : i32
    %108 = tpu.dynamic_rotate %61 by %c2_i32_32 dim 1 : vector<64x128xf32>, i32 -> vector<64x128xf32>
    %109 = vector.broadcast %103 : vector<1x128xf32> to vector<64x128xf32>
    %110 = arith.mulf %108, %109 : vector<64x128xf32>
    %111 = vector.broadcast %99 : f32 to vector<64x128xf32>
    %112 = arith.mulf %111, %110 : vector<64x128xf32>
    %113 = arith.addf %90, %112 : vector<64x128xf32>
    %c126_i32 = arith.constant 126 : i32
    %114 = tpu.dynamic_rotate %61 by %c126_i32 dim 1 : vector<64x128xf32>, i32 -> vector<64x128xf32>
    %115 = vector.broadcast %107 : vector<1x128xf32> to vector<64x128xf32>
    %116 = arith.mulf %114, %115 : vector<64x128xf32>
    %117 = vector.broadcast %99 : f32 to vector<64x128xf32>
    %118 = arith.mulf %117, %116 : vector<64x128xf32>
    %119 = arith.addf %96, %118 : vector<64x128xf32>
    %c2_i32_33 = arith.constant 2 : i32
    %120 = arith.cmpi eq, %71, %c2_i32_33 : i32
    %121 = arith.extui %120 : i1 to i32
    %122 = arith.sitofp %121 : i32 to f32
    %c4_i32 = arith.constant 4 : i32
    %123 = vector.broadcast %c4_i32 : i32 to vector<1x128xi32>
    %124 = arith.cmpi sge, %0, %123 : vector<1x128xi32>
    %125 = arith.extui %124 : vector<1x128xi1> to vector<1x128xi32>
    %126 = arith.sitofp %125 : vector<1x128xi32> to vector<1x128xf32>
    %c13_i32 = arith.constant 13 : i32
    %127 = vector.broadcast %c13_i32 : i32 to vector<1x128xi32>
    %128 = arith.cmpi slt, %0, %127 : vector<1x128xi32>
    %129 = arith.extui %128 : vector<1x128xi1> to vector<1x128xi32>
    %130 = arith.sitofp %129 : vector<1x128xi32> to vector<1x128xf32>
    %c4_i32_34 = arith.constant 4 : i32
    %131 = tpu.dynamic_rotate %61 by %c4_i32_34 dim 1 : vector<64x128xf32>, i32 -> vector<64x128xf32>
    %132 = vector.broadcast %126 : vector<1x128xf32> to vector<64x128xf32>
    %133 = arith.mulf %131, %132 : vector<64x128xf32>
    %134 = vector.broadcast %122 : f32 to vector<64x128xf32>
    %135 = arith.mulf %134, %133 : vector<64x128xf32>
    %136 = arith.addf %113, %135 : vector<64x128xf32>
    %c124_i32 = arith.constant 124 : i32
    %137 = tpu.dynamic_rotate %61 by %c124_i32 dim 1 : vector<64x128xf32>, i32 -> vector<64x128xf32>
    %138 = vector.broadcast %130 : vector<1x128xf32> to vector<64x128xf32>
    %139 = arith.mulf %137, %138 : vector<64x128xf32>
    %140 = vector.broadcast %122 : f32 to vector<64x128xf32>
    %141 = arith.mulf %140, %139 : vector<64x128xf32>
    %142 = arith.addf %119, %141 : vector<64x128xf32>
    %c0_35 = arith.constant 0 : index
    %c0_36 = arith.constant 0 : index
    %c0_37 = arith.constant 0 : index
    %143 = vector.load %arg7[%c0_35, %c0_36, %c0_37] : memref<1x64x3xf32, #tpu.memory_space<vmem>>, vector<1x64x3xf32>
    %144 = vector.shape_cast %143 : vector<1x64x3xf32> to vector<64x3xf32>
    %145 = vector.extract_strided_slice %144 {offsets = [0, 0], sizes = [64, 1], strides = [1, 1]} : vector<64x3xf32> to vector<64x1xf32>
    %146 = vector.broadcast %145 : vector<64x1xf32> to vector<64x128xf32>
    %147 = arith.mulf %146, %136 : vector<64x128xf32>
    %148 = vector.extract_strided_slice %144 {offsets = [0, 1], sizes = [64, 1], strides = [1, 1]} : vector<64x3xf32> to vector<64x1xf32>
    %149 = vector.broadcast %148 : vector<64x1xf32> to vector<64x128xf32>
    %150 = arith.mulf %149, %61 : vector<64x128xf32>
    %151 = arith.addf %147, %150 : vector<64x128xf32>
    %152 = vector.extract_strided_slice %144 {offsets = [0, 2], sizes = [64, 1], strides = [1, 1]} : vector<64x3xf32> to vector<64x1xf32>
    %153 = vector.broadcast %152 : vector<64x1xf32> to vector<64x128xf32>
    %154 = arith.mulf %153, %142 : vector<64x128xf32>
    %155 = arith.addf %151, %154 : vector<64x128xf32>
    %c0_38 = arith.constant 0 : index
    %c0_39 = arith.constant 0 : index
    %c0_40 = arith.constant 0 : index
    %156 = vector.load %arg8[%c0_38, %c0_39, %c0_40] : memref<1x64x1xf32, #tpu.memory_space<vmem>>, vector<1x64x1xf32>
    %157 = vector.shape_cast %156 : vector<1x64x1xf32> to vector<64x1xf32>
    %158 = vector.broadcast %157 : vector<64x1xf32> to vector<64x128xf32>
    %159 = arith.addf %155, %158 : vector<64x128xf32>
    %cst_41 = arith.constant 0.000000e+00 : f32
    %160 = vector.broadcast %cst_41 : f32 to vector<64x128xf32>
    %161 = arith.cmpf oge, %159, %160 : vector<64x128xf32>
    %162 = vector.broadcast %12 : f32 to vector<64x128xf32>
    %163 = arith.mulf %162, %159 : vector<64x128xf32>
    %164 = arith.select %161, %159, %163 : vector<64x128xi1>, vector<64x128xf32>
    %c0_42 = arith.constant 0 : index
    %c0_43 = arith.constant 0 : index
    %c0_44 = arith.constant 0 : index
    %165 = vector.load %arg9[%c0_42, %c0_43, %c0_44] : memref<1x64x1xf32, #tpu.memory_space<vmem>>, vector<1x64x1xf32>
    %166 = vector.shape_cast %165 : vector<1x64x1xf32> to vector<64x1xf32>
    %c0_45 = arith.constant 0 : index
    %c0_46 = arith.constant 0 : index
    %c0_47 = arith.constant 0 : index
    %167 = vector.load %arg10[%c0_45, %c0_46, %c0_47] : memref<1x64x1xf32, #tpu.memory_space<vmem>>, vector<1x64x1xf32>
    %168 = vector.shape_cast %167 : vector<1x64x1xf32> to vector<64x1xf32>
    %169 = vector.broadcast %4 : vector<1x128xf32> to vector<64x128xf32>
    %170 = arith.mulf %164, %169 : vector<64x128xf32>
    %171 = vector.shape_cast %170 : vector<64x128xf32> to vector<1x64x128xf32>
    %cst_48 = arith.constant dense<0.000000e+00> : vector<1xf32>
    %172 = vector.multi_reduction <add>, %171, %cst_48 [1, 2] : vector<1x64x128xf32> to vector<1xf32>
    %173 = vector.shape_cast %172 : vector<1xf32> to vector<1x1x1xf32>
    %174 = vector.extract %173[0, 0, 0] : f32 from vector<1x1x1xf32>
    %175 = vector.broadcast %174 : f32 to vector<1x1xf32>
    %cst_49 = arith.constant 9.1911765E-4 : f32
    %176 = vector.broadcast %cst_49 : f32 to vector<1x1xf32>
    %177 = arith.mulf %175, %176 : vector<1x1xf32>
    %178 = arith.mulf %170, %170 : vector<64x128xf32>
    %179 = vector.shape_cast %178 : vector<64x128xf32> to vector<1x64x128xf32>
    %cst_50 = arith.constant dense<0.000000e+00> : vector<1xf32>
    %180 = vector.multi_reduction <add>, %179, %cst_50 [1, 2] : vector<1x64x128xf32> to vector<1xf32>
    %181 = vector.shape_cast %180 : vector<1xf32> to vector<1x1x1xf32>
    %182 = vector.extract %181[0, 0, 0] : f32 from vector<1x1x1xf32>
    %183 = vector.broadcast %182 : f32 to vector<1x1xf32>
    %cst_51 = arith.constant 9.1911765E-4 : f32
    %184 = vector.broadcast %cst_51 : f32 to vector<1x1xf32>
    %185 = arith.mulf %183, %184 : vector<1x1xf32>
    %186 = arith.mulf %177, %177 : vector<1x1xf32>
    %187 = arith.subf %185, %186 : vector<1x1xf32>
    %cst_52 = arith.constant 0.000000e+00 : f32
    %188 = vector.broadcast %cst_52 : f32 to vector<1x1xf32>
    %189 = arith.maximumf %187, %188 : vector<1x1xf32>
    %190 = vector.broadcast %177 : vector<1x1xf32> to vector<64x128xf32>
    %191 = arith.subf %164, %190 : vector<64x128xf32>
    %cst_53 = arith.constant 9.99999993E-9 : f32
    %192 = vector.broadcast %cst_53 : f32 to vector<1x1xf32>
    %193 = arith.addf %189, %192 : vector<1x1xf32>
    %194 = math.rsqrt %193 : vector<1x1xf32>
    %195 = vector.broadcast %194 : vector<1x1xf32> to vector<64x128xf32>
    %196 = arith.mulf %191, %195 : vector<64x128xf32>
    %197 = vector.broadcast %166 : vector<64x1xf32> to vector<64x128xf32>
    %198 = arith.mulf %196, %197 : vector<64x128xf32>
    %199 = vector.broadcast %168 : vector<64x1xf32> to vector<64x128xf32>
    %200 = arith.addf %198, %199 : vector<64x128xf32>
    %c0_54 = arith.constant 0 : index
    %c0_55 = arith.constant 0 : index
    %c0_56 = arith.constant 0 : index
    %201 = vector.load %arg11[%c0_54, %c0_55, %c0_56] : memref<1x64x64xbf16, #tpu.memory_space<vmem>>, vector<1x64x64xbf16>
    %202 = vector.shape_cast %201 : vector<1x64x64xbf16> to vector<64x64xbf16>
    %203 = arith.truncf %200 : vector<64x128xf32> to vector<64x128xbf16>
    %cst_57 = arith.constant dense<0.000000e+00> : vector<64x128xf32>
    %204 = tpu.matmul %202, %203, %cst_57 {dimension_numbers = #tpu.dot_dimension_numbers<[1], [0], [0], [1], [0, 0, 1, 1], [], []>} : vector<64x64xbf16>, vector<64x128xbf16>, vector<64x128xf32> -> vector<64x128xf32>
    %c0_58 = arith.constant 0 : index
    %c0_59 = arith.constant 0 : index
    %c0_60 = arith.constant 0 : index
    %205 = vector.load %arg12[%c0_58, %c0_59, %c0_60] : memref<1x64x1xf32, #tpu.memory_space<vmem>>, vector<1x64x1xf32>
    %206 = vector.shape_cast %205 : vector<1x64x1xf32> to vector<64x1xf32>
    %207 = vector.broadcast %206 : vector<64x1xf32> to vector<64x128xf32>
    %208 = arith.addf %204, %207 : vector<64x128xf32>
    %209 = vector.broadcast %4 : vector<1x128xf32> to vector<64x128xf32>
    %210 = arith.mulf %208, %209 : vector<64x128xf32>
    %211 = vector.extract_strided_slice %210 {offsets = [0, 0], sizes = [32, 128], strides = [1, 1]} : vector<64x128xf32> to vector<32x128xf32>
    %212 = arith.addf %8, %211 : vector<32x128xf32>
    %c0_61 = arith.constant 0 : index
    %c0_62 = arith.constant 0 : index
    %213 = vector.load %arg15[%c0_61, %c0_62] : memref<32x128xf32, #tpu.memory_space<vmem>>, vector<32x128xf32>
    tpu.vector_store %arg15[%c0_61, %c0_62], %212 {strides = array<i32>} : memref<32x128xf32, #tpu.memory_space<vmem>>, vector<32x128xf32>,
    %c0_63 = arith.constant 0 : index
    %c0_64 = arith.constant 0 : index
    %c0_65 = arith.constant 0 : index
    %214 = vector.load %arg14[%c0_63, %c0_64, %c0_65] : memref<1x32x128xf32, #tpu.memory_space<vmem>>, vector<1x32x128xf32>
    %215 = vector.shape_cast %214 : vector<1x32x128xf32> to vector<32x128xf32>
    %216 = vector.extract_strided_slice %210 {offsets = [32, 0], sizes = [32, 128], strides = [1, 1]} : vector<64x128xf32> to vector<32x128xf32>
    %217 = arith.addf %215, %216 : vector<32x128xf32>
    %c0_66 = arith.constant 0 : index
    %c0_67 = arith.constant 0 : index
    %c0_68 = arith.constant 0 : index
    %218 = vector.load %arg14[%c0_66, %c0_67, %c0_68] : memref<1x32x128xf32, #tpu.memory_space<vmem>>, vector<1x32x128xf32>
    %219 = vector.shape_cast %218 : vector<1x32x128xf32> to vector<32x128xf32>
    %220 = vector.shape_cast %217 : vector<32x128xf32> to vector<1x32x128xf32>
    tpu.vector_store %arg14[%c0_66, %c0_67, %c0_68], %220 {strides = array<i32>} : memref<1x32x128xf32, #tpu.memory_space<vmem>>, vector<1x32x128xf32>,
    return
  }
  func.func @transform_0(%arg0: i32, %arg1: i32) -> (i32, i32) {
    %c0_i32 = arith.constant 0 : i32
    %c0_i32_0 = arith.constant 0 : i32
    %c0_i32_1 = arith.constant 0 : i32
    return %c0_i32, %c0_i32_0 : i32, i32
  }
  func.func @transform_1(%arg0: i32, %arg1: i32) -> (i32, i32, i32) {
    %c0_i32 = arith.constant 0 : i32
    %c0_i32_0 = arith.constant 0 : i32
    %c0_i32_1 = arith.constant 0 : i32
    return %arg1, %c0_i32, %c0_i32_0 : i32, i32, i32
  }
  func.func @transform_2(%arg0: i32, %arg1: i32) -> (i32, i32, i32) {
    %c0_i32 = arith.constant 0 : i32
    %c0_i32_0 = arith.constant 0 : i32
    %c0_i32_1 = arith.constant 0 : i32
    return %arg1, %c0_i32, %c0_i32_0 : i32, i32, i32
  }
  func.func @transform_3(%arg0: i32, %arg1: i32) -> (i32, i32, i32) {
    %c0_i32 = arith.constant 0 : i32
    %c0_i32_0 = arith.constant 0 : i32
    %c0_i32_1 = arith.constant 0 : i32
    return %arg1, %c0_i32, %c0_i32_0 : i32, i32, i32
  }
  func.func @transform_4(%arg0: i32, %arg1: i32) -> (i32, i32, i32) {
    %c0_i32 = arith.constant 0 : i32
    %c0_i32_0 = arith.constant 0 : i32
    %c0_i32_1 = arith.constant 0 : i32
    return %arg1, %c0_i32, %c0_i32_0 : i32, i32, i32
  }
  func.func @transform_5(%arg0: i32, %arg1: i32) -> (i32, i32, i32) {
    %c0_i32 = arith.constant 0 : i32
    %c0_i32_0 = arith.constant 0 : i32
    %c0_i32_1 = arith.constant 0 : i32
    return %arg1, %c0_i32, %c0_i32_0 : i32, i32, i32
  }
  func.func @transform_6(%arg0: i32, %arg1: i32) -> (i32, i32, i32) {
    %c0_i32 = arith.constant 0 : i32
    %c0_i32_0 = arith.constant 0 : i32
    %c0_i32_1 = arith.constant 0 : i32
    return %arg1, %c0_i32, %c0_i32_0 : i32, i32, i32
  }
  func.func @transform_7(%arg0: i32, %arg1: i32) -> (i32, i32, i32) {
    %c0_i32 = arith.constant 0 : i32
    %c0_i32_0 = arith.constant 0 : i32
    %c0_i32_1 = arith.constant 0 : i32
    return %arg1, %c0_i32, %c0_i32_0 : i32, i32, i32
  }
  func.func @transform_8(%arg0: i32, %arg1: i32) -> (i32, i32, i32) {
    %c0_i32 = arith.constant 0 : i32
    %c0_i32_0 = arith.constant 0 : i32
    %c0_i32_1 = arith.constant 0 : i32
    return %arg1, %c0_i32, %c0_i32_0 : i32, i32, i32
  }
  func.func @transform_9(%arg0: i32, %arg1: i32) -> (i32, i32, i32) {
    %c0_i32 = arith.constant 0 : i32
    %c0_i32_0 = arith.constant 0 : i32
    %c0_i32_1 = arith.constant 0 : i32
    return %arg1, %c0_i32, %c0_i32_0 : i32, i32, i32
  }
  func.func @transform_10(%arg0: i32, %arg1: i32) -> (i32, i32, i32) {
    %c0_i32 = arith.constant 0 : i32
    %c0_i32_0 = arith.constant 0 : i32
    %c0_i32_1 = arith.constant 0 : i32
    return %arg1, %c0_i32, %c0_i32_0 : i32, i32, i32
  }
  func.func @transform_11(%arg0: i32, %arg1: i32) -> (i32, i32, i32) {
    %c0_i32 = arith.constant 0 : i32
    %c0_i32_0 = arith.constant 0 : i32
    %c0_i32_1 = arith.constant 0 : i32
    return %arg0, %c0_i32, %c0_i32_0 : i32, i32, i32
  }
  func.func @transform_12(%arg0: i32, %arg1: i32) -> (i32, i32, i32) {
    %c0_i32 = arith.constant 0 : i32
    %c0_i32_0 = arith.constant 0 : i32
    %c0_i32_1 = arith.constant 0 : i32
    return %arg0, %c0_i32, %c0_i32_0 : i32, i32, i32
  }
}

</mosaic_0001>

<bundles_post_ra>
// kernel: conv_tasnet_forward.3
= control target key start
LH: loop header
LB: loop body
LE: loop exit
PB: predicated region body
PF: predicated region fallthrough
CT: control target
= control target key end

     0   :  { %s1118_s27 = smov 0   ;;  %s1319_s0 = inlined_call_operand.vmem [shape: f32[64,1], index: 0, kind: input, shape index: {}]   ;;  %s1320_s1 = inlined_call_operand.vmem [shape: f32[64,1], index: 1, kind: input, shape index: {}]   ;;  %s1321_s2 = inlined_call_operand.vmem [shape: bf16[64,8], index: 2, kind: input, shape index: {}]   ;;  %s1322_s3 = inlined_call_operand.vmem [shape: bf16[64,8], index: 3, kind: input, shape index: {}]   ;;  %s1323_s4 = inlined_call_operand.vmem [shape: bf16[32,64], index: 4, kind: input, shape index: {}]   ;;  %s1324_s5 = inlined_call_operand.vmem [shape: f32[32,1], index: 5, kind: input, shape index: {}]   ;;  %s1325_s6 = inlined_call_operand.vmem [shape: f32[2,8,128], index: 6, kind: input, shape index: {}]   ;;  %s1326_s7 = inlined_call_operand.vmem [shape: f32[2,64,128], index: 7, kind: output, shape index: {0}]   ;;  %s1327_s8 = inlined_call_operand.vmem [shape: f32[2,32,128], index: 8, kind: output, shape index: {1}]  }
   0x1 LB: > { %s940_s28 = sadd.s32 4294967295, %s1068_s27   ;;  %p944_p0 = scmp.ge.s32.totalorder %s1068_s27, 1  ;;  %s1068_s27 = sphi %s1118_s27, %s19_s27  }
   0x2   : > { %p264_p1 = scmp.lt.s32.totalorder %s1068_s27, 3 }
   0x4   : > { %p265_p2 = pnand %p944_p0, %p264_p1 }
   0x5   : > { %p302_p3 = scmp.lt.s32.totalorder (!%p265_p2), %s940_s28, 1  ;;  %vm358_vm0 = vcmask (!%p265_p2), 64512   ;;  %v1050_v0 = vld [vmem:[%s1321_s2] sm:$0xff] (!%p265_p2)   ;;  %vm371_vm1 = vcmask (!%p265_p2), 1043456   ;;  %s1070_s15 = smov (!%p265_p2), 127   ;;  %v1051_v5 = vld [vmem:[%s1321_s2 + $0x8] sm:$0xff] (!%p265_p2)   ;;  %v540_v23 = vlaneseq (!%p265_p2) }
   0x6   : > { %268 = sbr.rel (%p265_p2) target bundleno = 843 (0x34b), region = 48  ;;  %1003 = vmatprep.mubr.msk.bf16.mxu0 (!%p265_p2), %vm358_vm0, %v1050_v0  ;;  %v1052_v1 = vld [vmem:[%s1322_s3] sm:$0xff] (!%p265_p2)   ;;  %v1054_v6 = vld [vmem:[%s1321_s2 + $0x10] sm:$0xff] (!%p265_p2)   ;;  %v1055_v7 = vld [vmem:[%s1321_s2 + $0x18] sm:$0xff] (!%p265_p2)   ;;  %v1071_v22 = vmov (!%p265_p2), 0   ;;  %v1072_v26 = vmov (!%p265_p2), 0.0  }
   0x7   : > { %993 = vmatprep.mubr.msk.bf16.mxu1 (!%p265_p2), %vm358_vm0, %v1052_v1  ;;  %v1053_v11 = vld [vmem:[%s1322_s3 + $0x8] sm:$0xff] (!%p265_p2)   ;;  %v1056_v12 = vld [vmem:[%s1322_s3 + $0x10] sm:$0xff] (!%p265_p2)   ;;  %v1057_v13 = vld [vmem:[%s1322_s3 + $0x18] sm:$0xff] (!%p265_p2)   ;;  %1048 = vset.pattern.permute.xlu1 (!%p265_p2), %v1071_v22  ;;  %v541_v24 = vand.u32 (!%p265_p2), 127, %v540_v23  ;;  %vm788_vm3 = vcmask (!%p265_p2), 523264  }
   0x8   : > { %1049 = vset.pattern.permute.xlu0 (!%p265_p2), %v1071_v22  ;;  %v757_v22 = vld [vmem:[%s1324_s5 + $0x18] sm:$0xff] (!%p265_p2)  ;;  %v570_v23 = vld [vmem:[%s1320_s1 + $0x8] sm:$0xff] (!%p265_p2) }
   0x9   : > { %vm542_vm2 = vcmp.lt.s32.totalorder (!%p265_p2), %v541_v24, 17  ;;  %v563_v24 = vld [vmem:[%s1319_s0 + $0x10] sm:$0xff] (!%p265_p2) }
   0xa   : > { %v1169_v27 = vsel (!%p265_p2), %vm542_vm2, 1.0, %v1072_v26  ;;  %v572_v26 = vld [vmem:[%s1320_s1 + $0x18] sm:$0xff] (!%p265_p2) }
   0xd   : > { %s1329_s28 = smov (!%p302_p3, %s940_s28), 1 }
   0xe   : > { %s945_s11 = sshll.u32 %s1329_s28, 3  ;;  %s973_s30 = sshll.u32 %s1329_s28, 6 }
   0xf   : > { %s305_s14 = scalar_lea.vmem %s1325_s6, %s945_s11  ;;  %s1174_s11 = scalar_lea.vmem %s1326_s7, %s973_s30 }
  0x10   : > { %v317_v2 = vld [vmem:[%s305_s14] sm:$0xff]  ;;  %s974_s18 = sshll.u32 %s1329_s28, 5 }
  0x11   : > { %318 = vrot.lane.b32.xlu0 %v317_v2, %s1070_s15  ;;  %v328_v3 = vpack.c.bf16 %v317_v2, %v317_v2  ;;  %s315_s21 = scalar_lea.vmem %s1327_s8, %s974_s18 }
  0x13   : > { %1032 = vmatprep.subr.msk.bf16.mxu0 %vm371_vm1, %v328_v3  ;;  %v473_v4 = vsel %vm371_vm1, %v328_v3, 0 }
  0x14   : > { %1002 = vmatpush3.bf16.msra.mxu0 %v473_v4 }
  0x17   : > { %1004 = vmatmul.mubr.msk.bf16.vlgmr.msra.gmra.mrb[0].mxu0 %vm358_vm0, %v1051_v5 }
  0x18   : > { %1007 = vmatprep.mubr.msk.bf16.mxu0 %vm358_vm0, %v1054_v6 }
  0x1f   : > { %1008 = vmatmul.mubr.msk.bf16.gmra.mrb[4].mxu0 %vm358_vm0, %v1055_v7 }
  0x83   : > { %v319_v8 = vpop.permute.xlu0 %318 }
  0x84   : > { %v337_v9 = vpack.c.bf16 %v319_v8, %v319_v8 }
  0x86   : > { %1031 = vmatprep.subr.msk.bf16.mxu1 %vm371_vm1, %v337_v9  ;;  %v373_v10 = vsel %vm371_vm1, %v337_v9, 0 }
  0x87   : > { %992 = vmatpush3.bf16.msra.mxu1 %v373_v10 }
  0x8a   : > { %994 = vmatmul.mubr.msk.bf16.vlgmr.msra.gmra.mrb[0].mxu1 %vm358_vm0, %v1053_v11 }
  0x8b   : > { %997 = vmatprep.mubr.msk.bf16.mxu1 %vm358_vm0, %v1056_v12 }
  0x92   : > { %998 = vmatmul.mubr.msk.bf16.gmra.mrb[4].mxu1 %vm358_vm0, %v1057_v13 }
  0xea   : > { %v1005_v14 = vpop.f32.mrb[0].mxu0 }
  0xeb   : > { %v509_v15 = vpop.f32.mrb[1].mxu0 }
  0xec   : > { %v1006_v16 = vpop.f32.mrb[2].mxu0 }
  0xed   : > { %v512_v17 = vpop.f32.mrb[3].mxu0 }
  0xf2   : > { %v1009_v18 = vpop.f32.mrb[4].mxu0 }
  0xf3   : > { %v525_v19 = vpop.f32.mrb[5].mxu0 }
  0xf4   : > { %v1010_v20 = vpop.f32.mrb[6].mxu0 }
  0xf5   : > { %v528_v21 = vpop.f32.mrb[7].mxu0 }
 0x15d   : > { %v995_v25 = vpop.f32.mrb[0].mxu1 }
 0x15e   : > { %v518_v28 = vadd.f32 %v1005_v14, %v995_v25  ;;  %v409_v29 = vpop.f32.mrb[1].mxu1  ;;  %v571_v25 = vld [vmem:[%s1320_s1 + $0x10] sm:$0xff] }
 0x15f   : > { %v510_v30 = vadd.f32 %v509_v15, %v409_v29  ;;  %v996_v31 = vpop.f32.mrb[2].mxu1  ;;  %v566_v29 = vld [vmem:[%s1319_s0 + $0x28] sm:$0xff] }
 0x160   : > { %v1177_v32 = vmul.f32 %v1169_v27, %v518_v28  ;;  %v521_v33 = vadd.f32 %v1006_v16, %v996_v31  ;;  %v412_v34 = vpop.f32.mrb[3].mxu1  ;;  %v565_v28 = vld [vmem:[%s1319_s0 + $0x20] sm:$0xff]  ;;  %v574_v31 = vld [vmem:[%s1320_s1 + $0x28] sm:$0xff] }
 0x161   : > { %v1180_v35 = vmul.f32 %v1169_v27, %v510_v30  ;;  %v513_v36 = vadd.f32 %v512_v17, %v412_v34  ;;  %v561_v17 = vld [vmem:[%s1319_s0] sm:$0xff]  ;;  %v568_v34 = vld [vmem:[%s1319_s0 + $0x38] sm:$0xff] }
 0x162   : > { %555 = vst [vmem:[%s1174_s11 + $0x10] sm:$0xff] %v1177_v32  ;;  %v1185_v37 = vmul.f32 %v1169_v27, %v521_v33  ;;  %v579_v40 = vmul.f32 %v1169_v27, %v1177_v32  ;;  %v573_v30 = vld [vmem:[%s1320_s1 + $0x20] sm:$0xff]  ;;  %v567_v33 = vld [vmem:[%s1319_s0 + $0x30] sm:$0xff] }
 0x163   : > { %553 = vst [vmem:[%s1174_s11] sm:$0xff] %v1180_v35  ;;  %v577_v38 = vmul.f32 %v1169_v27, %v1180_v35  ;;  %v1192_v39 = vmul.f32 %v1169_v27, %v513_v36  ;;  %v575_v36 = vld [vmem:[%s1320_s1 + $0x30] sm:$0xff] }
 0x164   : > { %556 = vst [vmem:[%s1174_s11 + $0x18] sm:$0xff] %v1185_v37  ;;  %v580_v43 = vmul.f32 %v1169_v27, %v1185_v37  ;;  %v605_v51 = vmul.f32 %v579_v40, %v579_v40 }
 0x165   : > { %554 = vst [vmem:[%s1174_s11 + $0x8] sm:$0xff] %v1192_v39  ;;  %v578_v41 = vmul.f32 %v1169_v27, %v1192_v39  ;;  %v999_v42 = vpop.f32.mrb[4].mxu1  ;;  %v603_v46 = vmul.f32 %v577_v38, %v577_v38 }
 0x166   : > { %v534_v44 = vadd.f32 %v1009_v18, %v999_v42  ;;  %v425_v45 = vpop.f32.mrb[5].mxu1  ;;  %v606_v59 = vmul.f32 %v580_v43, %v580_v43  ;;  %v564_v18 = vld [vmem:[%s1319_s0 + $0x18] sm:$0xff]  ;;  %v1058_v42 = vld [vmem:[%s1323_s4] sm:$0xff]  }
 0x167   : > { %v585_v47 = vadd.f32 %v578_v41, %v577_v38  ;;  %v604_v48 = vmul.f32 %v578_v41, %v578_v41  ;;  %v526_v49 = vadd.f32 %v525_v19, %v425_v45  ;;  %v1000_v50 = vpop.f32.mrb[6].mxu1  ;;  %v562_v19 = vld [vmem:[%s1319_s0 + $0x8] sm:$0xff]  ;;  %v576_v38 = vld [vmem:[%s1320_s1 + $0x38] sm:$0xff]  ;;  %v756_v41 = vld [vmem:[%s1324_s5 + $0x10] sm:$0xff]  ;;  %1019 = vmatprep.mubr.msk.bf16.mxu1 %vm788_vm3, %v1058_v42 }
 0x168   : > { %v1205_v52 = vmul.f32 %v1169_v27, %v534_v44  ;;  %v537_v53 = vadd.f32 %v1010_v20, %v1000_v50  ;;  %v428_v54 = vpop.f32.mrb[7].mxu1  ;;  %v755_v20 = vld [vmem:[%s1324_s5 + $0x8] sm:$0xff] }
 0x169   : > { %v586_v55 = vadd.f32 %v585_v47, %v579_v40  ;;  %v611_v56 = vadd.f32 %v604_v48, %v603_v46  ;;  %v1208_v57 = vmul.f32 %v1169_v27, %v526_v49  ;;  %v529_v58 = vadd.f32 %v528_v21, %v428_v54  ;;  %v569_v21 = vld [vmem:[%s1320_s1] sm:$0xff] }
 0x16a   : > { %559 = vst [vmem:[%s1174_s11 + $0x30] sm:$0xff] %v1205_v52  ;;  %v1213_v60 = vmul.f32 %v1169_v27, %v537_v53  ;;  %v583_v1 = vmul.f32 %v1169_v27, %v1205_v52  ;;  %v754_v40 = vld [vmem:[%s1324_s5] sm:$0xff] }
 0x16b   : > { %557 = vst [vmem:[%s1174_s11 + $0x20] sm:$0xff] %v1208_v57  ;;  %v581_v61 = vmul.f32 %v1169_v27, %v1208_v57  ;;  %v1220_v62 = vmul.f32 %v1169_v27, %v529_v58  ;;  %v587_v63 = vadd.f32 %v586_v55, %v580_v43  ;;  %v612_v0 = vadd.f32 %v611_v56, %v605_v51 }
 0x16c   : > { %560 = vst [vmem:[%s1174_s11 + $0x38] sm:$0xff] %v1213_v60  ;;  %v584_v6 = vmul.f32 %v1169_v27, %v1213_v60  ;;  %v609_v11 = vmul.f32 %v583_v1, %v583_v1 }
 0x16d   : > { %558 = vst [vmem:[%s1174_s11 + $0x28] sm:$0xff] %v1220_v62  ;;  %v582_v2 = vmul.f32 %v1169_v27, %v1220_v62  ;;  %v588_v3 = vadd.f32 %v587_v63, %v581_v61  ;;  %v607_v4 = vmul.f32 %v581_v61, %v581_v61  ;;  %v613_v5 = vadd.f32 %v612_v0, %v606_v59 }
 0x16e   : > { %v610_v14 = vmul.f32 %v584_v6, %v584_v6 }
 0x16f   : > { %v589_v7 = vadd.f32 %v588_v3, %v582_v2  ;;  %v608_v8 = vmul.f32 %v582_v2, %v582_v2  ;;  %v614_v9 = vadd.f32 %v613_v5, %v607_v4 }
 0x171   : > { %v590_v10 = vadd.f32 %v589_v7, %v583_v1  ;;  %v615_v12 = vadd.f32 %v614_v9, %v608_v8 }
 0x173   : > { %v591_v13 = vadd.f32 %v590_v10, %v584_v6  ;;  %v616_v15 = vadd.f32 %v615_v12, %v609_v11 }
 0x175   : > { %592 = vadd.xlane.f32.xlu0 %v591_v13  ;;  %v617_v16 = vadd.f32 %v616_v15, %v610_v14 }
 0x177   : > { %618 = vadd.xlane.f32.xlu1 %v617_v16 }
 0x188   : > { %652 = vperm.xlu1 %1048, %v561_v17  }
 0x18b   : > { %667 = vperm.xlu0 %1049, %v564_v18  }
 0x18c   : > { %657 = vperm.xlu1 %1048, %v562_v19  }
 0x18f   : > { %765 = vperm.xlu0 %1049, %v755_v20  }
 0x190   : > { %700 = vperm.xlu1 %1048, %v569_v21  }
 0x193   : > { %775 = vperm.xlu0 %1049, %v757_v22  }
 0x194   : > { %705 = vperm.xlu1 %1048, %v570_v23  }
 0x198   : > { %662 = vperm.xlu1 %1048, %v563_v24  }
 0x19c   : > { %710 = vperm.xlu1 %1048, %v571_v25  }
 0x1a0   : > { %715 = vperm.xlu1 %1048, %v572_v26  }
 0x1a4   : > { %672 = vperm.xlu1 %1048, %v565_v28  }
 0x1a8   : > { %677 = vperm.xlu1 %1048, %v566_v29  }
 0x1ac   : > { %720 = vperm.xlu1 %1048, %v573_v30  }
 0x1b0   : > { %725 = vperm.xlu1 %1048, %v574_v31  }
 0x1b4   : > { %682 = vperm.xlu1 %1048, %v567_v33  }
 0x1b8   : > { %687 = vperm.xlu1 %1048, %v568_v34  }
 0x1bc   : > { %730 = vperm.xlu1 %1048, %v575_v36  }
 0x1c0   : > { %735 = vperm.xlu1 %1048, %v576_v38  }
 0x1c4   : > { %760 = vperm.xlu1 %1048, %v754_v40  }
 0x1c8   : > { %770 = vperm.xlu1 %1048, %v756_v41  }
 0x202   : > { %v593_v43 = vpop.xlane.xlu0 %592 }
 0x203   : > { %v594_v44 = vrot.slane %v593_v43, 4 }
 0x204   : > { %v619_v45 = vpop.xlane.xlu1 %618 }
 0x205   : > { %v595_v46 = vadd.f32 %v594_v44, %v593_v43  ;;  %v620_v47 = vrot.slane %v619_v45, 4 }
 0x207   : > { %v596_v48 = vrot.slane %v595_v46, 2  ;;  %v621_v49 = vadd.f32 %v620_v47, %v619_v45 }
 0x208   : > { %v653_v58 = vpop.permute.xlu1 %652 }
 0x209   : > { %v622_v50 = vrot.slane %v621_v49, 2  ;;  %v597_v51 = vadd.f32 %v596_v48, %v595_v46 }
 0x20a   : > { %v668_v30 = vpop.permute.xlu0 %667 }
 0x20b   : > { %v598_v53 = vrot.slane %v597_v51, 1  ;;  %v623_v54 = vadd.f32 %v622_v50, %v621_v49 }
 0x20c   : > { %v658_v61 = vpop.permute.xlu1 %657 }
 0x20d   : > { %v599_v55 = vadd.f32 %v598_v53, %v597_v51  ;;  %v624_v56 = vrot.slane %v623_v54, 1 }
 0x20f   : > { %1033 = vpush %v599_v55  ;;  %v625_v59 = vadd.f32 %v624_v56, %v623_v54  ;;  %v1059_v56 = vld [vmem:[%s1323_s4 + $0x8] sm:$0xff]  }
 0x210   : > { %v701_v63 = vpop.permute.xlu1 %700 }
 0x211   : > { %1035 = vpush %v625_v59  ;;  %v766_v59 = vpop.permute.xlu0 %765 }
 0x214   : > { %v706_v0 = vpop.permute.xlu1 %705 }
 0x218   : > { %v663_v1 = vpop.permute.xlu1 %662 }
 0x21c   : > { %v711_v2 = vpop.permute.xlu1 %710 }
 0x220   : > { %v716_v3 = vpop.permute.xlu1 %715 }
 0x224   : > { %v673_v4 = vpop.permute.xlu1 %672 }
 0x228   : > { %v678_v5 = vpop.permute.xlu1 %677 }
 0x22c   : > { %v721_v9 = vpop.permute.xlu1 %720 }
 0x230   : > { %v726_v14 = vpop.permute.xlu1 %725 }
 0x234   : > { %v683_v16 = vpop.permute.xlu1 %682 }
 0x238   : > { %v688_v22 = vpop.permute.xlu1 %687 }
 0x23c   : > { %v731_v45 = vpop.permute.xlu1 %730 }
 0x240   : > { %s1034_s14 = spop %1033  ;;  %v736_v50 = vpop.permute.xlu1 %735 }
 0x241   : > { %v601_v6 = vstv %s1034_s14 }
 0x242   : > { %v602_v7 = vmul.f32 0.00091911765, %v601_v6  ;;  %s1036_s15 = spop %1035 }
 0x243   : > { %v627_v8 = vstv %s1036_s15 }
 0x244   : > { %v628_v10 = vmul.f32 0.00091911765, %v627_v8  ;;  %v629_v11 = vmul.f32 %v602_v7, %v602_v7  ;;  %v635_v17 = vsub.f32 %v1185_v37, %v602_v7  ;;  %v632_v18 = vsub.f32 %v1180_v35, %v602_v7 }
 0x245   : > { %v633_v19 = vsub.f32 %v1192_v39, %v602_v7  ;;  %v634_v20 = vsub.f32 %v1177_v32, %v602_v7  ;;  %v636_v23 = vsub.f32 %v1208_v57, %v602_v7  ;;  %v637_v24 = vsub.f32 %v1220_v62, %v602_v7 }
 0x246   : > { %v630_v12 = vsub.f32 %v628_v10, %v629_v11  ;;  %v638_v37 = vsub.f32 %v1205_v52, %v602_v7  ;;  %v639_v35 = vsub.f32 %v1213_v60, %v602_v7 }
 0x248   : > { %v631_v13 = vmax.f32 %v630_v12, 0.0 }
 0x24a   : > { %v640_v15 = vadd.f32 1e-08, %v631_v13 }
 0x24c   : > { %1060 = vrsqrt.f32 %v640_v15 }
 0x256   : > { %v1061_v21 = vpop.eup %1060 }
 0x257   : > { %v645_v25 = vmul.f32 %v1061_v21, %v635_v17  ;;  %v642_v26 = vmul.f32 %v1061_v21, %v632_v18  ;;  %v643_v28 = vmul.f32 %v1061_v21, %v633_v19  ;;  %v644_v29 = vmul.f32 %v1061_v21, %v634_v20 }
 0x258   : > { %v646_v31 = vmul.f32 %v1061_v21, %v636_v23  ;;  %v647_v33 = vmul.f32 %v1061_v21, %v637_v24  ;;  %v648_v57 = vmul.f32 %v1061_v21, %v638_v37  ;;  %v649_v41 = vmul.f32 %v1061_v21, %v639_v35 }
 0x259   : > { %v693_v39 = vmul.f32 %v668_v30, %v645_v25  ;;  %v690_v34 = vmul.f32 %v653_v58, %v642_v26  ;;  %v691_v32 = vmul.f32 %v658_v61, %v643_v28  ;;  %v692_v36 = vmul.f32 %v663_v1, %v644_v29  ;;  %v761_v58 = vpop.permute.xlu1 %760 }
 0x25a   : > { %v694_v38 = vmul.f32 %v673_v4, %v646_v31  ;;  %v695_v40 = vmul.f32 %v678_v5, %v647_v33  ;;  %v696_v47 = vmul.f32 %v683_v16, %v648_v57  ;;  %v697_v60 = vmul.f32 %v688_v22, %v649_v41 }
 0x25b   : > { %v741_v62 = vadd.f32 %v716_v3, %v693_v39  ;;  %v738_v42 = vadd.f32 %v701_v63, %v690_v34  ;;  %v739_v43 = vadd.f32 %v706_v0, %v691_v32  ;;  %v740_v44 = vadd.f32 %v711_v2, %v692_v36  ;;  %v776_v2 = vpop.permute.xlu0 %775 }
 0x25c   : > { %v742_v52 = vadd.f32 %v721_v9, %v694_v38  ;;  %v743_v49 = vadd.f32 %v726_v14, %v695_v40  ;;  %v744_v53 = vadd.f32 %v731_v45, %v696_v47  ;;  %v745_v54 = vadd.f32 %v736_v50, %v697_v60 }
 0x25d   : > { %v750_v46 = vpack.c.bf16 %v739_v43, %v738_v42  ;;  %v751_v48 = vpack.c.bf16 %v741_v62, %v740_v44  ;;  %v771_v61 = vpop.permute.xlu1 %770 }
 0x25e   : > { %v752_v51 = vpack.c.bf16 %v743_v49, %v742_v52  ;;  %v753_v55 = vpack.c.bf16 %v745_v54, %v744_v53 }
 0x25f   : > { %1011 = vmatprep.subr.bf16.mxu1 %v750_v46 }
 0x260   : > { %1012 = vmatpush3.bf16.msra.mxu1 %v750_v46 }
 0x261   : > { %1013 = vmatprep.subr.bf16.mxu1 %v751_v48 }
 0x264   : > { %1014 = vmatpush3.bf16.msra.mxu1 %v751_v48 }
 0x265   : > { %1015 = vmatprep.subr.bf16.mxu1 %v752_v51 }
 0x268   : > { %1016 = vmatpush3.bf16.msra.mxu1 %v752_v51 }
 0x269   : > { %1017 = vmatprep.subr.bf16.mxu1 %v753_v55 }
 0x26c   : > { %1018 = vmatpush3.bf16.msra.mxu1 %v753_v55 }
 0x26f   : > { %1020 = vmatmul.mubr.msk.bf16.vlgmr.msra.gmra.mrb[8].mxu1 %vm788_vm3, %v1059_v56 }
 0x342   : > { %v1021_v63 = vpop.f32.mrb[8].mxu1 }
 0x343   : > { %v838_v0 = vadd.f32 %v1021_v63, %v771_v61  ;;  %v829_v1 = vpop.f32.mrb[9].mxu1 }
 0x344   : > { %v830_v3 = vadd.f32 %v829_v1, %v761_v58  ;;  %v1022_v4 = vpop.f32.mrb[10].mxu1 }
 0x345   : > { %v846_v5 = vmul.f32 %v1169_v27, %v838_v0  ;;  %v841_v6 = vadd.f32 %v1022_v4, %v776_v2  ;;  %v832_v7 = vpop.f32.mrb[11].mxu1 }
 0x346   : > { %v844_v8 = vmul.f32 %v1169_v27, %v830_v3  ;;  %v833_v9 = vadd.f32 %v832_v7, %v766_v59 }
 0x347   : > { %850 = vst [vmem:[%s315_s21 + $0x10] sm:$0xff] %v846_v5  ;;  %v847_v10 = vmul.f32 %v1169_v27, %v841_v6 }
 0x348   : > { %848 = vst [vmem:[%s315_s21] sm:$0xff] %v844_v8  ;;  %v845_v11 = vmul.f32 %v1169_v27, %v833_v9 }
 0x349   : > { %851 = vst [vmem:[%s315_s21 + $0x18] sm:$0xff] %v847_v10 }
 0x34a   : > { %849 = vst [vmem:[%s315_s21 + $0x8] sm:$0xff] %v845_v11 }
 0x34b PF: > { %s19_s27 = sadd.s32 1, %s1068_s27  }
 0x34c   : > { %p16_p4 = scmp.ge.s32.totalorder %s19_s27, 4  }
 0x34e   :  { %18 = sbr.rel (!%p16_p4) target bundleno = 1 (0x1), region = 90 }

// kernel: conv_tasnet_forward.5
= control target key start
LH: loop header
LB: loop body
LE: loop exit
PB: predicated region body
PF: predicated region fallthrough
CT: control target
= control target key end

     0   :  { %s994_s23 = smov 0   ;;  %s996_s24 = smov 0   ;;  %s1083_s0 = inlined_call_operand.<no memory space> [shape: f32[1], index: 0, kind: input, shape index: {}]   ;;  %s1084_s1 = inlined_call_operand.vmem [shape: bf16[2,64,32], index: 1, kind: input, shape index: {}]   ;;  %s1085_s2 = inlined_call_operand.vmem [shape: f32[2,64,1], index: 2, kind: input, shape index: {}]   ;;  %s1086_s3 = inlined_call_operand.vmem [shape: bf16[16,64], index: 3, kind: input, shape index: {}]   ;;  %s1087_s4 = inlined_call_operand.vmem [shape: f32[2,32,128], index: 4, kind: input, shape index: {}]   ;;  %s1088_s5 = inlined_call_operand.vmem [shape: f32[2,64,128], index: 5, kind: input, shape index: {}]   ;;  %s1089_s6 = inlined_call_operand.vmem [shape: f32[2,2,8,128], index: 6, kind: output, shape index: {}]  }
   0x1   :  { %11 = sst [smem:[#allocation2]] %s1083_s0  ;;  %s998_s25 = smov 0  }
   0x2   :  { %s1000_s26 = smov 0   ;;  %s1002_s27 = smov 0  }
   0x3 LB: > { %s26_s0 = sadd.s32 1, %s942_s25  ;;  %s29_s28 = sadd.s32 1, %s946_s26  ;;  %s950_s27 = sphi %s1002_s27, %s17_s27   ;;  %s946_s26 = sphi %s1000_s26, %s1093_s26   ;;  %s942_s25 = sphi %s998_s25, %s1092_s25   ;;  %s938_s24 = sphi %s996_s24, %s1091_s24   ;;  %s934_s23 = sphi %s994_s23, %s1090_s23  }
   0x4   : > { %p27_p0 = scmp.ge.s32.totalorder %s26_s0, 2  ;;  %p758_p1 = scmp.ge.s32.totalorder %s950_s27, 1 }
   0x5   : > { %p257_p2 = scmp.lt.s32.totalorder %s950_s27, 5 }
   0x6   : > { %s1095_s0 = smov (%p27_p0, %s26_s0), 0  ;;  %s1097_s28 = smov (!%p27_p0, %s29_s28), %s946_s26 }
   0x7   : > { %p258_p3 = pnand %p758_p1, %p257_p2  ;;  %p31_p4 = scmp.ge.s32.totalorder %s1097_s28, 2 }
   0x8   : > { %p315_p5 = scmp.lt.s32.totalorder (!%p258_p3), %s938_s24, 1  ;;  %s338_s29 = sld [smem:[#allocation2]] (!%p258_p3)  ;;  %v952_v0 = vmov (!%p258_p3), 0   ;;  %vm430_vm0 = vcmask (!%p258_p3), 261120   ;;  %v953_v28 = vmov (!%p258_p3), 0.0   ;;  %vm954_vm5 = vmmov (!%p258_p3), 0  }
   0x9   : > { %s1099_s28 = smov (%p31_p4, %s1097_s28), 0  ;;  %261 = sbr.rel (%p258_p3) target bundleno = 627 (0x273), region = 44 }
   0xa   : > { %p305_p6 = scmp.lt.s32.totalorder (!%p258_p3), %s934_s23, 1  ;;  %873 = vset.pattern.permute.xlu0 (!%p258_p3), %v952_v0  ;;  %874 = vset.pattern.permute.xlu1 (!%p258_p3), %v952_v0  ;;  %vm583_vm6 = vcmask (!%p258_p3), 523264  }
   0xb   : > { %817 = vmatprep.subr.bf16.mxu1 (!%p258_p3), %v953_v28  ;;  %825 = vmatprep.mubr.msk.bf16.mxu1 (!%p258_p3), %vm954_vm5, %v953_v28 }
   0xe   : > { %v343_v3 = vstv (!%p258_p3), %s338_s29 }
  0x10   : > { %s1101_s24 = smov (!%p315_p5, %s938_s24), 1  ;;  %s1103_s23 = smov (!%p305_p6, %s934_s23), 1 }
  0x11   : > { %s792_s30 = sshll.u32 %s1101_s24, 5  ;;  %s790_s10 = sshll.u32 %s1103_s23, 5 }
  0x12   : > { %s319_s9 = scalar_lea.vmem %s1087_s4, %s792_s30  ;;  %s791_s11 = sshll.u32 %s1103_s23, 6 }
  0x13   : > { %v334_v1 = vld [vmem:[%s319_s9] sm:$0xff]  ;;  %v335_v2 = vld [vmem:[%s319_s9 + $0x8] sm:$0xff]  ;;  %v336_v4 = vld [vmem:[%s319_s9 + $0x10] sm:$0xff]  ;;  %s1037_s14 = scalar_lea.vmem %s1084_s1, %s790_s10  ;;  %s314_s17 = scalar_lea.vmem %s1085_s2, %s791_s11 }
  0x14   : > { %vm339_vm1 = vcmp.ge.f32.partialorder %v334_v1, 0.0  ;;  %vm340_vm2 = vcmp.ge.f32.partialorder %v335_v2, 0.0  ;;  %v344_v5 = vmul.f32 %v343_v3, %v334_v1  ;;  %v345_v6 = vmul.f32 %v343_v3, %v335_v2  ;;  %v337_v7 = vld [vmem:[%s319_s9 + $0x18] sm:$0xff]  ;;  %v875_v12 = vld [vmem:[%s1037_s14] sm:$0xff]   ;;  %v364_v18 = vld [vmem:[%s314_s17 + $0x10] sm:$0xff]  ;;  %s793_s18 = sshll.u32 %s1101_s24, 6 }
  0x15   : > { %vm341_vm3 = vcmp.ge.f32.partialorder %v336_v4, 0.0  ;;  %vm342_vm4 = vcmp.ge.f32.partialorder %v337_v7, 0.0  ;;  %v346_v8 = vmul.f32 %v343_v3, %v336_v4  ;;  %v347_v9 = vmul.f32 %v343_v3, %v337_v7  ;;  %809 = vmatprep.mubr.msk.bf16.mxu0 %vm430_vm0, %v875_v12  ;;  %v362_v17 = vld [vmem:[%s314_s17] sm:$0xff]  ;;  %382 = vperm.xlu1 %874, %v364_v18   ;;  %v363_v19 = vld [vmem:[%s314_s17 + $0x8] sm:$0xff]  ;;  %v365_v20 = vld [vmem:[%s314_s17 + $0x18] sm:$0xff]  ;;  %s324_s21 = scalar_lea.vmem %s1088_s5, %s793_s18  ;;  %s955_s30 = smov 127  }
  0x16   : > { %v348_v10 = vsel %vm339_vm1, %v334_v1, %v344_v5  ;;  %v349_v11 = vsel %vm340_vm2, %v335_v2, %v345_v6  ;;  %372 = vperm.xlu0 %873, %v362_v17   ;;  %v876_v21 = vld [vmem:[%s1037_s14 + $0x8] sm:$0xff]   ;;  %v877_v22 = vld [vmem:[%s1037_s14 + $0x10] sm:$0xff]   ;;  %v366_v23 = vld [vmem:[%s314_s17 + $0x20] sm:$0xff]  ;;  %s767_s7 = sshll.u32 %s1101_s24, 1 }
  0x17   : > { %v360_v13 = vpack.c.bf16 %v349_v11, %v348_v10  ;;  %v350_v14 = vsel %vm341_vm3, %v336_v4, %v346_v8  ;;  %v351_v15 = vsel %vm342_vm4, %v337_v7, %v347_v9  ;;  %v367_v24 = vld [vmem:[%s314_s17 + $0x28] sm:$0xff]  ;;  %v368_v25 = vld [vmem:[%s314_s17 + $0x30] sm:$0xff]  ;;  %v369_v26 = vld [vmem:[%s314_s17 + $0x38] sm:$0xff]  ;;  %s330_s8 = sadd.s32 %s767_s7, %s1103_s23 }
  0x18   : > { %v361_v16 = vpack.c.bf16 %v351_v15, %v350_v14  ;;  %v878_v27 = vld [vmem:[%s1037_s14 + $0x18] sm:$0xff]   ;;  %v558_v14 = vld [vmem:[%s324_s21 + $0x10] sm:$0xff]  ;;  %v556_v17 = vld [vmem:[%s324_s21] sm:$0xff]  ;;  %s768_s9 = sshll.u32 %s330_s8, 3 }
  0x19   : > { %805 = vmatprep.subr.bf16.mxu0 %v360_v13  ;;  %387 = vperm.xlu1 %874, %v365_v20   ;;  %v559_v15 = vld [vmem:[%s324_s21 + $0x18] sm:$0xff]  ;;  %v557_v18 = vld [vmem:[%s324_s21 + $0x8] sm:$0xff]  ;;  %s332_s12 = scalar_lea.vmem %s1089_s6, %s768_s9 }
  0x1a   : > { %806 = vmatpush3.bf16.msra.mxu0 %v360_v13  ;;  %377 = vperm.xlu0 %873, %v363_v19  }
  0x1b   : > { %807 = vmatprep.subr.bf16.mxu0 %v361_v16 }
  0x1d   : > { %397 = vperm.xlu1 %874, %v367_v24  }
  0x1e   : > { %808 = vmatpush3.bf16.msra.mxu0 %v361_v16  ;;  %392 = vperm.xlu0 %873, %v366_v23  }
  0x21   : > { %810 = vmatmul.mubr.msk.bf16.vlgmr.msra.gmra.mrb[0].mxu0 %vm430_vm0, %v876_v21  ;;  %407 = vperm.xlu1 %874, %v369_v26  }
  0x22   : > { %813 = vmatprep.mubr.msk.bf16.mxu0 %vm430_vm0, %v877_v22  ;;  %402 = vperm.xlu0 %873, %v368_v25  }
  0x29   : > { %814 = vmatmul.mubr.msk.bf16.gmra.mrb[4].mxu0 %vm430_vm0, %v878_v27 }
  0x94   : > { %v383_v30 = vpop.permute.xlu1 %382 }
  0x95   : > { %v373_v29 = vpop.permute.xlu0 %372 }
  0x98   : > { %v388_v32 = vpop.permute.xlu1 %387 }
  0x99   : > { %v378_v31 = vpop.permute.xlu0 %377 }
  0x9c   : > { %v398_v42 = vpop.permute.xlu1 %397 }
  0x9d   : > { %v393_v36 = vpop.permute.xlu0 %392 }
  0xa0   : > { %v408_v51 = vpop.permute.xlu1 %407 }
  0xa1   : > { %v403_v47 = vpop.permute.xlu0 %402 }
  0xf4   : > { %v811_v33 = vpop.f32.mrb[0].mxu0 }
  0xf5   : > { %v486_v34 = vadd.f32 %v811_v33, %v383_v30  ;;  %v477_v35 = vpop.f32.mrb[1].mxu0  ;;  %v563_v30 = vld [vmem:[%s324_s21 + $0x38] sm:$0xff]  ;;  %v561_v33 = vld [vmem:[%s324_s21 + $0x28] sm:$0xff] }
  0xf6   : > { %v478_v37 = vadd.f32 %v477_v35, %v373_v29  ;;  %v812_v38 = vpop.f32.mrb[2].mxu0  ;;  %v562_v29 = vld [vmem:[%s324_s21 + $0x30] sm:$0xff] }
  0xf7   : > { %v779_v39 = vmul.f32 -1.442695, %v486_v34  ;;  %v489_v40 = vadd.f32 %v812_v38, %v388_v32  ;;  %v480_v41 = vpop.f32.mrb[3].mxu0  ;;  %v560_v32 = vld [vmem:[%s324_s21 + $0x20] sm:$0xff] }
  0xf8   : > { %v777_v43 = vmul.f32 -1.442695, %v478_v37  ;;  %v481_v44 = vadd.f32 %v480_v41, %v378_v31 }
  0xf9   : > { %880 = vpow2.f32 %v779_v39  ;;  %v780_v45 = vmul.f32 -1.442695, %v489_v40 }
  0xfa   : > { %882 = vpow2.f32 %v777_v43  ;;  %v778_v46 = vmul.f32 -1.442695, %v481_v44 }
  0xfb   : > { %884 = vpow2.f32 %v780_v45 }
  0xfc   : > { %886 = vpow2.f32 %v778_v46  ;;  %v815_v48 = vpop.f32.mrb[4].mxu0 }
  0xfd   : > { %v502_v49 = vadd.f32 %v815_v48, %v403_v47  ;;  %v493_v50 = vpop.f32.mrb[5].mxu0  ;;  %v630_v47 = vlaneseq }
  0xfe   : > { %v494_v52 = vadd.f32 %v493_v50, %v393_v36  ;;  %v816_v53 = vpop.f32.mrb[6].mxu0 }
  0xff   : > { %v783_v54 = vmul.f32 -1.442695, %v502_v49  ;;  %v505_v55 = vadd.f32 %v816_v53, %v408_v51  ;;  %v496_v56 = vpop.f32.mrb[7].mxu0  ;;  %v631_v48 = vand.u32 127, %v630_v47 }
 0x100   : > { %v781_v57 = vmul.f32 -1.442695, %v494_v52  ;;  %v497_v58 = vadd.f32 %v496_v56, %v398_v42  ;;  %v879_v42 = vld [vmem:[%s1086_s3] sm:$0xff]  }
 0x101   : > { %888 = vpow2.f32 %v783_v54  ;;  %v784_v59 = vmul.f32 -1.442695, %v505_v55  ;;  %vm632_vm7 = vcmp.lt.s32.totalorder %v631_v48, 16 }
 0x102   : > { %890 = vpow2.f32 %v781_v57  ;;  %v782_v60 = vmul.f32 -1.442695, %v497_v58  ;;  %v787_v49 = vsel %vm632_vm7, 1.0, %v953_v28 }
 0x103   : > { %v881_v61 = vpop.eup %880  ;;  %892 = vpow2.f32 %v784_v59 }
 0x104   : > { %v883_v62 = vpop.eup %882  ;;  %v534_v63 = vadd.f32 1.0, %v881_v61  ;;  %894 = vpow2.f32 %v782_v60 }
 0x105   : > { %v885_v0 = vpop.eup %884  ;;  %v532_v1 = vadd.f32 1.0, %v883_v62 }
 0x106   : > { %v887_v2 = vpop.eup %886  ;;  %896 = vrcp.f32 %v534_v63  ;;  %v535_v3 = vadd.f32 1.0, %v885_v0 }
 0x107   : > { %898 = vrcp.f32 %v532_v1  ;;  %v533_v4 = vadd.f32 1.0, %v887_v2 }
 0x108   : > { %900 = vrcp.f32 %v535_v3 }
 0x109   : > { %902 = vrcp.f32 %v533_v4 }
 0x10b   : > { %v889_v5 = vpop.eup %888 }
 0x10c   : > { %v891_v6 = vpop.eup %890  ;;  %v538_v7 = vadd.f32 1.0, %v889_v5 }
 0x10d   : > { %v893_v8 = vpop.eup %892  ;;  %v536_v9 = vadd.f32 1.0, %v891_v6 }
 0x10e   : > { %v895_v10 = vpop.eup %894  ;;  %904 = vrcp.f32 %v538_v7  ;;  %v539_v11 = vadd.f32 1.0, %v893_v8 }
 0x10f   : > { %906 = vrcp.f32 %v536_v9  ;;  %v537_v12 = vadd.f32 1.0, %v895_v10 }
 0x110   : > { %v897_v13 = vpop.eup %896  ;;  %908 = vrcp.f32 %v539_v11 }
 0x111   : > { %v899_v16 = vpop.eup %898  ;;  %910 = vrcp.f32 %v537_v12  ;;  %v566_v21 = vmul.f32 %v897_v13, %v558_v14 }
 0x112   : > { %v901_v19 = vpop.eup %900  ;;  %v564_v23 = vmul.f32 %v899_v16, %v556_v17 }
 0x113   : > { %v903_v20 = vpop.eup %902  ;;  %v567_v22 = vmul.f32 %v901_v19, %v559_v15 }
 0x114   : > { %v565_v24 = vmul.f32 %v903_v20, %v557_v18 }
 0x115   : > { %v573_v25 = vpack.c.bf16 %v567_v22, %v566_v21 }
 0x116   : > { %v572_v26 = vpack.c.bf16 %v565_v24, %v564_v23 }
 0x118   : > { %v905_v27 = vpop.eup %904  ;;  %818 = vmatpush3.bf16.msra.mxu1 %v572_v26 }
 0x119   : > { %v907_v31 = vpop.eup %906  ;;  %819 = vmatprep.subr.bf16.mxu1 %v953_v28  ;;  %v570_v36 = vmul.f32 %v905_v27, %v562_v29 }
 0x11a   : > { %v909_v34 = vpop.eup %908  ;;  %v568_v38 = vmul.f32 %v907_v31, %v560_v32 }
 0x11b   : > { %v911_v35 = vpop.eup %910  ;;  %v571_v37 = vmul.f32 %v909_v34, %v563_v30 }
 0x11c   : > { %820 = vmatpush3.bf16.msra.mxu1 %v573_v25  ;;  %v569_v39 = vmul.f32 %v911_v35, %v561_v33 }
 0x11d   : > { %821 = vmatprep.subr.bf16.mxu1 %v953_v28  ;;  %v575_v40 = vpack.c.bf16 %v571_v37, %v570_v36 }
 0x11e   : > { %v574_v41 = vpack.c.bf16 %v569_v39, %v568_v38 }
 0x120   : > { %822 = vmatpush3.bf16.msra.mxu1 %v574_v41 }
 0x121   : > { %823 = vmatprep.subr.bf16.mxu1 %v953_v28 }
 0x124   : > { %824 = vmatpush3.bf16.msra.mxu1 %v575_v40 }
 0x127   : > { %826 = vmatmul.mubr.msk.bf16.vlgmr.msra.gmra.mrb[0].mxu1 %vm583_vm6, %v879_v42 }
 0x1fa   : > { %v621_v43 = vpop.f32.mrb[0].mxu1 }
 0x1fb   : > { %628 = vrot.lane.b32.xlu0 %v621_v43, %s955_s30  ;;  %v827_v44 = vpop.f32.mrb[1].mxu1 }
 0x1fc   : > { %v624_v45 = vpop.f32.mrb[2].mxu1 }
 0x1fd   : > { %v828_v46 = vpop.f32.mrb[3].mxu1 }
 0x26d   : > { %v629_v50 = vpop.permute.xlu0 %628 }
 0x26e   : > { %v635_v51 = vadd.f32 %v629_v50, %v624_v45 }
 0x270   : > { %v636_v52 = vmul.f32 %v787_v49, %v635_v51 }
 0x272   : > { %637 = vst [vmem:[%s332_s12] sm:$0xff] %v636_v52 }
 0x273 PF: > { %s17_s27 = sadd.s32 1, %s950_s27   ;;  %s1090_s23 = smov %s942_s25 }
 0x274   : > { %p14_p7 = scmp.ge.s32.totalorder %s17_s27, 6   ;;  %s1091_s24 = smov %s946_s26 }
 0x275   : > { %s1092_s25 = smov %s1095_s0  ;;  %s1093_s26 = smov %s1099_s28 }
 0x276   :  { %16 = sbr.rel (!%p14_p7) target bundleno = 3 (0x3), region = 83 }

// kernel: conv_tasnet_forward.4
= control target key start
LH: loop header
LB: loop body
LE: loop exit
PB: predicated region body
PF: predicated region fallthrough
CT: control target
= control target key end

     0   :  { %s3275_s0 = inlined_call_operand.vmem [shape: f32[6,2], index: 0, kind: input, shape index: {}]   ;;  %s3276_s1 = inlined_call_operand.vmem [shape: bf16[6,64,32], index: 1, kind: input, shape index: {}]   ;;  %s3277_s2 = inlined_call_operand.vmem [shape: f32[6,64,1], index: 2, kind: input, shape index: {}]   ;;  %s3278_s3 = inlined_call_operand.vmem [shape: f32[6,64,1], index: 3, kind: input, shape index: {}]   ;;  %s3279_s4 = inlined_call_operand.vmem [shape: f32[6,64,1], index: 4, kind: input, shape index: {}]   ;;  %s3280_s5 = inlined_call_operand.vmem [shape: f32[6,64,3], index: 5, kind: input, shape index: {}]   ;;  %s3281_s6 = inlined_call_operand.vmem [shape: f32[6,64,1], index: 6, kind: input, shape index: {}]   ;;  %s3282_s7 = inlined_call_operand.vmem [shape: f32[6,64,1], index: 7, kind: input, shape index: {}]   ;;  %s3283_s8 = inlined_call_operand.vmem [shape: f32[6,64,1], index: 8, kind: input, shape index: {}]   ;;  %s3284_s9 = inlined_call_operand.vmem [shape: bf16[6,64,64], index: 9, kind: input, shape index: {}]   ;;  %s3285_s10 = inlined_call_operand.vmem [shape: f32[6,64,1], index: 10, kind: input, shape index: {}]   ;;  %s3286_s11 = inlined_call_operand.vmem [shape: f32[2,32,128], index: 11, kind: input, shape index: {}]   ;;  %s3287_s12 = inlined_call_operand.vmem [shape: f32[2,32,128], index: 12, kind: output, shape index: {}]  }
   0x1   :  { %3296 = sst [smem:[#allocation22_spill]] %s3275_s0 }
   0x2   :  { %3297 = sst [smem:[#allocation23_spill]] %s3276_s1 }
   0x3   :  { %3298 = sst [smem:[#allocation24_spill]] %s3277_s2 }
   0x4   :  { %3299 = sst [smem:[#allocation25_spill]] %s3278_s3 }
   0x5   :  { %3300 = sst [smem:[#allocation26_spill]] %s3279_s4 }
   0x6   :  { %3301 = sst [smem:[#allocation27_spill]] %s3280_s5 }
   0x7   :  { %3302 = sst [smem:[#allocation28_spill]] %s3281_s6 }
   0x8   :  { %3303 = sst [smem:[#allocation29_spill]] %s3282_s7 }
   0x9   :  { %17 = vsyncpa [#allocation4], 0  ;;  %s2482_s21 = smov 0   ;;  %s2484_s22 = smov 0  }
   0xa   :  { %s2486_s23 = smov 0   ;;  %s2488_s24 = smov 0  }
   0xb   :  { %s2490_s25 = smov 0  }
   0xc LB: > { %3304 = sst [smem:[#allocation6_spill]] %s2395_s23  ;;  %s2122_s26 = sadd.s32 4294967295, %s2403_s25   ;;  %s2403_s25 = sphi %s2490_s25, %s23_s25   ;;  %s2399_s24 = sphi %s2488_s24, %s3346_s24   ;;  %s2395_s23 = sphi %s2486_s23, %s3345_s23   ;;  %s2391_s22 = sphi %s2484_s22, %s3344_s22   ;;  %s2387_s21 = sphi %s2482_s21, %s3343_s21  }
   0xd   : > { %3305 = sst [smem:[#allocation7_spill]] %s2399_s24  ;;  %s32_s27 = sadd.s32 1, %s2395_s23 }
   0xe   : > { %3306 = sst [smem:[#allocation8_spill]] %s2403_s25  ;;  %p33_p0 = scmp.ge.s32.totalorder %s32_s27, 6 }
   0xf   : > { %s35_s28 = sadd.s32 1, %s2399_s24  ;;  %p2124_p1 = scmp.ge.s32.totalorder %s2403_s25, 1 }
  0x10   : > { %p373_p2 = scmp.lt.s32.totalorder %s2403_s25, 13  ;;  %s3348_s27 = smov (%p33_p0, %s32_s27), 0 }
  0x11   : > { %3307 = sst [smem:[#allocation9_spill]] %s3348_s27  ;;  %s3350_s28 = smov (!%p33_p0, %s35_s28), %s2399_s24 }
  0x12   : > { %p2515_p3 = pnand %p2124_p1, %p373_p2  ;;  %p37_p4 = scmp.ge.s32.totalorder %s3350_s28, 2 }
  0x13   : > { %p2519_p5 = scmp.eq.s32.totalorder %s2122_s26, 0  ;;  %s3310_s0 = sld [smem:[#allocation22_spill]] }
  0x14   : > { %p2249_p6 = pneg %p2515_p3  ;;  %s3352_s28 = smov (%p37_p4, %s3350_s28), 0 }
  0x15   : > { %3311 = sst [smem:[#allocation10_spill]] %s3352_s28 }
  0x16   : > { %p2250_p7 = pnand %p2519_p5, %p2249_p6 }
  0x18   : > { %p2348_p9 = pneg %p2250_p7 }
  0x19   : > { %s386_s15 = sshll.u32 %s3310_s0, 4  ;;  %s387_s15 = int_to_ptr.vmem [resolvable:$true] %s386_s15 }
  0x1a   : > { %s2346_s16 = scalar_lea.vmem %s387_s15, 128  ;;  %p2354_p12 = scmp.lt.s32.totalorder %s387_s15, %s387_s15 }
  0x1b   : > { %p2347_p8 = scmp.ne.s32.totalorder %s387_s15, %s2346_s16  ;;  %p2355_p13 = scmp.lt.s32.totalorder %s2346_s16, %s2346_s16 }
  0x1d   : > { %p2349_p10 = pnand %p2348_p9, %p2347_p8  ;;  %p2356_p0 = por %p2355_p13, %p2354_p12 }
  0x1f   : > { %p2350_p11 = pneg %p2349_p10 }
  0x21   : > { %p2357_p1 = pnand %p2356_p0, %p2350_p11 }
  0x23   : > { %2360 = shalt.err (!%p2357_p1)
}
  0x24   : > { %s2405_s17 = smov [#allocation3]   ;;  %487 = sbr.rel (%p2515_p3) target bundleno = 1265 (0x4f1), region = 68 }
  0x25   : > { %2252 = dma.vmem_to_smem (!%p2250_p7), %s387_s15, 128, %s2405_s17, [#allocation4]  }
  0x2b   : > { %2382 = dma.done.wait (%p2519_p5), [#allocation4], 128  }
  0x2c   : > { %2384 = vsyncadd (%p2519_p5), [#allocation4], 4294967168 }
  0x2d   : > { %493 = sfence }
  0x2e   : > { %p580_p2 = scmp.lt.s32.totalorder %s2387_s21, 5  ;;  %p630_p4 = scmp.lt.s32.totalorder %s2391_s22, 1  ;;  %v641_v0 = vlaneseq  ;;  %v3291_v2 = vmov 0.0  }
  0x2f   : > { %s3312_s1 = sld [smem:[#allocation23_spill]]  ;;  %s3313_s2 = sld [smem:[#allocation24_spill]] }
  0x30   : > { %s581_s18 = scalar_select %p580_p2, %s2387_s21, 5  ;;  %v2541_v1 = vand.u32 127, %v641_v0 }
  0x31   : > { %s3354_s22 = smov (!%p630_p4, %s2391_s22), 1  ;;  %s3315_s3 = sld [smem:[#allocation25_spill]] }
  0x32   : > { %s2183_s19 = sshll.u32 %s581_s18, 5  ;;  %s2184_s20 = sshll.u32 %s581_s18, 6  ;;  %vm643_vm0 = vcmp.lt.s32.totalorder %v2541_v1, 17 }
  0x33   : > { %v2556_v3 = vsel %vm643_vm0, 1.0, %v3291_v2  ;;  %s3316_s4 = sld [smem:[#allocation26_spill]]  ;;  %s3317_s5 = sld [smem:[#allocation27_spill]] }
  0x34   : > { %3314 = vst [vmem:[#allocation11_spill] sm:$0xff] %v2556_v3  ;;  %s3318_s6 = sld [smem:[#allocation28_spill]]  ;;  %s3319_s7 = sld [smem:[#allocation29_spill]] }
  0x35   : > { %s2548_s30 = scalar_lea.vmem %s3312_s1, %s2183_s19  ;;  %s2553_s15 = scalar_lea.vmem %s3313_s2, %s2184_s20 }
  0x36   : > { %s2586_s0 = scalar_lea.vmem %s3283_s8, %s2184_s20  ;;  %s2591_s1 = scalar_lea.vmem %s3284_s9, %s2183_s19 }
  0x37   : > { %s2561_s18 = scalar_lea.vmem %s3315_s3, %s2184_s20  ;;  %s2596_s2 = scalar_lea.vmem %s3285_s10, %s2184_s20 }
  0x38   : > { %s2193_s14 = sshll.u32 %s3354_s22, 5  ;;  %p2154_p3 = scmp.ne.s32.totalorder %s2387_s21, 0 }
  0x39   : > { %s2566_s26 = scalar_lea.vmem %s3316_s4, %s2184_s20  ;;  %s2571_s13 = scalar_lea.vmem %s3317_s5, %s2184_s20  ;;  %v2407_v8 = vmov (!%p2154_p3), 0.0  }
  0x3a   : > { %s2576_s27 = scalar_lea.vmem %s3318_s6, %s2184_s20  ;;  %s2581_s16 = scalar_lea.vmem %s3319_s7, %s2184_s20 }
  0x3b   : > { %s634_s24 = scalar_lea.vmem %s3286_s11, %s2193_s14  ;;  %s2604_s3 = scalar_lea.vmem %s3287_s12, %s2193_s14 }
  0x3c   : > { %649 = sbr.rel (%p2154_p3) target bundleno = 67 (0x43), region = 76  ;;  %v650_v4 = vld [vmem:[%s634_s24] sm:$0xff] (!%p2154_p3)  ;;  %v651_v5 = vld [vmem:[%s634_s24 + $0x8] sm:$0xff] (!%p2154_p3)  ;;  %v652_v6 = vld [vmem:[%s634_s24 + $0x10] sm:$0xff] (!%p2154_p3)  ;;  %658 = vst [vmem:[%s2604_s3] sm:$0xff] (!%p2154_p3), %v2407_v8 }
  0x3d   : > { %654 = vst [vmem:[#allocation2] sm:$0xff] (!%p2154_p3), %v650_v4  ;;  %655 = vst [vmem:[#allocation2 + $0x8] sm:$0xff] (!%p2154_p3), %v651_v5  ;;  %v653_v7 = vld [vmem:[%s634_s24 + $0x18] sm:$0xff] (!%p2154_p3) }
  0x3e   : > { %656 = vst [vmem:[#allocation2 + $0x10] sm:$0xff] (!%p2154_p3), %v652_v6  ;;  %659 = vst [vmem:[%s2604_s3 + $0x8] sm:$0xff] (!%p2154_p3), %v2407_v8 }
  0x3f   : > { %660 = vst [vmem:[%s2604_s3 + $0x10] sm:$0xff] (!%p2154_p3), %v2407_v8  ;;  %661 = vst [vmem:[%s2604_s3 + $0x18] sm:$0xff] (!%p2154_p3), %v2407_v8 }
  0x40   : > { %657 = vst [vmem:[#allocation2 + $0x18] sm:$0xff] (!%p2154_p3), %v653_v7 }
  0x43 PF: > { %vm748_vm1 = vcmask 261120   ;;  %v2408_v14 = vmov 0   ;;  %v2328_v16 = vld [vmem:[%s2548_s30] sm:$0xff]   ;;  %v682_v17 = vld [vmem:[%s2553_s15 + $0x10] sm:$0xff]  ;;  %v2329_v18 = vld [vmem:[%s2548_s30 + $0x8] sm:$0xff]   ;;  %v2409_v31 = vmov 1  }
  0x44   : > { %v662_v9 = vld [vmem:[#allocation2] sm:$0xff]  ;;  %v663_v10 = vld [vmem:[#allocation2 + $0x8] sm:$0xff]  ;;  %2309 = vset.pattern.permute.xlu1 %v2408_v14  ;;  %2308 = vset.pattern.permute.xlu0 %v2408_v14  ;;  %v683_v19 = vld [vmem:[%s2553_s15 + $0x18] sm:$0xff]  ;;  %v2410_v42 = vmov 2   ;;  %s2155_s4 = sshll.u32 %s2387_s21, 7  ;;  %s1037_s6 = ssub.s32 0, %s2387_s21 }
  0x45   : > { %v664_v11 = vld [vmem:[#allocation2 + $0x10] sm:$0xff]  ;;  %v678_v12 = vpack.c.bf16 %v663_v10, %v662_v9  ;;  %2213 = vmatprep.mubr.msk.bf16.mxu0 %vm748_vm1, %v2328_v16  ;;  %700 = vperm.xlu1 %2309, %v682_v17   ;;  %v680_v21 = vld [vmem:[%s2553_s15] sm:$0xff]  ;;  %v685_v22 = vld [vmem:[%s2553_s15 + $0x28] sm:$0xff]  ;;  %s667_s5 = sld [smem:[#allocation3 + %s2155_s4]]  ;;  %s2164_s7 = smin.u32 %s2387_s21, %s1037_s6  ;;  %vm1052_vm10 = vcmp.ge.s32.totalorder %v2541_v1, 1  ;;  %vm1142_vm11 = vcmp.ge.s32.totalorder %v2541_v1, 2 }
  0x46   : > { %v2330_v20 = vld [vmem:[%s2548_s30 + $0x10] sm:$0xff]   ;;  %690 = vperm.xlu0 %2308, %v680_v21   ;;  %v681_v23 = vld [vmem:[%s2553_s15 + $0x8] sm:$0xff]  ;;  %v684_v24 = vld [vmem:[%s2553_s15 + $0x20] sm:$0xff]  ;;  %2336 = sdivrem.u32 %s2164_s7, 3  ;;  %s2411_s19 = smov 1   ;;  %vm1055_vm12 = vcmp.lt.s32.totalorder %v2541_v1, 16 }
  0x47   : > { %v665_v13 = vld [vmem:[#allocation2 + $0x18] sm:$0xff]  ;;  %2209 = vmatprep.subr.bf16.mxu0 %v678_v12  ;;  %v686_v27 = vld [vmem:[%s2553_s15 + $0x30] sm:$0xff]  ;;  %v852_v28 = vld [vmem:[%s2561_s18 + $0x8] sm:$0xff]  ;;  %s2412_s20 = smov 2   ;;  %p1036_p5 = scmp.lt.s32.totalorder %s2387_s21, 0  ;;  %vm1145_vm13 = vcmp.lt.s32.totalorder %v2541_v1, 15 }
  0x48   : > { %v679_v15 = vpack.c.bf16 %v665_v13, %v664_v11  ;;  %2210 = vmatpush3.bf16.msra.mxu0 %v678_v12  ;;  %v2331_v25 = vld [vmem:[%s2548_s30 + $0x18] sm:$0xff]   ;;  %v859_v29 = vld [vmem:[%s2566_s26] sm:$0xff]  ;;  %v1321_v33 = vld [vmem:[%s2571_s13 + $0x10] sm:$0xff]  ;;  %s2413_s30 = smov 127   ;;  %vm1232_vm14 = vcmp.ge.s32.totalorder %v2541_v1, 4  ;;  %vm1235_vm15 = vcmp.lt.s32.totalorder %v2541_v1, 13 }
  0x49   : > { %705 = vperm.xlu1 %2309, %v683_v19   ;;  %v687_v26 = vld [vmem:[%s2553_s15 + $0x38] sm:$0xff]  ;;  %v2632_v30 = vld [vmem:[%s2571_s13] sm:$0xff]  ;;  %v856_v36 = vld [vmem:[%s2561_s18 + $0x28] sm:$0xff]  ;;  %s2414_s15 = smov 126   ;;  %s668_s6 = sadd.s32 1, %s2155_s4 }
  0x4a   : > { %2211 = vmatprep.subr.bf16.mxu0 %v679_v15  ;;  %695 = vperm.xlu0 %2308, %v681_v23   ;;  %v854_v32 = vld [vmem:[%s2561_s18 + $0x18] sm:$0xff]  ;;  %v855_v34 = vld [vmem:[%s2561_s18 + $0x20] sm:$0xff]  ;;  %v857_v38 = vld [vmem:[%s2561_s18 + $0x30] sm:$0xff]  ;;  %s3080_s21 = sld [smem:[#allocation3 + %s668_s6]] }
  0x4b   : > { %v2640_v35 = vld [vmem:[%s2571_s13 + $0x18] sm:$0xff]  ;;  %v2645_v37 = vld [vmem:[%s2571_s13 + $0x20] sm:$0xff]  ;;  %v2652_v41 = vld [vmem:[%s2571_s13 + $0x8] sm:$0xff]  ;;  %v834_v48 = vstv %s667_s5 }
  0x4c   : > { %2212 = vmatpush3.bf16.msra.mxu0 %v679_v15  ;;  %v858_v39 = vld [vmem:[%s2561_s18 + $0x38] sm:$0xff] }
  0x4d   : > { %715 = vperm.xlu1 %2309, %v685_v22   ;;  %v866_v40 = vld [vmem:[%s2566_s26 + $0x38] sm:$0xff] }
  0x4e   : > { %710 = vperm.xlu0 %2308, %v684_v24  }
  0x4f   : > { %2214 = vmatmul.mubr.msk.bf16.vlgmr.msra.gmra.mrb[0].mxu0 %vm748_vm1, %v2329_v18 }
  0x50   : > { %2217 = vmatprep.mubr.msk.bf16.mxu0 %vm748_vm1, %v2330_v20 }
  0x51   : > { %725 = vperm.xlu1 %2309, %v687_v26  }
  0x52   : > { %720 = vperm.xlu0 %2308, %v686_v27  }
  0x55   : > { %947 = vperm.xlu1 %2309, %v852_v28  }
  0x56   : > { %2310 = vset.pattern.permute.xlu0 %v2409_v31 }
  0x57   : > { %2218 = vmatmul.mubr.msk.bf16.gmra.mrb[4].mxu0 %vm748_vm1, %v2331_v25  ;;  %1376 = vperm.xlu0 %2310, %v2632_v30  }
  0x59   : > { %990 = vperm.xlu1 %2309, %v859_v29  }
  0x5b   : > { %1384 = vperm.xlu0 %2310, %v1321_v33  }
  0x5d   : > { %957 = vperm.xlu1 %2309, %v854_v32  }
  0x5f   : > { %1388 = vperm.xlu0 %2310, %v2640_v35  }
  0x61   : > { %962 = vperm.xlu1 %2309, %v855_v34  }
  0x63   : > { %1392 = vperm.xlu0 %2310, %v2645_v37  }
  0x65   : > { %967 = vperm.xlu1 %2309, %v856_v36  }
  0x69   : > { %972 = vperm.xlu1 %2309, %v857_v38  }
  0x6d   : > { %977 = vperm.xlu1 %2309, %v858_v39  }
  0x71   : > { %1025 = vperm.xlu1 %2309, %v866_v40  }
  0x75   : > { %1334 = vperm.xlu1 %2309, %v2652_v41  }
  0x79   : > { %2311 = vset.pattern.permute.xlu1 %v2409_v31 }
  0x7a   : > { %1380 = vperm.xlu1 %2311, %v2652_v41  }
  0x7e   : > { %2312 = vset.pattern.permute.xlu1 %v2408_v14 }
  0x7f   : > { %1339 = vperm.xlu1 %2312, %v1321_v33  }
  0x83   : > { %2313 = vset.pattern.permute.xlu1 %v2410_v42 }
  0x84   : > { %1424 = vperm.xlu1 %2313, %v2632_v30  }
  0x88   : > { %2314 = vset.pattern.permute.xlu1 %v2408_v14 }
  0x89   : > { %1344 = vperm.xlu1 %2314, %v2640_v35  }
  0x8d   : > { %2315 = vset.pattern.permute.xlu1 %v2410_v42 }
  0x8e   : > { %1432 = vperm.xlu1 %2315, %v1321_v33  }
  0x92   : > { %2316 = vset.pattern.permute.xlu1 %v2408_v14 }
  0x93   : > { %1349 = vperm.xlu1 %2316, %v2645_v37  }
  0x97   : > { %2317 = vset.pattern.permute.xlu1 %v2410_v42 }
  0xc4   : > { %v701_v44 = vpop.permute.xlu1 %700 }
  0xc5   : > { %v691_v43 = vpop.permute.xlu0 %690 }
  0xc8   : > { %v706_v46 = vpop.permute.xlu1 %705 }
  0xc9   : > { %v696_v45 = vpop.permute.xlu0 %695 }
  0xcc   : > { %v716_v59 = vpop.permute.xlu1 %715 }
  0xcd   : > { %v711_v51 = vpop.permute.xlu0 %710 }
  0xd0   : > { %v726_v17 = vpop.permute.xlu1 %725 }
  0xd1   : > { %v721_v5 = vpop.permute.xlu0 %720 }
 0x122   : > { %v2215_v47 = vpop.f32.mrb[0].mxu0 }
 0x123   : > { %v804_v49 = vadd.f32 %v2215_v47, %v701_v44  ;;  %v795_v50 = vpop.f32.mrb[1].mxu0 }
 0x124   : > { %v796_v52 = vadd.f32 %v795_v50, %v691_v43  ;;  %v2216_v53 = vpop.f32.mrb[2].mxu0 }
 0x125   : > { %vm828_vm2 = vcmp.ge.f32.partialorder %v804_v49, 0.0  ;;  %v837_v54 = vmul.f32 %v834_v48, %v804_v49  ;;  %v807_v55 = vadd.f32 %v2216_v53, %v706_v46  ;;  %v798_v56 = vpop.f32.mrb[3].mxu0 }
 0x126   : > { %vm826_vm3 = vcmp.ge.f32.partialorder %v796_v52, 0.0  ;;  %v835_v57 = vmul.f32 %v834_v48, %v796_v52  ;;  %v799_v58 = vadd.f32 %v798_v56, %v696_v45 }
 0x127   : > { %vm829_vm4 = vcmp.ge.f32.partialorder %v807_v55, 0.0  ;;  %v838_v60 = vmul.f32 %v834_v48, %v807_v55  ;;  %v2669_v61 = vsel %vm828_vm2, %v804_v49, %v837_v54 }
 0x128   : > { %v2671_v62 = vsel %vm826_vm3, %v796_v52, %v835_v57  ;;  %vm827_vm5 = vcmp.ge.f32.partialorder %v799_v58, 0.0  ;;  %v836_v63 = vmul.f32 %v834_v48, %v799_v58  ;;  %v869_v8 = vmul.f32 %v2556_v3, %v2669_v61 }
 0x129   : > { %v867_v0 = vmul.f32 %v2556_v3, %v2671_v62  ;;  %v2675_v4 = vsel %vm829_vm4, %v807_v55, %v838_v60  ;;  %v1324_v60 = vld [vmem:[%s2571_s13 + $0x28] sm:$0xff] }
 0x12a   : > { %v2677_v6 = vsel %vm827_vm5, %v799_v58, %v836_v63  ;;  %v2219_v7 = vpop.f32.mrb[4].mxu0  ;;  %v870_v13 = vmul.f32 %v2556_v3, %v2675_v4  ;;  %v895_v25 = vmul.f32 %v869_v8, %v869_v8  ;;  %v1472_v63 = vld [vmem:[%s2576_s27 + $0x8] sm:$0xff] }
 0x12b   : > { %v868_v9 = vmul.f32 %v2556_v3, %v2677_v6  ;;  %v820_v10 = vadd.f32 %v2219_v7, %v721_v5  ;;  %v811_v11 = vpop.f32.mrb[5].mxu0  ;;  %v893_v12 = vmul.f32 %v867_v0, %v867_v0  ;;  %v851_v5 = vld [vmem:[%s2561_s18] sm:$0xff]  ;;  %v853_v7 = vld [vmem:[%s2561_s18 + $0x10] sm:$0xff]  ;;  %s2415_s18 = smov 4  }
 0x12c   : > { %v812_v15 = vadd.f32 %v811_v11, %v711_v51  ;;  %v2220_v16 = vpop.f32.mrb[6].mxu0  ;;  %v896_v38 = vmul.f32 %v870_v13, %v870_v13  ;;  %v864_v11 = vld [vmem:[%s2566_s26 + $0x28] sm:$0xff] }
 0x12d   : > { %v875_v18 = vadd.f32 %v868_v9, %v867_v0  ;;  %v894_v19 = vmul.f32 %v868_v9, %v868_v9  ;;  %vm832_vm6 = vcmp.ge.f32.partialorder %v820_v10, 0.0  ;;  %v841_v20 = vmul.f32 %v834_v48, %v820_v10  ;;  %v814_v21 = vpop.f32.mrb[7].mxu0  ;;  %v1326_v0 = vld [vmem:[%s2571_s13 + $0x38] sm:$0xff] }
 0x12e   : > { %vm830_vm7 = vcmp.ge.f32.partialorder %v812_v15, 0.0  ;;  %v839_v22 = vmul.f32 %v834_v48, %v812_v15  ;;  %v823_v23 = vadd.f32 %v2220_v16, %v726_v17  ;;  %v815_v24 = vadd.f32 %v814_v21, %v716_v59  ;;  %v862_v9 = vld [vmem:[%s2566_s26 + $0x18] sm:$0xff]  ;;  %v1471_v16 = vld [vmem:[%s2576_s27] sm:$0xff] }
 0x12f   : > { %v876_v26 = vadd.f32 %v875_v18, %v869_v8  ;;  %v901_v27 = vadd.f32 %v894_v19, %v893_v12  ;;  %v2687_v32 = vsel %vm832_vm6, %v820_v10, %v841_v20  ;;  %v1325_v8 = vld [vmem:[%s2571_s13 + $0x30] sm:$0xff]  ;;  %v2722_v10 = vpop.permute.xlu1 %947  ;;  %v1474_v18 = vld [vmem:[%s2576_s27 + $0x18] sm:$0xff]  ;;  %v1475_v19 = vld [vmem:[%s2576_s27 + $0x20] sm:$0xff]  ;;  %s2337_s13 = spop.drf %2336 }
 0x130   : > { %v2685_v28 = vsel %vm830_vm7, %v812_v15, %v839_v22  ;;  %vm833_vm8 = vcmp.ge.f32.partialorder %v823_v23, 0.0  ;;  %v842_v29 = vmul.f32 %v834_v48, %v823_v23  ;;  %vm831_vm9 = vcmp.ge.f32.partialorder %v815_v24, 0.0  ;;  %v1476_v20 = vld [vmem:[%s2576_s27 + $0x28] sm:$0xff]  ;;  %s1041_s17 = ssub.s32 0, %s2337_s13 }
 0x131   : > { %v871_v33 = vmul.f32 %v2556_v3, %v2685_v28  ;;  %v840_v34 = vmul.f32 %v834_v48, %v815_v24  ;;  %v877_v36 = vadd.f32 %v876_v26, %v870_v13  ;;  %v902_v39 = vadd.f32 %v901_v27, %v895_v25  ;;  %v865_v13 = vld [vmem:[%s2566_s26 + $0x30] sm:$0xff]  ;;  %v2754_v25 = vpop.permute.xlu0 %1376  ;;  %s3356_s17 = smov (!%p1036_p5, %s1041_s17), %s2337_s13 }
 0x132   : > { %v2693_v44 = vsel %vm833_vm8, %v823_v23, %v842_v29  ;;  %v873_v47 = vmul.f32 %v2556_v3, %v2687_v32  ;;  %p2166_p6 = scmp.lt.s32.totalorder %s3356_s17, 0  ;;  %s1047_s28 = sadd.s32 3, %s3356_s17  ;;  %vm1817_vm8 = vcmask 523264  }
 0x133   : > { %v897_v40 = vmul.f32 %v871_v33, %v871_v33  ;;  %v2691_v43 = vsel %vm831_vm9, %v815_v24, %v840_v34  ;;  %v878_v45 = vadd.f32 %v877_v36, %v871_v33  ;;  %v903_v49 = vadd.f32 %v902_v39, %v896_v38  ;;  %v2728_v12 = vpop.permute.xlu1 %990 }
 0x134   : > { %v872_v46 = vmul.f32 %v2556_v3, %v2691_v43  ;;  %v874_v48 = vmul.f32 %v2556_v3, %v2693_v44  ;;  %v899_v54 = vmul.f32 %v873_v47, %v873_v47  ;;  %s3358_s28 = smov (!%p2166_p6, %s1047_s28), %s3356_s17 }
 0x135   : > { %v904_v52 = vadd.f32 %v903_v49, %v897_v40  ;;  %v2758_v27 = vpop.permute.xlu0 %1384  ;;  %p1049_p7 = scmp.eq.s32.totalorder %s3358_s28, 0  ;;  %p1139_p8 = scmp.eq.s32.totalorder %s3358_s28, 1 }
 0x136   : > { %v879_v50 = vadd.f32 %v878_v45, %v872_v46  ;;  %v898_v51 = vmul.f32 %v872_v46, %v872_v46  ;;  %v900_v57 = vmul.f32 %v874_v48, %v874_v48  ;;  %p1229_p9 = scmp.eq.s32.totalorder %s3358_s28, 2 }
 0x137   : > { %v2731_v15 = vpop.permute.xlu1 %957  ;;  %s1050_s29 = scalar_select %p1049_p7, 1, 0 }
 0x138   : > { %v880_v53 = vadd.f32 %v879_v50, %v873_v47  ;;  %v905_v55 = vadd.f32 %v904_v52, %v898_v51  ;;  %s1230_s24 = scalar_select %p1229_p9, 1, 0 }
 0x139   : > { %v2762_v33 = vpop.permute.xlu0 %1388  ;;  %s1051_s14 = scvt.s32.f32 %s1050_s29 }
 0x13a   : > { %v881_v56 = vadd.f32 %v880_v53, %v874_v48  ;;  %v906_v58 = vadd.f32 %v905_v55, %v899_v54  ;;  %s1231_s5 = scvt.s32.f32 %s1230_s24 }
 0x13b   : > { %v2735_v17 = vpop.permute.xlu1 %962 }
 0x13c   : > { %882 = vadd.xlane.f32.xlu0 %v881_v56  ;;  %v907_v59 = vadd.f32 %v906_v58, %v900_v57 }
 0x13d   : > { %v2766_v36 = vpop.permute.xlu0 %1392 }
 0x13e   : > { %908 = vadd.xlane.f32.xlu1 %v907_v59 }
 0x14f   : > { %1436 = vperm.xlu1 %2317, %v2640_v35   ;;  %v1473_v35 = vld [vmem:[%s2576_s27 + $0x10] sm:$0xff] }
 0x152   : > { %1396 = vperm.xlu0 %2310, %v1324_v60  }
 0x153   : > { %2318 = vset.pattern.permute.xlu1 %v2408_v14 }
 0x154   : > { %1486 = vperm.xlu1 %2318, %v1472_v63  }
 0x156   : > { %1404 = vperm.xlu0 %2310, %v1326_v0  }
 0x158   : > { %1354 = vperm.xlu1 %2318, %v1324_v60  }
 0x15a   : > { %2324 = vset.pattern.permute.xlu0 %v2410_v42 }
 0x15b   : > { %1428 = vperm.xlu0 %2324, %v2652_v41   ;;  %v861_v41 = vld [vmem:[%s2566_s26 + $0x10] sm:$0xff] }
 0x15c   : > { %2319 = vset.pattern.permute.xlu1 %v2410_v42 }
 0x15d   : > { %1440 = vperm.xlu1 %2319, %v2645_v37   ;;  %v860_v37 = vld [vmem:[%s2566_s26 + $0x8] sm:$0xff] }
 0x15f   : > { %1452 = vperm.xlu0 %2324, %v1326_v0  }
 0x161   : > { %2320 = vset.pattern.permute.xlu1 %v2408_v14 }
 0x162   : > { %1491 = vperm.xlu1 %2320, %v1473_v35  }
 0x163   : > { %2327 = vset.pattern.permute.xlu0 %v2408_v14 }
 0x164   : > { %942 = vperm.xlu0 %2327, %v851_v5  }
 0x166   : > { %2321 = vset.pattern.permute.xlu1 %v2409_v31  ;;  %v863_v31 = vld [vmem:[%s2566_s26 + $0x20] sm:$0xff]  ;;  %s2416_s26 = smov 124  }
 0x167   : > { %1400 = vperm.xlu1 %2321, %v1325_v8  }
 0x168   : > { %952 = vperm.xlu0 %2327, %v853_v7  }
 0x16b   : > { %2322 = vset.pattern.permute.xlu1 %v2410_v42 }
 0x16c   : > { %995 = vperm.xlu0 %2327, %v860_v37   ;;  %1444 = vperm.xlu1 %2322, %v1324_v60  }
 0x170   : > { %1000 = vperm.xlu0 %2327, %v861_v41   ;;  %2323 = vset.pattern.permute.xlu1 %v2408_v14 }
 0x171   : > { %1364 = vperm.xlu1 %2323, %v1326_v0  }
 0x174   : > { %1005 = vperm.xlu0 %2327, %v862_v9  }
 0x175   : > { %2325 = vset.pattern.permute.xlu1 %v2410_v42  ;;  %v2737_v42 = vpop.permute.xlu1 %967 }
 0x176   : > { %1448 = vperm.xlu1 %2325, %v1325_v8  }
 0x178   : > { %1010 = vperm.xlu0 %2327, %v863_v31  }
 0x17a   : > { %2326 = vset.pattern.permute.xlu1 %v2408_v14  ;;  %v2741_v14 = vpop.permute.xlu1 %972 }
 0x17b   : > { %1501 = vperm.xlu1 %2326, %v1475_v19  }
 0x17c   : > { %1015 = vperm.xlu0 %2327, %v864_v11  }
 0x17e   : > { %v2744_v21 = vpop.permute.xlu1 %977 }
 0x17f   : > { %1506 = vperm.xlu1 %2326, %v1476_v20  }
 0x180   : > { %1020 = vperm.xlu0 %2327, %v865_v13  }
 0x182   : > { %v2746_v22 = vpop.permute.xlu1 %1025 }
 0x184   : > { %1329 = vperm.xlu0 %2327, %v2632_v30  }
 0x186   : > { %v2748_v30 = vpop.permute.xlu1 %1334 }
 0x188   : > { %1481 = vperm.xlu0 %2327, %v1471_v16  }
 0x18a   : > { %v2750_v23 = vpop.permute.xlu1 %1380 }
 0x18c   : > { %1359 = vperm.xlu0 %2327, %v1325_v8  }
 0x18e   : > { %v2752_v24 = vpop.permute.xlu1 %1339 }
 0x190   : > { %1496 = vperm.xlu0 %2327, %v1474_v18  }
 0x192   : > { %v2756_v26 = vpop.permute.xlu1 %1424 }
 0x196   : > { %v2760_v29 = vpop.permute.xlu1 %1344 }
 0x19a   : > { %v2764_v34 = vpop.permute.xlu1 %1432 }
 0x19e   : > { %v2768_v38 = vpop.permute.xlu1 %1349 }
 0x1c9   : > { %v883_v39 = vpop.xlane.xlu0 %882 }
 0x1ca   : > { %v884_v40 = vrot.slane %v883_v39, 4 }
 0x1cb   : > { %v909_v45 = vpop.xlane.xlu1 %908 }
 0x1cc   : > { %v885_v46 = vadd.f32 %v884_v40, %v883_v39  ;;  %v910_v47 = vrot.slane %v909_v45, 4 }
 0x1ce   : > { %v911_v49 = vadd.f32 %v910_v47, %v909_v45  ;;  %v886_v48 = vrot.slane %v885_v46, 2 }
 0x1d0   : > { %v887_v50 = vadd.f32 %v886_v48, %v885_v46  ;;  %v912_v51 = vrot.slane %v911_v49, 2 }
 0x1d1   : > { %v2770_v57 = vpop.permute.xlu0 %1396 }
 0x1d2   : > { %v888_v52 = vrot.slane %v887_v50, 1  ;;  %v913_v53 = vadd.f32 %v912_v51, %v911_v49 }
 0x1d4   : > { %v889_v54 = vadd.f32 %v888_v52, %v887_v50  ;;  %v914_v55 = vrot.slane %v913_v53, 1 }
 0x1d5   : > { %v2774_v58 = vpop.permute.xlu0 %1404 }
 0x1d6   : > { %2237 = vpush %v889_v54  ;;  %v915_v56 = vadd.f32 %v914_v55, %v913_v53  ;;  %3320 = vst [vmem:[#allocation12_spill] sm:$0xff] %v2774_v58 }
 0x1d8   : > { %2239 = vpush %v915_v56 }
 0x1da   : > { %v2776_v60 = vpop.permute.xlu0 %1428 }
 0x1de   : > { %v2782_v8 = vpop.permute.xlu0 %1452 }
 0x1df   : > { %3321 = vst [vmem:[#allocation13_spill] sm:$0xff] %v2782_v8 }
 0x1e3   : > { %v943_v9 = vpop.permute.xlu0 %942 }
 0x1e7   : > { %v953_v31 = vpop.permute.xlu0 %952 }
 0x207   : > { %s2238_s22 = spop %2237 }
 0x208   : > { %v891_v59 = vstv %s2238_s22 }
 0x209   : > { %v2778_v63 = vmul.f32 0.00091911765, %v891_v59  ;;  %s2240_s25 = spop %2239 }
 0x20a   : > { %v917_v0 = vstv %s2240_s25 }
 0x20b   : > { %v918_v35 = vmul.f32 0.00091911765, %v917_v0  ;;  %v919_v5 = vmul.f32 %v2778_v63, %v2778_v63  ;;  %v928_v11 = vsub.f32 %v2687_v32, %v2778_v63  ;;  %v922_v13 = vsub.f32 %v2671_v62, %v2778_v63  ;;  %v996_v62 = vpop.permute.xlu0 %995 }
 0x20c   : > { %v923_v16 = vsub.f32 %v2677_v6, %v2778_v63  ;;  %v929_v19 = vsub.f32 %v2693_v44, %v2778_v63  ;;  %v924_v32 = vsub.f32 %v2669_v61, %v2778_v63 }
 0x20d   : > { %v920_v7 = vsub.f32 %v918_v35, %v919_v5  ;;  %v2871_v35 = vpop.permute.xlu1 %1436 }
 0x20f   : > { %v921_v37 = vmax.f32 %v920_v7, 0.0  ;;  %v1001_v61 = vpop.permute.xlu0 %1000 }
 0x211   : > { %v930_v41 = vadd.f32 1e-08, %v921_v37 }
 0x213   : > { %2338 = vrsqrt.f32 %v930_v41  ;;  %v1006_v52 = vpop.permute.xlu0 %1005 }
 0x217   : > { %v1011_v55 = vpop.permute.xlu0 %1010 }
 0x21b   : > { %v1016_v0 = vpop.permute.xlu0 %1015 }
 0x21d   : > { %v2339_v18 = vpop.eup %2338 }
 0x21e   : > { %v2792_v20 = vmul.f32 %v2339_v18, %v928_v11  ;;  %v932_v39 = vmul.f32 %v2339_v18, %v922_v13  ;;  %v933_v40 = vmul.f32 %v2339_v18, %v923_v16  ;;  %v2794_v45 = vmul.f32 %v2339_v18, %v929_v19  ;;  %v1477_v11 = vld [vmem:[%s2576_s27 + $0x30] sm:$0xff]  ;;  %v1478_v19 = vld [vmem:[%s2576_s27 + $0x38] sm:$0xff]  ;;  %s1140_s27 = scalar_select %p1139_p8, 1, 0 }
 0x21f   : > { %v934_v48 = vmul.f32 %v2339_v18, %v924_v32 }
 0x220   : > { %v980_v46 = vmul.f32 %v943_v9, %v932_v39  ;;  %v981_v47 = vmul.f32 %v2722_v10, %v933_v40  ;;  %v987_v41 = vmul.f32 %v2744_v21, %v2794_v45  ;;  %s1141_s23 = scvt.s32.f32 %s1140_s27 }
 0x221   : > { %v982_v44 = vmul.f32 %v953_v31, %v934_v48  ;;  %v2969_v48 = vsel %vm1142_vm11, 1.0, %v3291_v2 }
 0x222   : > { %v2800_v49 = vadd.f32 %v2728_v12, %v980_v46  ;;  %v2802_v6 = vadd.f32 %v996_v62, %v981_v47  ;;  %v925_v12 = vsub.f32 %v2675_v4, %v2778_v63  ;;  %v926_v4 = vsub.f32 %v2685_v28, %v2778_v63 }
 0x223   : > { %v2812_v10 = vadd.f32 %v1001_v61, %v982_v44  ;;  %v927_v28 = vsub.f32 %v2691_v43, %v2778_v63  ;;  %v986_v43 = vmul.f32 %v2741_v14, %v2792_v20  ;;  %v1021_v63 = vpop.permute.xlu0 %1020  ;;  %v2914_v31 = vadd.f32 %v2746_v22, %v987_v41 }
 0x224   : > { %1058 = vrot.lane.b32.xlu0 %v2800_v49, %s2411_s19  ;;  %1060 = vrot.lane.b32.xlu1 %v2802_v6, %s2411_s19  ;;  %v935_v50 = vmul.f32 %v2339_v18, %v925_v12  ;;  %v2966_v47 = vsel %vm1052_vm10, 1.0, %v3291_v2  ;;  %v2973_v12 = vstv %s1051_s14 }
 0x225   : > { %v937_v59 = vmul.f32 %v2339_v18, %v927_v28  ;;  %v2887_v7 = vadd.f32 %v1021_v63, %v986_v43  ;;  %3323 = vst [vmem:[#allocation15_spill] sm:$0xff] %v2914_v31 }
 0x226   : > { %v983_v51 = vmul.f32 %v2731_v15, %v935_v50  ;;  %v936_v15 = vmul.f32 %v2339_v18, %v926_v4  ;;  %v2975_v50 = vstv %s1141_s23 }
 0x227   : > { %3322 = vst [vmem:[#allocation14_spill] sm:$0xff] %v2887_v7  ;;  %v2940_v16 = vpop.permute.xlu0 %1329 }
 0x228   : > { %1148 = vrot.lane.b32.xlu0 %v2800_v49, %s2412_s20  ;;  %1150 = vrot.lane.b32.xlu1 %v2802_v6, %s2412_s20  ;;  %v2833_v53 = vadd.f32 %v1006_v52, %v983_v51  ;;  %v984_v54 = vmul.f32 %v2735_v17, %v936_v15  ;;  %v985_v17 = vmul.f32 %v2737_v42, %v937_v59  ;;  %v2881_v42 = vpop.permute.xlu1 %1486 }
 0x22a   : > { %v2854_v56 = vadd.f32 %v1011_v55, %v984_v54  ;;  %v2873_v5 = vadd.f32 %v1016_v0, %v985_v17 }
 0x22b   : > { %v2949_v20 = vpop.permute.xlu0 %1481 }
 0x22c   : > { %1099 = vrot.lane.b32.xlu0 %v2800_v49, %s2413_s30  ;;  %1062 = vrot.lane.b32.xlu1 %v2812_v10, %s2411_s19  ;;  %v2893_v37 = vpop.permute.xlu1 %1354 }
 0x22f   : > { %v2955_v40 = vpop.permute.xlu0 %1359 }
 0x230   : > { %1152 = vrot.lane.b32.xlu0 %v2812_v10, %s2412_s20  ;;  %1101 = vrot.lane.b32.xlu1 %v2802_v6, %s2413_s30  ;;  %v2899_v14 = vpop.permute.xlu1 %1440  ;;  %3328 = vst [vmem:[#allocation20_spill] sm:$0xff] %v2955_v40 }
 0x233   : > { %v2961_v46 = vpop.permute.xlu0 %1496 }
 0x234   : > { %1191 = vrot.lane.b32.xlu0 %v2802_v6, %s2414_s15  ;;  %1189 = vrot.lane.b32.xlu1 %v2800_v49, %s2414_s15  ;;  %v2911_v9 = vpop.permute.xlu1 %1491 }
 0x238   : > { %1240 = vrot.lane.b32.xlu0 %v2802_v6, %s2415_s18  ;;  %1238 = vrot.lane.b32.xlu1 %v2800_v49, %s2415_s18  ;;  %v2920_v21 = vpop.permute.xlu1 %1400 }
 0x239   : > { %3324 = vst [vmem:[#allocation16_spill] sm:$0xff] %v2920_v21 }
 0x23c   : > { %1154 = vrot.lane.b32.xlu0 %v2833_v53, %s2412_s20  ;;  %1064 = vrot.lane.b32.xlu1 %v2833_v53, %s2411_s19  ;;  %v2930_v22 = vpop.permute.xlu1 %1444 }
 0x240   : > { %1242 = vrot.lane.b32.xlu0 %v2812_v10, %s2415_s18  ;;  %1103 = vrot.lane.b32.xlu1 %v2812_v10, %s2413_s30  ;;  %v2938_v13 = vpop.permute.xlu1 %1364 }
 0x241   : > { %3325 = vst [vmem:[#allocation17_spill] sm:$0xff] %v2938_v13 }
 0x244   : > { %1281 = vrot.lane.b32.xlu0 %v2802_v6, %s2416_s26  ;;  %1193 = vrot.lane.b32.xlu1 %v2812_v10, %s2414_s15  ;;  %v2946_v18 = vpop.permute.xlu1 %1448 }
 0x245   : > { %3326 = vst [vmem:[#allocation18_spill] sm:$0xff] %v2946_v18 }
 0x248   : > { %1105 = vrot.lane.b32.xlu0 %v2833_v53, %s2413_s30  ;;  %1279 = vrot.lane.b32.xlu1 %v2800_v49, %s2416_s26  ;;  %v2953_v39 = vpop.permute.xlu1 %1501 }
 0x249   : > { %3327 = vst [vmem:[#allocation19_spill] sm:$0xff] %v2953_v39 }
 0x24c   : > { %1195 = vrot.lane.b32.xlu0 %v2833_v53, %s2414_s15  ;;  %1066 = vrot.lane.b32.xlu1 %v2854_v56, %s2411_s19  ;;  %v2959_v45 = vpop.permute.xlu1 %1506 }
 0x24d   : > { %3329 = vst [vmem:[#allocation21_spill] sm:$0xff] %v2959_v45 }
 0x250   : > { %1283 = vrot.lane.b32.xlu0 %v2812_v10, %s2416_s26  ;;  %1156 = vrot.lane.b32.xlu1 %v2854_v56, %s2412_s20 }
 0x254   : > { %1107 = vrot.lane.b32.xlu0 %v2854_v56, %s2413_s30  ;;  %1244 = vrot.lane.b32.xlu1 %v2833_v53, %s2415_s18 }
 0x258   : > { %1197 = vrot.lane.b32.xlu0 %v2854_v56, %s2414_s15  ;;  %1068 = vrot.lane.b32.xlu1 %v2873_v5, %s2411_s19 }
 0x25c   : > { %1285 = vrot.lane.b32.xlu0 %v2833_v53, %s2416_s26  ;;  %1158 = vrot.lane.b32.xlu1 %v2873_v5, %s2412_s20 }
 0x260   : > { %1246 = vrot.lane.b32.xlu1 %v2854_v56, %s2415_s18  ;;  %1070 = vrot.lane.b32.xlu0 %v2887_v7, %s2411_s19 }
 0x264   : > { %1109 = vrot.lane.b32.xlu1 %v2873_v5, %s2413_s30  ;;  %1160 = vrot.lane.b32.xlu0 %v2887_v7, %s2412_s20 }
 0x268   : > { %1199 = vrot.lane.b32.xlu1 %v2873_v5, %s2414_s15  ;;  %1248 = vrot.lane.b32.xlu0 %v2873_v5, %s2415_s18 }
 0x26c   : > { %1287 = vrot.lane.b32.xlu1 %v2854_v56, %s2416_s26  ;;  %1111 = vrot.lane.b32.xlu0 %v2887_v7, %s2413_s30 }
 0x270   : > { %1072 = vrot.lane.b32.xlu1 %v2914_v31, %s2411_s19  ;;  %1201 = vrot.lane.b32.xlu0 %v2887_v7, %s2414_s15 }
 0x274   : > { %1162 = vrot.lane.b32.xlu1 %v2914_v31, %s2412_s20  ;;  %1289 = vrot.lane.b32.xlu0 %v2873_v5, %s2416_s26 }
 0x278   : > { %1250 = vrot.lane.b32.xlu1 %v2887_v7, %s2415_s18  ;;  %1113 = vrot.lane.b32.xlu0 %v2914_v31, %s2413_s30 }
 0x27c   : > { %1203 = vrot.lane.b32.xlu1 %v2914_v31, %s2414_s15  ;;  %1252 = vrot.lane.b32.xlu0 %v2914_v31, %s2415_s18 }
 0x280   : > { %1291 = vrot.lane.b32.xlu1 %v2887_v7, %s2416_s26  ;;  %1511 = vperm.xlu0 %2327, %v1477_v11   ;;  %v2988_v11 = vsel %vm1055_vm12, 1.0, %v3291_v2 }
 0x284   : > { %1293 = vrot.lane.b32.xlu1 %v2914_v31, %s2416_s26 }
 0x288   : > { %1516 = vperm.xlu1 %2326, %v1478_v19  }
 0x296   : > { %v1061_v32 = vpop.permute.xlu1 %1060  ;;  %v1059_v62 = vpop.permute.xlu0 %1058 }
 0x297   : > { %v1075_v44 = vmul.f32 %v2966_v47, %v1061_v32  ;;  %v1074_v61 = vmul.f32 %v2966_v47, %v1059_v62 }
 0x299   : > { %v1084_v54 = vmul.f32 %v2973_v12, %v1075_v44  ;;  %v1083_v55 = vmul.f32 %v2973_v12, %v1074_v61  ;;  %v2992_v44 = vsel %vm1145_vm13, 1.0, %v3291_v2 }
 0x29a   : > { %v1151_v51 = vpop.permute.xlu1 %1150  ;;  %v1149_v52 = vpop.permute.xlu0 %1148 }
 0x29b   : > { %v1165_v4 = vmul.f32 %v2969_v48, %v1151_v51  ;;  %v1164_v15 = vmul.f32 %v2969_v48, %v1149_v52 }
 0x29d   : > { %v1174_v28 = vmul.f32 %v2975_v50, %v1165_v4  ;;  %v1173_v59 = vmul.f32 %v2975_v50, %v1164_v15 }
 0x29e   : > { %v1063_v17 = vpop.permute.xlu1 %1062  ;;  %v1100_v0 = vpop.permute.xlu0 %1099 }
 0x29f   : > { %v1182_v43 = vadd.f32 %v1174_v28, %v1084_v54  ;;  %v1181_v63 = vadd.f32 %v1173_v59, %v1083_v55  ;;  %v1076_v41 = vmul.f32 %v2966_v47, %v1063_v17  ;;  %v1115_v51 = vmul.f32 %v2988_v11, %v1100_v0 }
 0x2a0   : > { %v3000_v28 = vsel %vm1232_vm14, 1.0, %v3291_v2 }
 0x2a1   : > { %v1085_v61 = vmul.f32 %v2973_v12, %v1076_v41  ;;  %v1123_v59 = vmul.f32 %v1115_v51, %v2973_v12  ;;  %v3004_v41 = vstv %s1231_s5  ;;  %v1407_v51 = vmul.f32 %v2754_v25, %v2800_v49 }
 0x2a2   : > { %v1102_v19 = vpop.permute.xlu1 %1101  ;;  %v1153_v32 = vpop.permute.xlu0 %1152  ;;  %v3330_v25 = vmov 0.0  }
 0x2a3   : > { %v1166_v62 = vmul.f32 %v2969_v48, %v1153_v32  ;;  %v3021_v49 = vsel %vm1235_vm15, 1.0, %v3330_v25 }
 0x2a5   : > { %v1175_v52 = vmul.f32 %v2975_v50, %v1166_v62 }
 0x2a6   : > { %v1190_v4 = vpop.permute.xlu1 %1189  ;;  %v1192_v15 = vpop.permute.xlu0 %1191 }
 0x2a7   : > { %v1183_v54 = vadd.f32 %v1175_v52, %v1085_v61  ;;  %v1205_v55 = vmul.f32 %v2992_v44, %v1190_v4 }
 0x2a9   : > { %v1213_v17 = vmul.f32 %v1205_v55, %v2975_v50  ;;  %v1408_v55 = vmul.f32 %v2750_v23, %v2802_v6 }
 0x2aa   : > { %v1239_v0 = vpop.permute.xlu1 %1238  ;;  %v1241_v32 = vpop.permute.xlu0 %1240 }
 0x2ab   : > { %v1221_v62 = vadd.f32 %v1213_v17, %v1123_v59  ;;  %v1254_v8 = vmul.f32 %v3000_v28, %v1239_v0  ;;  %v1255_v58 = vmul.f32 %v3000_v28, %v1241_v32  ;;  %v1206_v59 = vmul.f32 %v2992_v44, %v1192_v15 }
 0x2ac   : > { %v1116_v32 = vmul.f32 %v2988_v11, %v1102_v19 }
 0x2ad   : > { %v1263_v61 = vmul.f32 %v3004_v41, %v1254_v8  ;;  %v1264_v52 = vmul.f32 %v3004_v41, %v1255_v58  ;;  %v1214_v23 = vmul.f32 %v1206_v59, %v2975_v50 }
 0x2ae   : > { %v1065_v4 = vpop.permute.xlu1 %1064  ;;  %v1155_v2 = vpop.permute.xlu0 %1154 }
 0x2af   : > { %v1271_v31 = vadd.f32 %v1263_v61, %v1181_v63  ;;  %v1272_v13 = vadd.f32 %v1264_v52, %v1182_v43  ;;  %v1409_v52 = vmul.f32 %v2758_v27, %v2812_v10 }
 0x2b1   : > { %v1367_v17 = vmul.f32 %v2940_v16, %v1271_v31  ;;  %v1368_v0 = vmul.f32 %v2748_v30, %v1272_v13  ;;  %v1124_v30 = vmul.f32 %v1116_v32, %v2973_v12 }
 0x2b2   : > { %v1104_v8 = vpop.permute.xlu1 %1103  ;;  %v1243_v58 = vpop.permute.xlu0 %1242 }
 0x2b3   : > { %v1415_v63 = vadd.f32 %v1407_v51, %v1367_v17  ;;  %v1416_v43 = vadd.f32 %v1408_v55, %v1368_v0  ;;  %v1256_v61 = vmul.f32 %v3000_v28, %v1243_v58  ;;  %v1222_v15 = vadd.f32 %v1214_v23, %v1124_v30 }
 0x2b5   : > { %v1265_v6 = vmul.f32 %v3004_v41, %v1256_v61 }
 0x2b6   : > { %v1194_v31 = vpop.permute.xlu1 %1193  ;;  %v1282_v16 = vpop.permute.xlu0 %1281 }
 0x2b7   : > { %v1296_v1 = vmul.f32 %v3021_v49, %v1282_v16  ;;  %v1273_v13 = vadd.f32 %v1265_v6, %v1183_v54 }
 0x2b9   : > { %v1304_v19 = vmul.f32 %v1296_v1, %v3004_v41  ;;  %v1369_v51 = vmul.f32 %v2752_v24, %v1273_v13 }
 0x2ba   : > { %v1280_v55 = vpop.permute.xlu1 %1279  ;;  %v1106_v17 = vpop.permute.xlu0 %1105 }
 0x2bb   : > { %v1312_v59 = vadd.f32 %v1304_v19, %v1222_v15  ;;  %v1295_v0 = vmul.f32 %v3021_v49, %v1280_v55  ;;  %v3032_v58 = vadd.f32 %v1409_v52, %v1369_v51 }
 0x2bd   : > { %v1456_v32 = vmul.f32 %v2776_v60, %v1312_v59  ;;  %v1303_v61 = vmul.f32 %v1295_v0, %v3004_v41 }
 0x2be   : > { %v1067_v54 = vpop.permute.xlu1 %1066  ;;  %v1196_v25 = vpop.permute.xlu0 %1195 }
 0x2bf   : > { %v3036_v23 = vadd.f32 %v1456_v32, %v1416_v43  ;;  %v1311_v6 = vadd.f32 %v1303_v61, %v1221_v62  ;;  %v1077_v62 = vmul.f32 %v2966_v47, %v1065_v4  ;;  %v1207_v43 = vmul.f32 %v2992_v44, %v1194_v31 }
 0x2c0   : > { %v1208_v18 = vmul.f32 %v2992_v44, %v1196_v25 }
 0x2c1   : > { %v1455_v27 = vmul.f32 %v2756_v26, %v1311_v6  ;;  %v1167_v26 = vmul.f32 %v2969_v48, %v1155_v2  ;;  %v1086_v32 = vmul.f32 %v2973_v12, %v1077_v62  ;;  %v1117_v6 = vmul.f32 %v2988_v11, %v1104_v8 }
 0x2c2   : > { %v1157_v10 = vpop.permute.xlu1 %1156  ;;  %v1284_v24 = vpop.permute.xlu0 %1283  ;;  %v1215_v3 = vmul.f32 %v1207_v43, %v2975_v50  ;;  %v1118_v2 = vmul.f32 %v2988_v11, %v1106_v17  ;;  %v1216_v17 = vmul.f32 %v1208_v18, %v2975_v50 }
 0x2c3   : > { %v3039_v16 = vadd.f32 %v1455_v27, %v1415_v63  ;;  %v1176_v61 = vmul.f32 %v2975_v50, %v1167_v26  ;;  %v1297_v27 = vmul.f32 %v3021_v49, %v1284_v24  ;;  %v1125_v62 = vmul.f32 %v1117_v6, %v2973_v12 }
 0x2c4   : > { %v1078_v26 = vmul.f32 %v2966_v47, %v1067_v54  ;;  %v1168_v8 = vmul.f32 %v2969_v48, %v1157_v10 }
 0x2c5   : > { %v1184_v21 = vadd.f32 %v1176_v61, %v1086_v32  ;;  %v1305_v24 = vmul.f32 %v1297_v27, %v3004_v41  ;;  %v1223_v40 = vadd.f32 %v1215_v3, %v1125_v62  ;;  %v1126_v61 = vmul.f32 %v1118_v2, %v2973_v12 }
 0x2c6   : > { %v1245_v30 = vpop.permute.xlu1 %1244  ;;  %v1108_v1 = vpop.permute.xlu0 %1107  ;;  %v1087_v3 = vmul.f32 %v2973_v12, %v1078_v26  ;;  %v1177_v6 = vmul.f32 %v2975_v50, %v1168_v8 }
 0x2c7   : > { %v1257_v31 = vmul.f32 %v3000_v28, %v1245_v30  ;;  %v1119_v30 = vmul.f32 %v2988_v11, %v1108_v1 }
 0x2ca   : > { %v1069_v13 = vpop.permute.xlu1 %1068  ;;  %v1198_v15 = vpop.permute.xlu0 %1197 }
 0x2cb   : > { %v1209_v43 = vmul.f32 %v2992_v44, %v1198_v15  ;;  %v1266_v15 = vmul.f32 %v3004_v41, %v1257_v31 }
 0x2cd   : > { %v1217_v27 = vmul.f32 %v1209_v43, %v2975_v50  ;;  %v1274_v39 = vadd.f32 %v1266_v15, %v1184_v21  ;;  %v1185_v43 = vadd.f32 %v1177_v6, %v1087_v3 }
 0x2ce   : > { %v1159_v19 = vpop.permute.xlu1 %1158  ;;  %v1286_v52 = vpop.permute.xlu0 %1285 }
 0x2cf   : > { %v1169_v25 = vmul.f32 %v2969_v48, %v1159_v19  ;;  %v1298_v7 = vmul.f32 %v3021_v49, %v1286_v52  ;;  %v1079_v19 = vmul.f32 %v2966_v47, %v1069_v13  ;;  %v1224_v13 = vadd.f32 %v1216_v17, %v1126_v61 }
 0x2d1   : > { %v1178_v2 = vmul.f32 %v2975_v50, %v1169_v25  ;;  %v1306_v31 = vmul.f32 %v1298_v7, %v3004_v41  ;;  %v1410_v7 = vmul.f32 %v2762_v33, %v2833_v53  ;;  %v3102_v33 = vadd.f32 %v2881_v42, %v3036_v23 }
 0x2d2   : > { %v1247_v60 = vpop.permute.xlu1 %1246  ;;  %v3041_v51 = vpop.permute.xlu0 %1070  ;;  %v1370_v53 = vmul.f32 %v2760_v29, %v1274_v39  ;;  %v1519_v42 = vadd.f32 %v2949_v20, %v3039_v16 }
 0x2d3   : > { %v1258_v32 = vmul.f32 %v3000_v28, %v1247_v60  ;;  %v1313_v60 = vadd.f32 %v1305_v24, %v1223_v40  ;;  %v1314_v21 = vadd.f32 %v1306_v31, %v1224_v13  ;;  %vm1528_vm0 = vcmp.ge.f32.partialorder %v3102_v33, 0.0 }
 0x2d4   : > { %v1418_v13 = vadd.f32 %v1410_v7, %v1370_v53  ;;  %vm1527_vm1 = vcmp.ge.f32.partialorder %v1519_v42, 0.0  ;;  %v3332_v53 = vld [vmem:[#allocation20_spill] sm:$0xff] }
 0x2d5   : > { %v1267_v62 = vmul.f32 %v3004_v41, %v1258_v32  ;;  %v1458_v23 = vmul.f32 %v2871_v35, %v1314_v21 }
 0x2d6   : > { %v1110_v55 = vpop.permute.xlu1 %1109  ;;  %v3043_v59 = vpop.permute.xlu0 %1160 }
 0x2d7   : > { %v1120_v26 = vmul.f32 %v2988_v11, %v1110_v55  ;;  %v1275_v61 = vadd.f32 %v1267_v62, %v1185_v43 }
 0x2d9   : > { %v1128_v15 = vmul.f32 %v1120_v26, %v2973_v12  ;;  %v1466_v26 = vadd.f32 %v1458_v23, %v1418_v13 }
 0x2da   : > { %v1200_v63 = vpop.permute.xlu1 %1199  ;;  %v1249_v0 = vpop.permute.xlu0 %1248 }
 0x2db   : > { %v1259_v52 = vmul.f32 %v3000_v28, %v1249_v0  ;;  %v1210_v18 = vmul.f32 %v2992_v44, %v1200_v63  ;;  %v1127_v0 = vmul.f32 %v1119_v30, %v2973_v12  ;;  %v1457_v30 = vmul.f32 %v2764_v34, %v1313_v60 }
 0x2dc   : > { %v1411_v34 = vmul.f32 %v2766_v36, %v2854_v56  ;;  %v1371_v56 = vmul.f32 %v2768_v38, %v1275_v61 }
 0x2dd   : > { %v1268_v40 = vmul.f32 %v3004_v41, %v1259_v52  ;;  %v1218_v25 = vmul.f32 %v1210_v18, %v2975_v50  ;;  %v1225_v55 = vadd.f32 %v1217_v27, %v1127_v0  ;;  %v1465_v36 = vadd.f32 %v1457_v30, %v3032_v58 }
 0x2de   : > { %v1288_v4 = vpop.permute.xlu1 %1287  ;;  %v3054_v45 = vpop.permute.xlu0 %1111  ;;  %v1412_v0 = vmul.f32 %v2770_v57, %v2873_v5 }
 0x2df   : > { %v1299_v1 = vmul.f32 %v3021_v49, %v1288_v4  ;;  %v1088_v4 = vmul.f32 %v2973_v12, %v1079_v19  ;;  %v1170_v19 = vmul.f32 %v2969_v48, %v3043_v59  ;;  %v1226_v60 = vadd.f32 %v1218_v25, %v1128_v15 }
 0x2e0   : > { %v1121_v20 = vmul.f32 %v2988_v11, %v3054_v45  ;;  %v1521_v45 = vadd.f32 %v2911_v9, %v1465_v36  ;;  %v1522_v9 = vadd.f32 %v2961_v46, %v1466_v26  ;;  %v3336_v36 = vld [vmem:[#allocation18_spill] sm:$0xff] }
 0x2e1   : > { %v1307_v17 = vmul.f32 %v1299_v1, %v3004_v41  ;;  %v1186_v32 = vadd.f32 %v1178_v2, %v1088_v4  ;;  %v1080_v1 = vmul.f32 %v2966_v47, %v3041_v51  ;;  %v3111_v2 = vstv %s3080_s21 }
 0x2e2   : > { %v3070_v54 = vpop.permute.xlu1 %1072  ;;  %v1202_v10 = vpop.permute.xlu0 %1201  ;;  %v1179_v39 = vmul.f32 %v2975_v50, %v1170_v19  ;;  %v1537_v35 = vmul.f32 %v3111_v2, %v3102_v33  ;;  %vm1529_vm2 = vcmp.ge.f32.partialorder %v1521_v45, 0.0  ;;  %v1538_v61 = vmul.f32 %v3111_v2, %v1521_v45  ;;  %v3331_v19 = vld [vmem:[#allocation19_spill] sm:$0xff] }
 0x2e3   : > { %v1276_v6 = vadd.f32 %v1268_v40, %v1186_v32  ;;  %v1315_v27 = vadd.f32 %v1307_v17, %v1225_v55  ;;  %v1211_v29 = vmul.f32 %v2992_v44, %v1202_v10  ;;  %v1089_v38 = vmul.f32 %v2973_v12, %v1080_v1  ;;  %v3334_v1 = vld [vmem:[#allocation16_spill] sm:$0xff] }
 0x2e4   : > { %v1536_v10 = vmul.f32 %v3111_v2, %v1519_v42  ;;  %v1081_v7 = vmul.f32 %v2966_v47, %v3070_v54  ;;  %vm1530_vm3 = vcmp.ge.f32.partialorder %v1522_v9, 0.0 }
 0x2e5   : > { %v1372_v62 = vmul.f32 %v2893_v37, %v1276_v6  ;;  %v1459_v58 = vmul.f32 %v2899_v14, %v1315_v27  ;;  %v1219_v57 = vmul.f32 %v1211_v29, %v2975_v50  ;;  %v1187_v4 = vadd.f32 %v1179_v39, %v1089_v38  ;;  %v3333_v6 = vld [vmem:[#allocation14_spill] sm:$0xff] }
 0x2e6   : > { %v1163_v8 = vpop.permute.xlu1 %1162  ;;  %v1290_v63 = vpop.permute.xlu0 %1289  ;;  %v1129_v14 = vmul.f32 %v1121_v20, %v2973_v12  ;;  %v1090_v15 = vmul.f32 %v2973_v12, %v1081_v7  ;;  %v3168_v39 = vsel %vm1529_vm2, %v1521_v45, %v1538_v61 }
 0x2e7   : > { %v1300_v24 = vmul.f32 %v3021_v49, %v1290_v63  ;;  %v1171_v5 = vmul.f32 %v2969_v48, %v1163_v8  ;;  %v1419_v63 = vadd.f32 %v1411_v34, %v1371_v56  ;;  %v1420_v43 = vadd.f32 %v1412_v0, %v1372_v62 }
 0x2e8   : > { %v1227_v55 = vadd.f32 %v1219_v57, %v1129_v14  ;;  %v3165_v56 = vsel %vm1528_vm0, %v3102_v33, %v1537_v35 }
 0x2e9   : > { %v1308_v52 = vmul.f32 %v1300_v24, %v3004_v41  ;;  %v1467_v17 = vadd.f32 %v1459_v58, %v1419_v63 }
 0x2ea   : > { %v1251_v3 = vpop.permute.xlu1 %1250  ;;  %v1114_v18 = vpop.permute.xlu0 %1113 }
 0x2eb   : > { %v1260_v59 = vmul.f32 %v3000_v28, %v1251_v3  ;;  %v1316_v51 = vadd.f32 %v1308_v52, %v1226_v60  ;;  %v1122_v47 = vmul.f32 %v2988_v11, %v1114_v18  ;;  %v1523_v46 = vadd.f32 %v3331_v19, %v1467_v17 }
 0x2ec   : > { %v1413_v60 = vmul.f32 %v3334_v1, %v3333_v6  ;;  %v3155_v11 = vsel %vm1527_vm1, %v1519_v42, %v1536_v10  ;;  %v1539_v18 = vmul.f32 %v3111_v2, %v1522_v9  ;;  %v3338_v10 = vld [vmem:[#allocation17_spill] sm:$0xff] }
 0x2ed   : > { %v1269_v16 = vmul.f32 %v3004_v41, %v1260_v59  ;;  %v1460_v40 = vmul.f32 %v2930_v22, %v1316_v51  ;;  %v1180_v22 = vmul.f32 %v2975_v50, %v1171_v5  ;;  %v3335_v59 = vld [vmem:[#allocation21_spill] sm:$0xff]  ;;  %v1540_v42 = vmul.f32 %v3111_v2, %v1523_v46  ;;  %v3339_v5 = vld [vmem:[#allocation15_spill] sm:$0xff] }
 0x2ee   : > { %v1204_v31 = vpop.permute.xlu1 %1203  ;;  %v1253_v37 = vpop.permute.xlu0 %1252  ;;  %vm1531_vm4 = vcmp.ge.f32.partialorder %v1523_v46, 0.0  ;;  %v3174_v38 = vsel %vm1530_vm3, %v1522_v9, %v1539_v18 }
 0x2ef   : > { %v1277_v30 = vadd.f32 %v1269_v16, %v1187_v4  ;;  %v1212_v48 = vmul.f32 %v2992_v44, %v1204_v31  ;;  %v1261_v8 = vmul.f32 %v3000_v28, %v1253_v37  ;;  %v1468_v21 = vadd.f32 %v1460_v40, %v1420_v43  ;;  %v3340_v37 = vld [vmem:[#allocation12_spill] sm:$0xff] }
 0x2f0   : > { %v1188_v27 = vadd.f32 %v1180_v22, %v1090_v15  ;;  %v3181_v57 = vsel %vm1531_vm4, %v1523_v46, %v1540_v42  ;;  %v1414_v45 = vmul.f32 %v3340_v37, %v3339_v5  ;;  %v1554_v42 = vld [vmem:[%s2581_s16 + $0x10] sm:$0xff]  ;;  %v1750_v37 = vld [vmem:[%s2596_s2 + $0x8] sm:$0xff] }
 0x2f1   : > { %v1220_v52 = vmul.f32 %v1212_v48, %v2975_v50  ;;  %v1270_v3 = vmul.f32 %v3004_v41, %v1261_v8  ;;  %v1373_v34 = vmul.f32 %v3332_v53, %v1277_v30  ;;  %v1524_v23 = vadd.f32 %v3335_v59, %v1468_v21  ;;  %v1751_v5 = vld [vmem:[%s2596_s2 + $0x10] sm:$0xff] }
 0x2f2   : > { %v1292_v24 = vpop.permute.xlu1 %1291 }
 0x2f3   : > { %v1301_v25 = vmul.f32 %v3021_v49, %v1292_v24  ;;  %v1278_v31 = vadd.f32 %v1270_v3, %v1188_v27  ;;  %v1421_v13 = vadd.f32 %v1413_v60, %v1373_v34  ;;  %vm1532_vm5 = vcmp.ge.f32.partialorder %v1524_v23, 0.0  ;;  %v3341_v24 = vld [vmem:[#allocation13_spill] sm:$0xff] }
 0x2f5   : > { %v1309_v32 = vmul.f32 %v1301_v25, %v3004_v41  ;;  %v1374_v26 = vmul.f32 %v3338_v10, %v1278_v31  ;;  %v1562_v31 = vld [vmem:[%s2586_s0 + $0x10] sm:$0xff]  ;;  %v1749_v10 = vld [vmem:[%s2596_s2] sm:$0xff] }
 0x2f6   : > { %v1294_v54 = vpop.permute.xlu1 %1293 }
 0x2f7   : > { %v1317_v44 = vadd.f32 %v1309_v32, %v1227_v55  ;;  %v1302_v28 = vmul.f32 %v3021_v49, %v1294_v54  ;;  %v1130_v49 = vmul.f32 %v1122_v47, %v2973_v12  ;;  %v3337_v12 = vld [vmem:[#allocation11_spill] sm:$0xff]  ;;  %v1422_v8 = vadd.f32 %v1414_v45, %v1374_v26  ;;  %v1567_v26 = vld [vmem:[%s2586_s0 + $0x38] sm:$0xff] }
 0x2f8   : > { %v1568_v0 = vmul.f32 %v3337_v12, %v3155_v11  ;;  %v1569_v33 = vmul.f32 %v3337_v12, %v3165_v56  ;;  %v1570_v58 = vmul.f32 %v3337_v12, %v3168_v39  ;;  %v1571_v63 = vmul.f32 %v3337_v12, %v3174_v38  ;;  %v1753_v45 = vld [vmem:[%s2596_s2 + $0x20] sm:$0xff] }
 0x2f9   : > { %v1310_v29 = vmul.f32 %v1302_v28, %v3004_v41  ;;  %v1461_v50 = vmul.f32 %v3336_v36, %v1317_v44  ;;  %v1228_v51 = vadd.f32 %v1220_v52, %v1130_v49  ;;  %v1541_v41 = vmul.f32 %v3111_v2, %v1524_v23  ;;  %v1560_v36 = vld [vmem:[%s2586_s0] sm:$0xff] }
 0x2fa   : > { %v1594_v4 = vmul.f32 %v1568_v0, %v1568_v0  ;;  %v1572_v7 = vmul.f32 %v3337_v12, %v3181_v57  ;;  %v1576_v25 = vadd.f32 %v1569_v33, %v1568_v0  ;;  %v1595_v17 = vmul.f32 %v1569_v33, %v1569_v33  ;;  %v1556_v0 = vld [vmem:[%s2581_s16 + $0x20] sm:$0xff]  ;;  %v1558_v33 = vld [vmem:[%s2581_s16 + $0x30] sm:$0xff] }
 0x2fb   : > { %v1318_v62 = vadd.f32 %v1310_v29, %v1228_v51  ;;  %v1469_v20 = vadd.f32 %v1461_v50, %v1421_v13  ;;  %v3189_v14 = vsel %vm1532_vm5, %v1524_v23, %v1541_v41  ;;  %v1596_v30 = vmul.f32 %v1570_v58, %v1570_v58  ;;  %v1553_v29 = vld [vmem:[%s2581_s16 + $0x8] sm:$0xff]  ;;  %v1552_v50 = vld [vmem:[%s2581_s16] sm:$0xff]  ;;  %v1555_v13 = vld [vmem:[%s2581_s16 + $0x18] sm:$0xff] }
 0x2fc   : > { %v1573_v9 = vmul.f32 %v3337_v12, %v3189_v14  ;;  %v1577_v55 = vadd.f32 %v1576_v25, %v1570_v58  ;;  %v1597_v22 = vmul.f32 %v1571_v63, %v1571_v63  ;;  %v1602_v32 = vadd.f32 %v1595_v17, %v1594_v4  ;;  %v1561_v51 = vld [vmem:[%s2586_s0 + $0x8] sm:$0xff]  ;;  %v1563_v41 = vld [vmem:[%s2586_s0 + $0x18] sm:$0xff]  ;;  %v1566_v58 = vld [vmem:[%s2586_s0 + $0x30] sm:$0xff] }
 0x2fd   : > { %v1462_v43 = vmul.f32 %v3341_v24, %v1318_v62  ;;  %v1598_v15 = vmul.f32 %v1572_v7, %v1572_v7  ;;  %v1564_v62 = vld [vmem:[%s2586_s0 + $0x20] sm:$0xff]  ;;  %v1755_v4 = vld [vmem:[%s2596_s2 + $0x30] sm:$0xff]  ;;  %v1756_v24 = vld [vmem:[%s2596_s2 + $0x38] sm:$0xff] }
 0x2fe   : > { %v1578_v61 = vadd.f32 %v1577_v55, %v1571_v63  ;;  %v1603_v44 = vadd.f32 %v1602_v32, %v1596_v30  ;;  %v1599_v46 = vmul.f32 %v1573_v9, %v1573_v9  ;;  %v1752_v63 = vld [vmem:[%s2596_s2 + $0x18] sm:$0xff] }
 0x2ff   : > { %v1512_v35 = vpop.permute.xlu0 %1511  ;;  %v1470_v21 = vadd.f32 %v1462_v43, %v1422_v8  ;;  %v2332_v43 = vld [vmem:[%s2591_s1] sm:$0xff]  }
 0x300   : > { %v1525_v16 = vadd.f32 %v1512_v35, %v1469_v20  ;;  %v1579_v19 = vadd.f32 %v1578_v61, %v1572_v7  ;;  %v1604_v52 = vadd.f32 %v1603_v44, %v1597_v22  ;;  %v1557_v20 = vld [vmem:[%s2581_s16 + $0x28] sm:$0xff]  ;;  %2229 = vmatprep.mubr.msk.bf16.mxu1 %vm1817_vm8, %v2332_v43 }
 0x301   : > { %v1565_v35 = vld [vmem:[%s2586_s0 + $0x28] sm:$0xff] }
 0x302   : > { %vm1533_vm6 = vcmp.ge.f32.partialorder %v1525_v16, 0.0  ;;  %v1542_v40 = vmul.f32 %v3111_v2, %v1525_v16  ;;  %v1580_v53 = vadd.f32 %v1579_v19, %v1573_v9  ;;  %v1605_v6 = vadd.f32 %v1604_v52, %v1598_v15 }
 0x304   : > { %v3193_v48 = vsel %vm1533_vm6, %v1525_v16, %v1542_v40  ;;  %v1606_v27 = vadd.f32 %v1605_v6, %v1599_v46  ;;  %v1559_v16 = vld [vmem:[%s2581_s16 + $0x38] sm:$0xff]  ;;  %v1754_v40 = vld [vmem:[%s2596_s2 + $0x28] sm:$0xff] }
 0x305   : > { %v1574_v47 = vmul.f32 %v3337_v12, %v3193_v48 }
 0x307   : > { %v1517_v54 = vpop.permute.xlu1 %1516  ;;  %v1600_v34 = vmul.f32 %v1574_v47, %v1574_v47  ;;  %v1581_v18 = vadd.f32 %v1580_v53, %v1574_v47 }
 0x308   : > { %v1526_v28 = vadd.f32 %v1517_v54, %v1470_v21 }
 0x309   : > { %v1607_v49 = vadd.f32 %v1606_v27, %v1600_v34 }
 0x30a   : > { %vm1534_vm7 = vcmp.ge.f32.partialorder %v1526_v28, 0.0  ;;  %v1543_v3 = vmul.f32 %v3111_v2, %v1526_v28 }
 0x30c   : > { %v3200_v1 = vsel %vm1534_vm7, %v1526_v28, %v1543_v3 }
 0x30d   : > { %v1575_v60 = vmul.f32 %v3337_v12, %v3200_v1 }
 0x30f   : > { %v1582_v59 = vadd.f32 %v1581_v18, %v1575_v60  ;;  %v1601_v23 = vmul.f32 %v1575_v60, %v1575_v60 }
 0x311   : > { %1583 = vadd.xlane.f32.xlu1 %v1582_v59  ;;  %v1608_v2 = vadd.f32 %v1607_v49, %v1601_v23 }
 0x313   : > { %1609 = vadd.xlane.f32.xlu0 %v1608_v2 }
 0x322   : > { %1648 = vperm.xlu1 %2326, %v1553_v29  }
 0x326   : > { %1691 = vperm.xlu1 %2326, %v1560_v36  }
 0x329   : > { %1643 = vperm.xlu0 %2327, %v1552_v50  }
 0x32a   : > { %1653 = vperm.xlu1 %2326, %v1554_v42  }
 0x32d   : > { %1696 = vperm.xlu0 %2327, %v1561_v51  }
 0x32e   : > { %1701 = vperm.xlu1 %2326, %v1562_v31  }
 0x331   : > { %1658 = vperm.xlu0 %2327, %v1555_v13  }
 0x332   : > { %1663 = vperm.xlu1 %2326, %v1556_v0  }
 0x335   : > { %1706 = vperm.xlu0 %2327, %v1563_v41  }
 0x336   : > { %1711 = vperm.xlu1 %2326, %v1564_v62  }
 0x339   : > { %1668 = vperm.xlu0 %2327, %v1557_v20  }
 0x33a   : > { %1673 = vperm.xlu1 %2326, %v1558_v33  }
 0x33d   : > { %1716 = vperm.xlu0 %2327, %v1565_v35  }
 0x33e   : > { %1721 = vperm.xlu1 %2326, %v1566_v58  }
 0x341   : > { %1678 = vperm.xlu0 %2327, %v1559_v16  }
 0x342   : > { %1759 = vperm.xlu1 %2326, %v1749_v10  }
 0x345   : > { %1726 = vperm.xlu0 %2327, %v1567_v26  }
 0x346   : > { %1769 = vperm.xlu1 %2326, %v1751_v5  }
 0x349   : > { %1764 = vperm.xlu0 %2327, %v1750_v37  }
 0x34a   : > { %1779 = vperm.xlu1 %2326, %v1753_v45  }
 0x34d   : > { %1774 = vperm.xlu0 %2327, %v1752_v63  }
 0x34e   : > { %1789 = vperm.xlu1 %2326, %v1755_v4  }
 0x351   : > { %1784 = vperm.xlu0 %2327, %v1754_v40  }
 0x355   : > { %1794 = vperm.xlu0 %2327, %v1756_v24  }
 0x39e   : > { %v1584_v7 = vpop.xlane.xlu1 %1583 }
 0x39f   : > { %v1585_v25 = vrot.slane %v1584_v7, 4 }
 0x3a0   : > { %v1610_v17 = vpop.xlane.xlu0 %1609 }
 0x3a1   : > { %v1586_v30 = vadd.f32 %v1585_v25, %v1584_v7  ;;  %v1611_v8 = vrot.slane %v1610_v17, 4 }
 0x3a2   : > { %v1649_v44 = vpop.permute.xlu1 %1648 }
 0x3a3   : > { %v1587_v9 = vrot.slane %v1586_v30, 2  ;;  %v1612_v55 = vadd.f32 %v1611_v8, %v1610_v17 }
 0x3a5   : > { %v1613_v22 = vrot.slane %v1612_v55, 2  ;;  %v1588_v32 = vadd.f32 %v1587_v9, %v1586_v30 }
 0x3a6   : > { %v1692_v19 = vpop.permute.xlu1 %1691 }
 0x3a7   : > { %v1589_v21 = vrot.slane %v1588_v32, 1  ;;  %v1614_v47 = vadd.f32 %v1613_v22, %v1612_v55 }
 0x3a8   : > { %v1644_v28 = vpop.permute.xlu0 %1643 }
 0x3a9   : > { %v1590_v54 = vadd.f32 %v1589_v21, %v1588_v32  ;;  %v1615_v61 = vrot.slane %v1614_v47, 1 }
 0x3aa   : > { %v1654_v34 = vpop.permute.xlu1 %1653 }
 0x3ab   : > { %2241 = vpush %v1590_v54  ;;  %v1616_v15 = vadd.f32 %v1615_v61, %v1614_v47  ;;  %v2333_v61 = vld [vmem:[%s2591_s1 + $0x8] sm:$0xff]  }
 0x3ac   : > { %v1697_v46 = vpop.permute.xlu0 %1696 }
 0x3ad   : > { %2243 = vpush %v1616_v15  ;;  %v2334_v15 = vld [vmem:[%s2591_s1 + $0x10] sm:$0xff]  }
 0x3ae   : > { %v1702_v23 = vpop.permute.xlu1 %1701 }
 0x3b0   : > { %v1659_v6 = vpop.permute.xlu0 %1658 }
 0x3b2   : > { %v1664_v29 = vpop.permute.xlu1 %1663 }
 0x3b4   : > { %v1707_v49 = vpop.permute.xlu0 %1706 }
 0x3b6   : > { %v1712_v0 = vpop.permute.xlu1 %1711 }
 0x3b8   : > { %v1669_v36 = vpop.permute.xlu0 %1668 }
 0x3ba   : > { %v1674_v7 = vpop.permute.xlu1 %1673 }
 0x3bc   : > { %v1717_v41 = vpop.permute.xlu0 %1716 }
 0x3be   : > { %v1722_v55 = vpop.permute.xlu1 %1721 }
 0x3c0   : > { %v1679_v25 = vpop.permute.xlu0 %1678 }
 0x3c4   : > { %v1727_v22 = vpop.permute.xlu0 %1726 }
 0x3dc   : > { %s2242_s16 = spop %2241 }
 0x3dd   : > { %v1592_v52 = vstv %s2242_s16 }
 0x3de   : > { %v1593_v3 = vmul.f32 0.00091911765, %v1592_v52  ;;  %s2244_s0 = spop %2243 }
 0x3df   : > { %v1618_v53 = vstv %s2244_s0 }
 0x3e0   : > { %v1619_v60 = vmul.f32 0.00091911765, %v1618_v53  ;;  %v1620_v18 = vmul.f32 %v1593_v3, %v1593_v3  ;;  %v1623_v50 = vsub.f32 %v3155_v11, %v1593_v3  ;;  %v1624_v42 = vsub.f32 %v3165_v56, %v1593_v3 }
 0x3e1   : > { %v1625_v51 = vsub.f32 %v3168_v39, %v1593_v3  ;;  %v1626_v31 = vsub.f32 %v3174_v38, %v1593_v3  ;;  %v1627_v62 = vsub.f32 %v3181_v57, %v1593_v3  ;;  %v1628_v20 = vsub.f32 %v3189_v14, %v1593_v3 }
 0x3e2   : > { %v1621_v27 = vsub.f32 %v1619_v60, %v1620_v18  ;;  %v1629_v11 = vsub.f32 %v3193_v48, %v1593_v3  ;;  %v1630_v56 = vsub.f32 %v3200_v1, %v1593_v3 }
 0x3e4   : > { %v1622_v59 = vmax.f32 %v1621_v27, 0.0 }
 0x3e6   : > { %v1631_v2 = vadd.f32 1e-08, %v1622_v59 }
 0x3e8   : > { %2340 = vrsqrt.f32 %v1631_v2 }
 0x3f2   : > { %v2341_v13 = vpop.eup %2340 }
 0x3f3   : > { %v1633_v33 = vmul.f32 %v2341_v13, %v1623_v50  ;;  %v1634_v35 = vmul.f32 %v2341_v13, %v1624_v42  ;;  %v1635_v58 = vmul.f32 %v2341_v13, %v1625_v51  ;;  %v1636_v16 = vmul.f32 %v2341_v13, %v1626_v31  ;;  %v2343_v51 = vld [vmem:[#allocation2] sm:$0xff] }
 0x3f4   : > { %v1637_v10 = vmul.f32 %v2341_v13, %v1627_v62  ;;  %v1638_v26 = vmul.f32 %v2341_v13, %v1628_v20  ;;  %v1639_v4 = vmul.f32 %v2341_v13, %v1629_v11  ;;  %v1640_v57 = vmul.f32 %v2341_v13, %v1630_v56  ;;  %v2345_v20 = vld [vmem:[#allocation2 + $0x8] sm:$0xff] }
 0x3f5   : > { %v1681_v39 = vmul.f32 %v1644_v28, %v1633_v33  ;;  %v1682_v5 = vmul.f32 %v1649_v44, %v1634_v35  ;;  %v1683_v38 = vmul.f32 %v1654_v34, %v1635_v58  ;;  %v1684_v37 = vmul.f32 %v1659_v6, %v1636_v16  ;;  %v2335_v44 = vld [vmem:[%s2591_s1 + $0x18] sm:$0xff]   ;;  %v1760_v28 = vpop.permute.xlu1 %1759 }
 0x3f6   : > { %v1685_v45 = vmul.f32 %v1664_v29, %v1637_v10  ;;  %v1686_v63 = vmul.f32 %v1669_v36, %v1638_v26  ;;  %v1687_v30 = vmul.f32 %v1674_v7, %v1639_v4  ;;  %v1688_v9 = vmul.f32 %v1679_v25, %v1640_v57  ;;  %v2342_v36 = vld [vmem:[#allocation2 + $0x10] sm:$0xff] }
 0x3f7   : > { %v1729_v40 = vadd.f32 %v1692_v19, %v1681_v39  ;;  %v1730_v14 = vadd.f32 %v1697_v46, %v1682_v5  ;;  %v1731_v24 = vadd.f32 %v1702_v23, %v1683_v38  ;;  %v1732_v43 = vadd.f32 %v1707_v49, %v1684_v37  ;;  %v1765_v19 = vpop.permute.xlu0 %1764  ;;  %v1913_v26 = vld [vmem:[%s2604_s3 + $0x10] sm:$0xff]  ;;  %v1911_v5 = vld [vmem:[%s2604_s3] sm:$0xff] }
 0x3f8   : > { %v1733_v1 = vadd.f32 %v1712_v0, %v1685_v45  ;;  %v1734_v8 = vadd.f32 %v1717_v41, %v1686_v63  ;;  %v1735_v21 = vadd.f32 %v1722_v55, %v1687_v30  ;;  %v1736_v47 = vadd.f32 %v1727_v22, %v1688_v9  ;;  %v2344_v0 = vld [vmem:[#allocation2 + $0x18] sm:$0xff] }
 0x3f9   : > { %v1745_v17 = vpack.c.bf16 %v1730_v14, %v1729_v40  ;;  %v1746_v48 = vpack.c.bf16 %v1732_v43, %v1731_v24  ;;  %v1770_v46 = vpop.permute.xlu1 %1769  ;;  %v1914_v63 = vld [vmem:[%s2604_s3 + $0x18] sm:$0xff]  ;;  %v1912_v14 = vld [vmem:[%s2604_s3 + $0x8] sm:$0xff] }
 0x3fa   : > { %v1747_v32 = vpack.c.bf16 %v1734_v8, %v1733_v1  ;;  %v1748_v54 = vpack.c.bf16 %v1736_v47, %v1735_v21 }
 0x3fb   : > { %2221 = vmatprep.subr.bf16.mxu1 %v1745_v17  ;;  %v1775_v52 = vpop.permute.xlu0 %1774 }
 0x3fc   : > { %2222 = vmatpush3.bf16.msra.mxu1 %v1745_v17 }
 0x3fd   : > { %2223 = vmatprep.subr.bf16.mxu1 %v1746_v48  ;;  %v1780_v6 = vpop.permute.xlu1 %1779 }
 0x3ff   : > { %v1785_v49 = vpop.permute.xlu0 %1784 }
 0x400   : > { %2224 = vmatpush3.bf16.msra.mxu1 %v1746_v48 }
 0x401   : > { %2225 = vmatprep.subr.bf16.mxu1 %v1747_v32  ;;  %v1790_v62 = vpop.permute.xlu1 %1789 }
 0x403   : > { %v1795_v10 = vpop.permute.xlu0 %1794 }
 0x404   : > { %2226 = vmatpush3.bf16.msra.mxu1 %v1747_v32 }
 0x405   : > { %2227 = vmatprep.subr.bf16.mxu1 %v1748_v54 }
 0x408   : > { %2228 = vmatpush3.bf16.msra.mxu1 %v1748_v54 }
 0x40b   : > { %2230 = vmatmul.mubr.msk.bf16.vlgmr.msra.gmra.mrb[0].mxu1 %vm1817_vm8, %v2333_v61 }
 0x40c   : > { %2233 = vmatprep.mubr.msk.bf16.mxu1 %vm1817_vm8, %v2334_v15 }
 0x413   : > { %2234 = vmatmul.mubr.msk.bf16.gmra.mrb[4].mxu1 %vm1817_vm8, %v2335_v44 }
 0x4de   : > { %v2231_v3 = vpop.f32.mrb[0].mxu1 }
 0x4df   : > { %v1873_v53 = vadd.f32 %v2231_v3, %v1770_v46  ;;  %v1864_v34 = vpop.f32.mrb[1].mxu1 }
 0x4e0   : > { %v1865_v60 = vadd.f32 %v1864_v34, %v1760_v28  ;;  %v2232_v18 = vpop.f32.mrb[2].mxu1 }
 0x4e1   : > { %v1897_v27 = vmul.f32 %v3337_v12, %v1873_v53  ;;  %v1876_v59 = vadd.f32 %v2232_v18, %v1775_v52  ;;  %v1867_v23 = vpop.f32.mrb[3].mxu1 }
 0x4e2   : > { %v1895_v2 = vmul.f32 %v3337_v12, %v1865_v60  ;;  %v1868_v29 = vadd.f32 %v1867_v23, %v1765_v19 }
 0x4e3   : > { %v1905_v50 = vadd.f32 %v2342_v36, %v1897_v27  ;;  %v1898_v42 = vmul.f32 %v3337_v12, %v1876_v59 }
 0x4e4   : > { %v1903_v31 = vadd.f32 %v2343_v51, %v1895_v2  ;;  %v1896_v13 = vmul.f32 %v3337_v12, %v1868_v29 }
 0x4e5   : > { %1909 = vst [vmem:[#allocation2 + $0x10] sm:$0xff] %v1905_v50  ;;  %v1906_v41 = vadd.f32 %v2344_v0, %v1898_v42 }
 0x4e6   : > { %1907 = vst [vmem:[#allocation2] sm:$0xff] %v1903_v31  ;;  %v1904_v33 = vadd.f32 %v2345_v20, %v1896_v13  ;;  %v2235_v35 = vpop.f32.mrb[4].mxu1 }
 0x4e7   : > { %1910 = vst [vmem:[#allocation2 + $0x18] sm:$0xff] %v1906_v41  ;;  %v1889_v58 = vadd.f32 %v2235_v35, %v1790_v62  ;;  %v1880_v16 = vpop.f32.mrb[5].mxu1 }
 0x4e8   : > { %1908 = vst [vmem:[#allocation2 + $0x8] sm:$0xff] %v1904_v33  ;;  %v1881_v11 = vadd.f32 %v1880_v16, %v1780_v6  ;;  %v2236_v56 = vpop.f32.mrb[6].mxu1 }
 0x4e9   : > { %v1901_v39 = vmul.f32 %v3337_v12, %v1889_v58  ;;  %v1892_v38 = vadd.f32 %v2236_v56, %v1795_v10  ;;  %v1883_v37 = vpop.f32.mrb[7].mxu1 }
 0x4ea   : > { %v1899_v45 = vmul.f32 %v3337_v12, %v1881_v11  ;;  %v1884_v4 = vadd.f32 %v1883_v37, %v1785_v49 }
 0x4eb   : > { %v1917_v57 = vadd.f32 %v1913_v26, %v1901_v39  ;;  %v1902_v40 = vmul.f32 %v3337_v12, %v1892_v38 }
 0x4ec   : > { %v1915_v24 = vadd.f32 %v1911_v5, %v1899_v45  ;;  %v1900_v43 = vmul.f32 %v3337_v12, %v1884_v4 }
 0x4ed   : > { %1921 = vst [vmem:[%s2604_s3 + $0x10] sm:$0xff] %v1917_v57  ;;  %v1918_v7 = vadd.f32 %v1914_v63, %v1902_v40 }
 0x4ee   : > { %1919 = vst [vmem:[%s2604_s3] sm:$0xff] %v1915_v24  ;;  %v1916_v25 = vadd.f32 %v1912_v14, %v1900_v43 }
 0x4ef   : > { %1922 = vst [vmem:[%s2604_s3 + $0x18] sm:$0xff] %v1918_v7 }
 0x4f0   : > { %1920 = vst [vmem:[%s2604_s3 + $0x8] sm:$0xff] %v1916_v25 }
 0x4f1 PF: > { %s3342_s1 = sld [smem:[#allocation8_spill]]  ;;  %s3343_s21 = sld [smem:[#allocation6_spill]] }
 0x4f2   : > { %s3344_s22 = sld [smem:[#allocation7_spill]]  ;;  %s3345_s23 = sld [smem:[#allocation9_spill]] }
 0x4f3   : > { %s3346_s24 = sld [smem:[#allocation10_spill]] }
 0x4f7   : > { %s23_s25 = sadd.s32 1, %s3342_s1  }
 0x4f8   : > { %p20_p10 = scmp.ge.s32.totalorder %s23_s25, 14  }
 0x4fa   :  { %22 = sbr.rel (!%p20_p10) target bundleno = 12 (0xc), region = 137 }
 0x501   :  { %1944 = vsyncpa [#allocation4], 1 }
 0x502   :  { %1946 = vsyncpa [#allocation4 + $0x1], 1 }

</bundles_post_ra>
